<compile_context>
chip_gen: v5e
topology: v5e:2x2
jax: 0.10.0
libtpu: 0.0.40
codegen_flags: <defaults>
</compile_context>

<pallas_src>
import math

import jax
import jax.numpy as jnp
from jax.experimental import pallas as pl
from jax.experimental.pallas import tpu as pltpu  # imported for TPU-specific params if needed

# ----------------------------- model configuration ----------------------------- #
D_MODEL = 32          # config.d_model
D_FF = 64             # config.d_ff
N_HEADS = 4           # config.h
N_LAYERS = 2          # config.N
OUT_SIZE = 4          # config.output_size
VOCAB = 50            # src_vocab
N_SEG = 2             # segment ids {0, 1}
SEQ = 8               # sequence length
BATCH = 2             # batch size
BS = BATCH * SEQ
D_K = D_MODEL // N_HEADS
LN_EPS = 1e-6         # Annotated-Transformer LayerNorm eps

VOCAB_PAD = 56        # vocab rows padded to a sublane multiple (8)

# --------------------- packed parameter-slab row layout (static) ---------------- #
# "wide" slab: (WIDE_ROWS, 64) f32.  All reads are sublane row-blocks and offset-0
# lane slices (width 4/8/32/64), so no cross-lane data movement is ever needed.
TOK0 = 0                                   # rows [0, 56): tok_emb * sqrt(D), cols 0:32
SEG0 = TOK0 + VOCAB_PAD                    # rows [56, 58): segment embedding
PE0 = SEG0 + 8                             # rows [64, 80): positional encoding, (BS, 32)
LAYER_MAT0 = PE0 + BS                      # per-layer matrix blocks start at 80
LAYER_MAT_ROWS = D_MODEL + D_MODEL + D_FF  # wo(32) + w1(32) + w2(64) = 128


def _wo_row(l):
    return LAYER_MAT0 + l * LAYER_MAT_ROWS


def _w1_row(l):
    return _wo_row(l) + D_MODEL


def _w2_row(l):
    return _w1_row(l) + D_MODEL


FC0 = LAYER_MAT0 + N_LAYERS * LAYER_MAT_ROWS   # classifier weight (32 rows, cols 0:4)
VEC0 = FC0 + D_MODEL                           # bias / LN vector rows start here
VEC_PER_LAYER = 3 * N_HEADS + 7                # bq_h*4, bk_h*4, bv_h*4, bo, ln1g/b, b1, b2, ln2g/b


def _vrow(l, i):
    return VEC0 + l * VEC_PER_LAYER + i


def _i_bq(h):
    return h


def _i_bk(h):
    return N_HEADS + h


def _i_bv(h):
    return 2 * N_HEADS + h


I_BO, I_LN1G, I_LN1B, I_B1, I_B2, I_LN2G, I_LN2B = 12, 13, 14, 15, 16, 17, 18

FVEC0 = VEC0 + N_LAYERS * VEC_PER_LAYER        # lnfg, lnfb, bfc
WIDE_ROWS = ((FVEC0 + 3 + 7) // 8) * 8
WIDE_COLS = D_FF                               # 64 lanes


# per-head Q/K/V weight slab: (QKVW_ROWS, 8) f32; head h of projection p of layer l is a
# 32-row, sublane-aligned block.
def _qkv_row(l, p, h):
    return ((l * 3 + p) * N_HEADS + h) * D_MODEL


QKVW_ROWS = N_LAYERS * 3 * N_HEADS * D_MODEL   # 768


# --------------------------------- helpers ------------------------------------- #
def _layernorm(x, g, b):
    """Annotated-Transformer LayerNorm: g*(x-mean)/(std+eps)+b, unbiased std."""
    d = x.shape[-1]
    mean = jnp.mean(x, axis=-1, keepdims=True)
    var = jnp.sum((x - mean) ** 2, axis=-1, keepdims=True) / (d - 1)
    return g * (x - mean) / (jnp.sqrt(var) + LN_EPS) + b


def positional_encoding(seq_len, d_model):
    pos = jnp.arange(seq_len, dtype=jnp.float32)[:, None]
    div = jnp.exp(jnp.arange(0, d_model, 2, dtype=jnp.float32)
                  * (-math.log(10000.0) / d_model))
    pe = jnp.zeros((seq_len, d_model), jnp.float32)
    pe = pe.at[:, 0::2].set(jnp.sin(pos * div))
    pe = pe.at[:, 1::2].set(jnp.cos(pos * div))
    return pe


# ------------------------------ fused forward kernel --------------------------- #
def fused_forward_kernel(ids_ref, wide_ref, qkvw_ref, out_ref):
    ids = ids_ref[...]                                        # (BS, 2) int32
    xid = ids[:, 0:1]                                         # token ids
    tid = ids[:, 1:2]                                         # segment ids

    # ---- token embedding (table pre-scaled by sqrt(d_model)) via one-hot @ table ----
    voc_iota = jax.lax.broadcasted_iota(jnp.int32, (BS, VOCAB_PAD), 1)
    tok_oh = (voc_iota == xid).astype(jnp.float32)            # (BS, 56); padded rows never hit
    tok = jnp.dot(tok_oh, wide_ref[TOK0:TOK0 + VOCAB_PAD, 0:D_MODEL],
                  preferred_element_type=jnp.float32)

    # ---- segment embedding: 2-way select (N_SEG == 2), no one-hot matmul ----
    seg0 = wide_ref[SEG0:SEG0 + 1, 0:D_MODEL]
    seg1 = wide_ref[SEG0 + 1:SEG0 + 2, 0:D_MODEL]
    seg = jnp.where(tid == 0, seg0, seg1)                     # (BS, D)

    h = tok + wide_ref[PE0:PE0 + BS, 0:D_MODEL] + seg         # (BS, D)

    scale = 1.0 / math.sqrt(D_K)
    for l in range(N_LAYERS):                                 # static unroll, N_LAYERS=2
        # ---- sublayer 1: h + SelfAttn(LayerNorm(h)) ----
        ln1g = wide_ref[_vrow(l, I_LN1G):_vrow(l, I_LN1G) + 1, 0:D_MODEL]
        ln1b = wide_ref[_vrow(l, I_LN1B):_vrow(l, I_LN1B) + 1, 0:D_MODEL]
        xn = _layernorm(h, ln1g, ln1b)

        # Per-head projections: weights pre-split on the host -> only sublane-aligned
        # row blocks of qkvw and offset-0 lane slices of bias rows are read.
        qs, ks, vs = [], [], []
        for hh in range(N_HEADS):
            rq = _qkv_row(l, 0, hh)
            rk = _qkv_row(l, 1, hh)
            rv = _qkv_row(l, 2, hh)
            bq = wide_ref[_vrow(l, _i_bq(hh)):_vrow(l, _i_bq(hh)) + 1, 0:D_K]
            bk = wide_ref[_vrow(l, _i_bk(hh)):_vrow(l, _i_bk(hh)) + 1, 0:D_K]
            bv = wide_ref[_vrow(l, _i_bv(hh)):_vrow(l, _i_bv(hh)) + 1, 0:D_K]
            q_h = jnp.dot(xn, qkvw_ref[rq:rq + D_MODEL, :],
                          preferred_element_type=jnp.float32) + bq       # (BS, Dk)
            k_h = jnp.dot(xn, qkvw_ref[rk:rk + D_MODEL, :],
                          preferred_element_type=jnp.float32) + bk
            v_h = jnp.dot(xn, qkvw_ref[rv:rv + D_MODEL, :],
                          preferred_element_type=jnp.float32) + bv
            qs.append(q_h.reshape(BATCH, SEQ, D_K))
            ks.append(k_h.reshape(BATCH, SEQ, D_K))
            vs.append(v_h.reshape(BATCH, SEQ, D_K))

        # Merge (head, batch) into one leading dim of 8 -> single batched einsum pair.
        q = jnp.concatenate(qs, axis=0)                       # (H*B, S, Dk), n = h*B + b
        k = jnp.concatenate(ks, axis=0)
        v = jnp.concatenate(vs, axis=0)

        s = jnp.einsum('nqd,nkd->nqk', q, k,
                       preferred_element_type=jnp.float32) * scale       # (8, S, S)
        s = s - jnp.max(s, axis=-1, keepdims=True)
        e = jnp.exp(s)
        p = e / jnp.sum(e, axis=-1, keepdims=True)            # exact softmax
        ctx = jnp.einsum('nqk,nkd->nqd', p, v,
                         preferred_element_type=jnp.float32)             # (8, S, Dk)

        # Output projection accumulated per head against sublane-aligned wo row blocks
        # (no lane concatenation of head outputs).
        attn = wide_ref[_vrow(l, I_BO):_vrow(l, I_BO) + 1, 0:D_MODEL]    # (1, D) bias
        wo0 = _wo_row(l)
        for hh in range(N_HEADS):
            ctx_h = ctx[hh * BATCH:(hh + 1) * BATCH].reshape(BS, D_K)    # (BS, Dk)
            wo_h = wide_ref[wo0 + hh * D_K:wo0 + (hh + 1) * D_K, 0:D_MODEL]
            attn = attn + jnp.dot(ctx_h, wo_h, preferred_element_type=jnp.float32)
        h = h + attn

        # ---- sublayer 2: h + FFN(LayerNorm(h)) ----
        ln2g = wide_ref[_vrow(l, I_LN2G):_vrow(l, I_LN2G) + 1, 0:D_MODEL]
        ln2b = wide_ref[_vrow(l, I_LN2B):_vrow(l, I_LN2B) + 1, 0:D_MODEL]
        xn2 = _layernorm(h, ln2g, ln2b)
        w1 = wide_ref[_w1_row(l):_w1_row(l) + D_MODEL, 0:D_FF]
        b1 = wide_ref[_vrow(l, I_B1):_vrow(l, I_B1) + 1, 0:D_FF]
        hid = jnp.maximum(
            jnp.dot(xn2, w1, preferred_element_type=jnp.float32) + b1, 0.0)
        w2 = wide_ref[_w2_row(l):_w2_row(l) + D_FF, 0:D_MODEL]
        b2 = wide_ref[_vrow(l, I_B2):_vrow(l, I_B2) + 1, 0:D_MODEL]
        h = h + jnp.dot(hid, w2, preferred_element_type=jnp.float32) + b2

    # ---- final LayerNorm (Encoder.norm) on the last token, classifier, softmax ----
    # LN is per-token, so norm(h)[:, -1, :] == norm(h[:, -1, :]).
    feat = h.reshape(BATCH, SEQ, D_MODEL)[:, SEQ - 1, :]      # (B, D)
    lnfg = wide_ref[FVEC0:FVEC0 + 1, 0:D_MODEL]
    lnfb = wide_ref[FVEC0 + 1:FVEC0 + 2, 0:D_MODEL]
    xnf = _layernorm(feat, lnfg, lnfb)
    wfc = wide_ref[FC0:FC0 + D_MODEL, 0:OUT_SIZE]
    bfc = wide_ref[FVEC0 + 2:FVEC0 + 3, 0:OUT_SIZE]
    logits = jnp.dot(xnf, wfc, preferred_element_type=jnp.float32) + bfc
    m = jnp.max(logits, axis=-1, keepdims=True)
    e = jnp.exp(logits - m)
    out_ref[...] = e / jnp.sum(e, axis=-1, keepdims=True)     # exact nn.Softmax


# ------------------------------- full forward pass ------------------------------ #
def transformer_segment_forward(x_ids, t_ids, wide, qkvw):
    # x_ids, t_ids: (seq_len, batch) int ids -> permute(1,0) -> (batch, seq) -> flat rows
    xb = x_ids.T.reshape(BS).astype(jnp.int32)
    tb = t_ids.T.reshape(BS).astype(jnp.int32)
    ids = jnp.stack([xb, tb], axis=1)                         # (BS, 2) single operand

    return pl.pallas_call(
        fused_forward_kernel,
        out_shape=jax.ShapeDtypeStruct((BATCH, OUT_SIZE), jnp.float32),
        # no grid / BlockSpecs: single invocation, 3 operands, everything VMEM resident
    )(ids, wide, qkvw)


# ----------------------------- deterministic parameters ------------------------- #
def init_params(key):
    def nrm(k, shape, scale=0.05):
        return scale * jax.random.normal(k, shape, jnp.float32)

    keys = iter(jax.random.split(key, 32))
    # TODO(synk): original module loads cat2vec/word2vec tables from pickle files and a
    # torchtext vocab (seg_lookup); embedding tables here are initialized deterministically.
    return {
        'tok_emb': nrm(next(keys), (VOCAB, D_MODEL), 0.1),
        'seg_emb': nrm(next(keys), (N_SEG, D_MODEL), 0.1),
        'wq': nrm(next(keys), (N_LAYERS, D_MODEL, D_MODEL)),
        'wk': nrm(next(keys), (N_LAYERS, D_MODEL, D_MODEL)),
        'wv': nrm(next(keys), (N_LAYERS, D_MODEL, D_MODEL)),
        'bq': nrm(next(keys), (N_LAYERS, D_MODEL), 0.02),
        'bk': nrm(next(keys), (N_LAYERS, D_MODEL), 0.02),
        'bv': nrm(next(keys), (N_LAYERS, D_MODEL), 0.02),
        'wo': nrm(next(keys), (N_LAYERS, D_MODEL, D_MODEL)),
        'bo': nrm(next(keys), (N_LAYERS, D_MODEL), 0.02),
        'ln1g': jnp.ones((N_LAYERS, D_MODEL), jnp.float32),
        'ln1b': jnp.zeros((N_LAYERS, D_MODEL), jnp.float32),
        'w1': nrm(next(keys), (N_LAYERS, D_MODEL, D_FF)),
        'b1': nrm(next(keys), (N_LAYERS, D_FF), 0.02),
        'w2': nrm(next(keys), (N_LAYERS, D_FF, D_MODEL)),
        'b2': nrm(next(keys), (N_LAYERS, D_MODEL), 0.02),
        'ln2g': jnp.ones((N_LAYERS, D_MODEL), jnp.float32),
        'ln2b': jnp.zeros((N_LAYERS, D_MODEL), jnp.float32),
        'lnfg': jnp.ones((D_MODEL,), jnp.float32),
        'lnfb': jnp.zeros((D_MODEL,), jnp.float32),
        'wfc': nrm(next(keys), (D_MODEL, OUT_SIZE)),
        'bfc': nrm(next(keys), (OUT_SIZE,), 0.02),
    }


def pack_params(p):
    """Pack all parameters (plus PE) into two slabs; sqrt(d_model) folded into tok_emb."""
    wide = jnp.zeros((WIDE_ROWS, WIDE_COLS), jnp.float32)
    wide = wide.at[TOK0:TOK0 + VOCAB, 0:D_MODEL].set(p['tok_emb'] * math.sqrt(D_MODEL))
    wide = wide.at[SEG0:SEG0 + N_SEG, 0:D_MODEL].set(p['seg_emb'])
    pe = jnp.tile(positional_encoding(SEQ, D_MODEL), (BATCH, 1))
    wide = wide.at[PE0:PE0 + BS, 0:D_MODEL].set(pe)
    for l in range(N_LAYERS):
        wide = wide.at[_wo_row(l):_wo_row(l) + D_MODEL, 0:D_MODEL].set(p['wo'][l])
        wide = wide.at[_w1_row(l):_w1_row(l) + D_MODEL, 0:D_FF].set(p['w1'][l])
        wide = wide.at[_w2_row(l):_w2_row(l) + D_FF, 0:D_MODEL].set(p['w2'][l])
        for hh in range(N_HEADS):
            sl = slice(hh * D_K, (hh + 1) * D_K)
            wide = wide.at[_vrow(l, _i_bq(hh)), 0:D_K].set(p['bq'][l, sl])
            wide = wide.at[_vrow(l, _i_bk(hh)), 0:D_K].set(p['bk'][l, sl])
            wide = wide.at[_vrow(l, _i_bv(hh)), 0:D_K].set(p['bv'][l, sl])
        wide = wide.at[_vrow(l, I_BO), 0:D_MODEL].set(p['bo'][l])
        wide = wide.at[_vrow(l, I_LN1G), 0:D_MODEL].set(p['ln1g'][l])
        wide = wide.at[_vrow(l, I_LN1B), 0:D_MODEL].set(p['ln1b'][l])
        wide = wide.at[_vrow(l, I_B1), 0:D_FF].set(p['b1'][l])
        wide = wide.at[_vrow(l, I_B2), 0:D_MODEL].set(p['b2'][l])
        wide = wide.at[_vrow(l, I_LN2G), 0:D_MODEL].set(p['ln2g'][l])
        wide = wide.at[_vrow(l, I_LN2B), 0:D_MODEL].set(p['ln2b'][l])
    wide = wide.at[FC0:FC0 + D_MODEL, 0:OUT_SIZE].set(p['wfc'])
    wide = wide.at[FVEC0, 0:D_MODEL].set(p['lnfg'])
    wide = wide.at[FVEC0 + 1, 0:D_MODEL].set(p['lnfb'])
    wide = wide.at[FVEC0 + 2, 0:OUT_SIZE].set(p['bfc'])

    qkvw = jnp.zeros((QKVW_ROWS, D_K), jnp.float32)
    for l in range(N_LAYERS):
        for pi, name in enumerate(('wq', 'wk', 'wv')):
            for hh in range(N_HEADS):
                r = _qkv_row(l, pi, hh)
                qkvw = qkvw.at[r:r + D_MODEL, :].set(
                    p[name][l][:, hh * D_K:(hh + 1) * D_K])
    return wide, qkvw


# ------------------------- pure-JAX reference (correctness) --------------------- #
def reference_forward(x_ids, t_ids, p):
    xb = x_ids.T.reshape(BS)
    tb = t_ids.T.reshape(BS)
    pe = jnp.tile(positional_encoding(SEQ, D_MODEL), (BATCH, 1))
    h = p['tok_emb'][xb] * math.sqrt(D_MODEL) + pe + p['seg_emb'][tb]

    def ln(x, g, b):
        mean = jnp.mean(x, -1, keepdims=True)
        var = jnp.sum((x - mean) ** 2, -1, keepdims=True) / (x.shape[-1] - 1)
        return g * (x - mean) / (jnp.sqrt(var) + LN_EPS) + b

    for l in range(N_LAYERS):
        xn = ln(h, p['ln1g'][l], p['ln1b'][l])
        q = xn @ p['wq'][l] + p['bq'][l]
        k = xn @ p['wk'][l] + p['bk'][l]
        v = xn @ p['wv'][l] + p['bv'][l]
        qh = q.reshape(BATCH, SEQ, N_HEADS, D_K).transpose(0, 2, 1, 3)
        kh = k.reshape(BATCH, SEQ, N_HEADS, D_K).transpose(0, 2, 1, 3)
        vh = v.reshape(BATCH, SEQ, N_HEADS, D_K).transpose(0, 2, 1, 3)
        s = jnp.einsum('bhqd,bhkd->bhqk', qh, kh) * (1.0 / math.sqrt(D_K))
        pr = jax.nn.softmax(s, axis=-1)
        ctx = jnp.einsum('bhqk,bhkd->bhqd', pr, vh).transpose(0, 2, 1, 3).reshape(BS, D_MODEL)
        h = h + ctx @ p['wo'][l] + p['bo'][l]
        xn2 = ln(h, p['ln2g'][l], p['ln2b'][l])
        h = h + jnp.maximum(xn2 @ p['w1'][l] + p['b1'][l], 0.0) @ p['w2'][l] + p['b2'][l]
    feat = ln(h.reshape(BATCH, SEQ, D_MODEL)[:, -1, :], p['lnfg'], p['lnfb'])
    return jax.nn.softmax(feat @ p['wfc'] + p['bfc'], axis=-1)


if __name__ == "__main__":
    root = jax.random.PRNGKey(0)
    k_p, k_x, k_t = jax.random.split(root, 3)

    params = init_params(k_p)
    wide, qkvw = pack_params(params)

    # inputs follow the PyTorch convention: (seq_len, batch) integer ids
    x_ids = jax.random.randint(k_x, (SEQ, BATCH), 0, VOCAB, dtype=jnp.int32)
    t_ids = jax.random.randint(k_t, (SEQ, BATCH), 0, N_SEG, dtype=jnp.int32)

    fwd = jax.jit(transformer_segment_forward)
    probs = jax.block_until_ready(fwd(x_ids, t_ids, wide, qkvw))

    ref = reference_forward(x_ids, t_ids, params)

    assert probs.shape == (BATCH, OUT_SIZE)
    assert bool(jnp.all(jnp.isfinite(probs)))
    assert bool(jnp.allclose(jnp.sum(probs, axis=-1), 1.0, atol=1e-5))
    assert bool(jnp.allclose(probs, ref, atol=1e-4, rtol=1e-4))
    print("KERNEL_OK")
</pallas_src>

<mosaic_0001>
module attributes {stable_mosaic.version = 11 : i64} {
  func.func @fused_forward_kernel(%arg0: memref<16x2xi32, #tpu.memory_space<vmem>>, %arg1: memref<416x64xf32, #tpu.memory_space<vmem>>, %arg2: memref<768x8xf32, #tpu.memory_space<vmem>>, %arg3: memref<2x4xf32, #tpu.memory_space<vmem>>) attributes {dimension_semantics = [], scalar_prefetch = 0 : i64, scratch_operands = 0 : i64, tpu.core_type = #tpu.core_type<tc>} {
    %c0 = arith.constant 0 : index
    %c0_0 = arith.constant 0 : index
    %0 = vector.load %arg0[%c0, %c0_0] : memref<16x2xi32, #tpu.memory_space<vmem>>, vector<16x2xi32>
    %1 = vector.extract_strided_slice %0 {offsets = [0, 0], sizes = [16, 1], strides = [1, 1]} : vector<16x2xi32> to vector<16x1xi32>
    %2 = vector.extract_strided_slice %0 {offsets = [0, 1], sizes = [16, 1], strides = [1, 1]} : vector<16x2xi32> to vector<16x1xi32>
    %3 = tpu.iota {dimensions = array<i32: 1>} : vector<16x56xi32>
    %4 = vector.broadcast %1 : vector<16x1xi32> to vector<16x56xi32>
    %5 = arith.cmpi eq, %3, %4 : vector<16x56xi32>
    %6 = arith.extui %5 : vector<16x56xi1> to vector<16x56xi32>
    %7 = arith.sitofp %6 : vector<16x56xi32> to vector<16x56xf32>
    %c0_1 = arith.constant 0 : index
    %c0_2 = arith.constant 0 : index
    %8 = vector.load %arg1[%c0_1, %c0_2] : memref<416x64xf32, #tpu.memory_space<vmem>>, vector<56x32xf32>
    %cst = arith.constant dense<0.000000e+00> : vector<16x32xf32>
    %9 = tpu.matmul %7, %8, %cst {dimension_numbers = #tpu.dot_dimension_numbers<[1], [0], [0], [1], [0, 0, 1, 1], [], []>} : vector<16x56xf32>, vector<56x32xf32>, vector<16x32xf32> -> vector<16x32xf32>
    %c56 = arith.constant 56 : index
    %c0_3 = arith.constant 0 : index
    %10 = vector.load %arg1[%c56, %c0_3] : memref<416x64xf32, #tpu.memory_space<vmem>>, vector<1x32xf32>
    %c57 = arith.constant 57 : index
    %c0_4 = arith.constant 0 : index
    %11 = vector.load %arg1[%c57, %c0_4] : memref<416x64xf32, #tpu.memory_space<vmem>>, vector<1x32xf32>
    %c0_i32 = arith.constant 0 : i32
    %12 = vector.broadcast %c0_i32 : i32 to vector<16x1xi32>
    %13 = arith.cmpi eq, %2, %12 : vector<16x1xi32>
    %14 = vector.shape_cast %13 : vector<16x1xi1> to vector<16x1xi1>
    %15 = vector.broadcast %14 : vector<16x1xi1> to vector<16x32xi1>
    %16 = vector.shape_cast %10 : vector<1x32xf32> to vector<1x32xf32>
    %17 = vector.broadcast %16 : vector<1x32xf32> to vector<16x32xf32>
    %18 = vector.shape_cast %11 : vector<1x32xf32> to vector<1x32xf32>
    %19 = vector.broadcast %18 : vector<1x32xf32> to vector<16x32xf32>
    %20 = arith.select %15, %17, %19 : vector<16x32xi1>, vector<16x32xf32>
    %c64 = arith.constant 64 : index
    %c0_5 = arith.constant 0 : index
    %21 = vector.load %arg1[%c64, %c0_5] : memref<416x64xf32, #tpu.memory_space<vmem>>, vector<16x32xf32>
    %22 = arith.addf %9, %21 : vector<16x32xf32>
    %23 = arith.addf %22, %20 : vector<16x32xf32>
    %c381 = arith.constant 381 : index
    %c0_6 = arith.constant 0 : index
    %24 = vector.load %arg1[%c381, %c0_6] : memref<416x64xf32, #tpu.memory_space<vmem>>, vector<1x32xf32>
    %c382 = arith.constant 382 : index
    %c0_7 = arith.constant 0 : index
    %25 = vector.load %arg1[%c382, %c0_7] : memref<416x64xf32, #tpu.memory_space<vmem>>, vector<1x32xf32>
    %cst_8 = arith.constant dense<0.000000e+00> : vector<16xf32>
    %26 = vector.multi_reduction <add>, %23, %cst_8 [1] : vector<16x32xf32> to vector<16xf32>
    %27 = vector.shape_cast %26 : vector<16xf32> to vector<16x1xf32>
    %cst_9 = arith.constant 3.200000e+01 : f32
    %28 = vector.broadcast %cst_9 : f32 to vector<16x1xf32>
    %29 = arith.divf %27, %28 : vector<16x1xf32>
    %30 = vector.broadcast %29 : vector<16x1xf32> to vector<16x32xf32>
    %31 = arith.subf %23, %30 : vector<16x32xf32>
    %32 = arith.mulf %31, %31 : vector<16x32xf32>
    %cst_10 = arith.constant dense<0.000000e+00> : vector<16xf32>
    %33 = vector.multi_reduction <add>, %32, %cst_10 [1] : vector<16x32xf32> to vector<16xf32>
    %34 = vector.shape_cast %33 : vector<16xf32> to vector<16x1xf32>
    %cst_11 = arith.constant 3.100000e+01 : f32
    %35 = vector.broadcast %cst_11 : f32 to vector<16x1xf32>
    %36 = arith.divf %34, %35 : vector<16x1xf32>
    %37 = vector.broadcast %29 : vector<16x1xf32> to vector<16x32xf32>
    %38 = arith.subf %23, %37 : vector<16x32xf32>
    %39 = vector.broadcast %24 : vector<1x32xf32> to vector<16x32xf32>
    %40 = arith.mulf %39, %38 : vector<16x32xf32>
    %41 = math.sqrt %36 : vector<16x1xf32>
    %cst_12 = arith.constant 9.99999997E-7 : f32
    %42 = vector.broadcast %cst_12 : f32 to vector<16x1xf32>
    %43 = arith.addf %41, %42 : vector<16x1xf32>
    %44 = vector.broadcast %43 : vector<16x1xf32> to vector<16x32xf32>
    %45 = arith.divf %40, %44 : vector<16x32xf32>
    %46 = vector.broadcast %25 : vector<1x32xf32> to vector<16x32xf32>
    %47 = arith.addf %45, %46 : vector<16x32xf32>
    %c368 = arith.constant 368 : index
    %c0_13 = arith.constant 0 : index
    %48 = vector.load %arg1[%c368, %c0_13] : memref<416x64xf32, #tpu.memory_space<vmem>>, vector<1x8xf32>
    %c372 = arith.constant 372 : index
    %c0_14 = arith.constant 0 : index
    %49 = vector.load %arg1[%c372, %c0_14] : memref<416x64xf32, #tpu.memory_space<vmem>>, vector<1x8xf32>
    %c376 = arith.constant 376 : index
    %c0_15 = arith.constant 0 : index
    %50 = vector.load %arg1[%c376, %c0_15] : memref<416x64xf32, #tpu.memory_space<vmem>>, vector<1x8xf32>
    %c0_16 = arith.constant 0 : index
    %c0_17 = arith.constant 0 : index
    %51 = vector.load %arg2[%c0_16, %c0_17] : memref<768x8xf32, #tpu.memory_space<vmem>>, vector<32x8xf32>
    %cst_18 = arith.constant dense<0.000000e+00> : vector<16x8xf32>
    %52 = tpu.matmul %47, %51, %cst_18 {dimension_numbers = #tpu.dot_dimension_numbers<[1], [0], [0], [1], [0, 0, 1, 1], [], []>} : vector<16x32xf32>, vector<32x8xf32>, vector<16x8xf32> -> vector<16x8xf32>
    %53 = vector.broadcast %48 : vector<1x8xf32> to vector<16x8xf32>
    %54 = arith.addf %52, %53 : vector<16x8xf32>
    %c128 = arith.constant 128 : index
    %c0_19 = arith.constant 0 : index
    %55 = vector.load %arg2[%c128, %c0_19] : memref<768x8xf32, #tpu.memory_space<vmem>>, vector<32x8xf32>
    %cst_20 = arith.constant dense<0.000000e+00> : vector<16x8xf32>
    %56 = tpu.matmul %47, %55, %cst_20 {dimension_numbers = #tpu.dot_dimension_numbers<[1], [0], [0], [1], [0, 0, 1, 1], [], []>} : vector<16x32xf32>, vector<32x8xf32>, vector<16x8xf32> -> vector<16x8xf32>
    %57 = vector.broadcast %49 : vector<1x8xf32> to vector<16x8xf32>
    %58 = arith.addf %56, %57 : vector<16x8xf32>
    %c256 = arith.constant 256 : index
    %c0_21 = arith.constant 0 : index
    %59 = vector.load %arg2[%c256, %c0_21] : memref<768x8xf32, #tpu.memory_space<vmem>>, vector<32x8xf32>
    %cst_22 = arith.constant dense<0.000000e+00> : vector<16x8xf32>
    %60 = tpu.matmul %47, %59, %cst_22 {dimension_numbers = #tpu.dot_dimension_numbers<[1], [0], [0], [1], [0, 0, 1, 1], [], []>} : vector<16x32xf32>, vector<32x8xf32>, vector<16x8xf32> -> vector<16x8xf32>
    %61 = vector.broadcast %50 : vector<1x8xf32> to vector<16x8xf32>
    %62 = arith.addf %60, %61 : vector<16x8xf32>
    %63 = vector.shape_cast %54 : vector<16x8xf32> to vector<2x8x8xf32>
    %64 = vector.shape_cast %58 : vector<16x8xf32> to vector<2x8x8xf32>
    %65 = vector.shape_cast %62 : vector<16x8xf32> to vector<2x8x8xf32>
    %c369 = arith.constant 369 : index
    %c0_23 = arith.constant 0 : index
    %66 = vector.load %arg1[%c369, %c0_23] : memref<416x64xf32, #tpu.memory_space<vmem>>, vector<1x8xf32>
    %c373 = arith.constant 373 : index
    %c0_24 = arith.constant 0 : index
    %67 = vector.load %arg1[%c373, %c0_24] : memref<416x64xf32, #tpu.memory_space<vmem>>, vector<1x8xf32>
    %c377 = arith.constant 377 : index
    %c0_25 = arith.constant 0 : index
    %68 = vector.load %arg1[%c377, %c0_25] : memref<416x64xf32, #tpu.memory_space<vmem>>, vector<1x8xf32>
    %c32 = arith.constant 32 : index
    %c0_26 = arith.constant 0 : index
    %69 = vector.load %arg2[%c32, %c0_26] : memref<768x8xf32, #tpu.memory_space<vmem>>, vector<32x8xf32>
    %cst_27 = arith.constant dense<0.000000e+00> : vector<16x8xf32>
    %70 = tpu.matmul %47, %69, %cst_27 {dimension_numbers = #tpu.dot_dimension_numbers<[1], [0], [0], [1], [0, 0, 1, 1], [], []>} : vector<16x32xf32>, vector<32x8xf32>, vector<16x8xf32> -> vector<16x8xf32>
    %71 = vector.broadcast %66 : vector<1x8xf32> to vector<16x8xf32>
    %72 = arith.addf %70, %71 : vector<16x8xf32>
    %c160 = arith.constant 160 : index
    %c0_28 = arith.constant 0 : index
    %73 = vector.load %arg2[%c160, %c0_28] : memref<768x8xf32, #tpu.memory_space<vmem>>, vector<32x8xf32>
    %cst_29 = arith.constant dense<0.000000e+00> : vector<16x8xf32>
    %74 = tpu.matmul %47, %73, %cst_29 {dimension_numbers = #tpu.dot_dimension_numbers<[1], [0], [0], [1], [0, 0, 1, 1], [], []>} : vector<16x32xf32>, vector<32x8xf32>, vector<16x8xf32> -> vector<16x8xf32>
    %75 = vector.broadcast %67 : vector<1x8xf32> to vector<16x8xf32>
    %76 = arith.addf %74, %75 : vector<16x8xf32>
    %c288 = arith.constant 288 : index
    %c0_30 = arith.constant 0 : index
    %77 = vector.load %arg2[%c288, %c0_30] : memref<768x8xf32, #tpu.memory_space<vmem>>, vector<32x8xf32>
    %cst_31 = arith.constant dense<0.000000e+00> : vector<16x8xf32>
    %78 = tpu.matmul %47, %77, %cst_31 {dimension_numbers = #tpu.dot_dimension_numbers<[1], [0], [0], [1], [0, 0, 1, 1], [], []>} : vector<16x32xf32>, vector<32x8xf32>, vector<16x8xf32> -> vector<16x8xf32>
    %79 = vector.broadcast %68 : vector<1x8xf32> to vector<16x8xf32>
    %80 = arith.addf %78, %79 : vector<16x8xf32>
    %81 = vector.shape_cast %72 : vector<16x8xf32> to vector<2x8x8xf32>
    %82 = vector.shape_cast %76 : vector<16x8xf32> to vector<2x8x8xf32>
    %83 = vector.shape_cast %80 : vector<16x8xf32> to vector<2x8x8xf32>
    %c370 = arith.constant 370 : index
    %c0_32 = arith.constant 0 : index
    %84 = vector.load %arg1[%c370, %c0_32] : memref<416x64xf32, #tpu.memory_space<vmem>>, vector<1x8xf32>
    %c374 = arith.constant 374 : index
    %c0_33 = arith.constant 0 : index
    %85 = vector.load %arg1[%c374, %c0_33] : memref<416x64xf32, #tpu.memory_space<vmem>>, vector<1x8xf32>
    %c378 = arith.constant 378 : index
    %c0_34 = arith.constant 0 : index
    %86 = vector.load %arg1[%c378, %c0_34] : memref<416x64xf32, #tpu.memory_space<vmem>>, vector<1x8xf32>
    %c64_35 = arith.constant 64 : index
    %c0_36 = arith.constant 0 : index
    %87 = vector.load %arg2[%c64_35, %c0_36] : memref<768x8xf32, #tpu.memory_space<vmem>>, vector<32x8xf32>
    %cst_37 = arith.constant dense<0.000000e+00> : vector<16x8xf32>
    %88 = tpu.matmul %47, %87, %cst_37 {dimension_numbers = #tpu.dot_dimension_numbers<[1], [0], [0], [1], [0, 0, 1, 1], [], []>} : vector<16x32xf32>, vector<32x8xf32>, vector<16x8xf32> -> vector<16x8xf32>
    %89 = vector.broadcast %84 : vector<1x8xf32> to vector<16x8xf32>
    %90 = arith.addf %88, %89 : vector<16x8xf32>
    %c192 = arith.constant 192 : index
    %c0_38 = arith.constant 0 : index
    %91 = vector.load %arg2[%c192, %c0_38] : memref<768x8xf32, #tpu.memory_space<vmem>>, vector<32x8xf32>
    %cst_39 = arith.constant dense<0.000000e+00> : vector<16x8xf32>
    %92 = tpu.matmul %47, %91, %cst_39 {dimension_numbers = #tpu.dot_dimension_numbers<[1], [0], [0], [1], [0, 0, 1, 1], [], []>} : vector<16x32xf32>, vector<32x8xf32>, vector<16x8xf32> -> vector<16x8xf32>
    %93 = vector.broadcast %85 : vector<1x8xf32> to vector<16x8xf32>
    %94 = arith.addf %92, %93 : vector<16x8xf32>
    %c320 = arith.constant 320 : index
    %c0_40 = arith.constant 0 : index
    %95 = vector.load %arg2[%c320, %c0_40] : memref<768x8xf32, #tpu.memory_space<vmem>>, vector<32x8xf32>
    %cst_41 = arith.constant dense<0.000000e+00> : vector<16x8xf32>
    %96 = tpu.matmul %47, %95, %cst_41 {dimension_numbers = #tpu.dot_dimension_numbers<[1], [0], [0], [1], [0, 0, 1, 1], [], []>} : vector<16x32xf32>, vector<32x8xf32>, vector<16x8xf32> -> vector<16x8xf32>
    %97 = vector.broadcast %86 : vector<1x8xf32> to vector<16x8xf32>
    %98 = arith.addf %96, %97 : vector<16x8xf32>
    %99 = vector.shape_cast %90 : vector<16x8xf32> to vector<2x8x8xf32>
    %100 = vector.shape_cast %94 : vector<16x8xf32> to vector<2x8x8xf32>
    %101 = vector.shape_cast %98 : vector<16x8xf32> to vector<2x8x8xf32>
    %c371 = arith.constant 371 : index
    %c0_42 = arith.constant 0 : index
    %102 = vector.load %arg1[%c371, %c0_42] : memref<416x64xf32, #tpu.memory_space<vmem>>, vector<1x8xf32>
    %c375 = arith.constant 375 : index
    %c0_43 = arith.constant 0 : index
    %103 = vector.load %arg1[%c375, %c0_43] : memref<416x64xf32, #tpu.memory_space<vmem>>, vector<1x8xf32>
    %c379 = arith.constant 379 : index
    %c0_44 = arith.constant 0 : index
    %104 = vector.load %arg1[%c379, %c0_44] : memref<416x64xf32, #tpu.memory_space<vmem>>, vector<1x8xf32>
    %c96 = arith.constant 96 : index
    %c0_45 = arith.constant 0 : index
    %105 = vector.load %arg2[%c96, %c0_45] : memref<768x8xf32, #tpu.memory_space<vmem>>, vector<32x8xf32>
    %cst_46 = arith.constant dense<0.000000e+00> : vector<16x8xf32>
    %106 = tpu.matmul %47, %105, %cst_46 {dimension_numbers = #tpu.dot_dimension_numbers<[1], [0], [0], [1], [0, 0, 1, 1], [], []>} : vector<16x32xf32>, vector<32x8xf32>, vector<16x8xf32> -> vector<16x8xf32>
    %107 = vector.broadcast %102 : vector<1x8xf32> to vector<16x8xf32>
    %108 = arith.addf %106, %107 : vector<16x8xf32>
    %c224 = arith.constant 224 : index
    %c0_47 = arith.constant 0 : index
    %109 = vector.load %arg2[%c224, %c0_47] : memref<768x8xf32, #tpu.memory_space<vmem>>, vector<32x8xf32>
    %cst_48 = arith.constant dense<0.000000e+00> : vector<16x8xf32>
    %110 = tpu.matmul %47, %109, %cst_48 {dimension_numbers = #tpu.dot_dimension_numbers<[1], [0], [0], [1], [0, 0, 1, 1], [], []>} : vector<16x32xf32>, vector<32x8xf32>, vector<16x8xf32> -> vector<16x8xf32>
    %111 = vector.broadcast %103 : vector<1x8xf32> to vector<16x8xf32>
    %112 = arith.addf %110, %111 : vector<16x8xf32>
    %c352 = arith.constant 352 : index
    %c0_49 = arith.constant 0 : index
    %113 = vector.load %arg2[%c352, %c0_49] : memref<768x8xf32, #tpu.memory_space<vmem>>, vector<32x8xf32>
    %cst_50 = arith.constant dense<0.000000e+00> : vector<16x8xf32>
    %114 = tpu.matmul %47, %113, %cst_50 {dimension_numbers = #tpu.dot_dimension_numbers<[1], [0], [0], [1], [0, 0, 1, 1], [], []>} : vector<16x32xf32>, vector<32x8xf32>, vector<16x8xf32> -> vector<16x8xf32>
    %115 = vector.broadcast %104 : vector<1x8xf32> to vector<16x8xf32>
    %116 = arith.addf %114, %115 : vector<16x8xf32>
    %117 = vector.shape_cast %108 : vector<16x8xf32> to vector<2x8x8xf32>
    %118 = vector.shape_cast %112 : vector<16x8xf32> to vector<2x8x8xf32>
    %119 = vector.shape_cast %116 : vector<16x8xf32> to vector<2x8x8xf32>
    %120 = tpu.concatenate %63, %81, %99, %117 in 0 : vector<2x8x8xf32>, vector<2x8x8xf32>, vector<2x8x8xf32>, vector<2x8x8xf32> -> vector<8x8x8xf32>
    %121 = tpu.concatenate %64, %82, %100, %118 in 0 : vector<2x8x8xf32>, vector<2x8x8xf32>, vector<2x8x8xf32>, vector<2x8x8xf32> -> vector<8x8x8xf32>
    %122 = tpu.concatenate %65, %83, %101, %119 in 0 : vector<2x8x8xf32>, vector<2x8x8xf32>, vector<2x8x8xf32>, vector<2x8x8xf32> -> vector<8x8x8xf32>
    "tpu.trace_start"() <{level = 10 : i32, message = "nqd,nkd->nqk"}> : () -> ()
    %cst_51 = arith.constant dense<0.000000e+00> : vector<8x8x8xf32>
    %123 = tpu.matmul %120, %121, %cst_51 {dimension_numbers = #tpu.dot_dimension_numbers<[2], [2], [1], [1], [0, 0, 0, 1, 1, 1], [0], [0]>} : vector<8x8x8xf32>, vector<8x8x8xf32>, vector<8x8x8xf32> -> vector<8x8x8xf32>
    "tpu.trace_stop"() : () -> ()
    %cst_52 = arith.constant 0.353553385 : f32
    %124 = vector.broadcast %cst_52 : f32 to vector<8x8x8xf32>
    %125 = arith.mulf %123, %124 : vector<8x8x8xf32>
    %cst_53 = arith.constant dense<0xFF800000> : vector<8x8xf32>
    %126 = vector.multi_reduction <maximumf>, %125, %cst_53 [2] : vector<8x8x8xf32> to vector<8x8xf32>
    %127 = vector.shape_cast %126 : vector<8x8xf32> to vector<8x8x1xf32>
    %128 = vector.broadcast %127 : vector<8x8x1xf32> to vector<8x8x8xf32>
    %129 = arith.subf %125, %128 : vector<8x8x8xf32>
    %130 = math.exp %129 : vector<8x8x8xf32>
    %cst_54 = arith.constant dense<0.000000e+00> : vector<8x8xf32>
    %131 = vector.multi_reduction <add>, %130, %cst_54 [2] : vector<8x8x8xf32> to vector<8x8xf32>
    %132 = vector.shape_cast %131 : vector<8x8xf32> to vector<8x8x1xf32>
    %133 = vector.broadcast %132 : vector<8x8x1xf32> to vector<8x8x8xf32>
    %134 = arith.divf %130, %133 : vector<8x8x8xf32>
    "tpu.trace_start"() <{level = 10 : i32, message = "nqk,nkd->nqd"}> : () -> ()
    %cst_55 = arith.constant dense<0.000000e+00> : vector<8x8x8xf32>
    %135 = tpu.matmul %134, %122, %cst_55 {dimension_numbers = #tpu.dot_dimension_numbers<[2], [1], [1], [2], [0, 0, 0, 1, 1, 2], [0], [0]>} : vector<8x8x8xf32>, vector<8x8x8xf32>, vector<8x8x8xf32> -> vector<8x8x8xf32>
    "tpu.trace_stop"() : () -> ()
    %c380 = arith.constant 380 : index
    %c0_56 = arith.constant 0 : index
    %136 = vector.load %arg1[%c380, %c0_56] : memref<416x64xf32, #tpu.memory_space<vmem>>, vector<1x32xf32>
    %137 = vector.extract_strided_slice %135 {offsets = [0, 0, 0], sizes = [2, 8, 8], strides = [1, 1, 1]} : vector<8x8x8xf32> to vector<2x8x8xf32>
    %138 = vector.shape_cast %137 : vector<2x8x8xf32> to vector<16x8xf32>
    %c80 = arith.constant 80 : index
    %c0_57 = arith.constant 0 : index
    %139 = vector.load %arg1[%c80, %c0_57] : memref<416x64xf32, #tpu.memory_space<vmem>>, vector<8x32xf32>
    %cst_58 = arith.constant dense<0.000000e+00> : vector<16x32xf32>
    %140 = tpu.matmul %138, %139, %cst_58 {dimension_numbers = #tpu.dot_dimension_numbers<[1], [0], [0], [1], [0, 0, 1, 1], [], []>} : vector<16x8xf32>, vector<8x32xf32>, vector<16x32xf32> -> vector<16x32xf32>
    %141 = vector.broadcast %136 : vector<1x32xf32> to vector<16x32xf32>
    %142 = arith.addf %141, %140 : vector<16x32xf32>
    %143 = vector.extract_strided_slice %135 {offsets = [2, 0, 0], sizes = [2, 8, 8], strides = [1, 1, 1]} : vector<8x8x8xf32> to vector<2x8x8xf32>
    %144 = vector.shape_cast %143 : vector<2x8x8xf32> to vector<16x8xf32>
    %c88 = arith.constant 88 : index
    %c0_59 = arith.constant 0 : index
    %145 = vector.load %arg1[%c88, %c0_59] : memref<416x64xf32, #tpu.memory_space<vmem>>, vector<8x32xf32>
    %cst_60 = arith.constant dense<0.000000e+00> : vector<16x32xf32>
    %146 = tpu.matmul %144, %145, %cst_60 {dimension_numbers = #tpu.dot_dimension_numbers<[1], [0], [0], [1], [0, 0, 1, 1], [], []>} : vector<16x8xf32>, vector<8x32xf32>, vector<16x32xf32> -> vector<16x32xf32>
    %147 = arith.addf %142, %146 : vector<16x32xf32>
    %148 = vector.extract_strided_slice %135 {offsets = [4, 0, 0], sizes = [2, 8, 8], strides = [1, 1, 1]} : vector<8x8x8xf32> to vector<2x8x8xf32>
    %149 = vector.shape_cast %148 : vector<2x8x8xf32> to vector<16x8xf32>
    %c96_61 = arith.constant 96 : index
    %c0_62 = arith.constant 0 : index
    %150 = vector.load %arg1[%c96_61, %c0_62] : memref<416x64xf32, #tpu.memory_space<vmem>>, vector<8x32xf32>
    %cst_63 = arith.constant dense<0.000000e+00> : vector<16x32xf32>
    %151 = tpu.matmul %149, %150, %cst_63 {dimension_numbers = #tpu.dot_dimension_numbers<[1], [0], [0], [1], [0, 0, 1, 1], [], []>} : vector<16x8xf32>, vector<8x32xf32>, vector<16x32xf32> -> vector<16x32xf32>
    %152 = arith.addf %147, %151 : vector<16x32xf32>
    %153 = vector.extract_strided_slice %135 {offsets = [6, 0, 0], sizes = [2, 8, 8], strides = [1, 1, 1]} : vector<8x8x8xf32> to vector<2x8x8xf32>
    %154 = vector.shape_cast %153 : vector<2x8x8xf32> to vector<16x8xf32>
    %c104 = arith.constant 104 : index
    %c0_64 = arith.constant 0 : index
    %155 = vector.load %arg1[%c104, %c0_64] : memref<416x64xf32, #tpu.memory_space<vmem>>, vector<8x32xf32>
    %cst_65 = arith.constant dense<0.000000e+00> : vector<16x32xf32>
    %156 = tpu.matmul %154, %155, %cst_65 {dimension_numbers = #tpu.dot_dimension_numbers<[1], [0], [0], [1], [0, 0, 1, 1], [], []>} : vector<16x8xf32>, vector<8x32xf32>, vector<16x32xf32> -> vector<16x32xf32>
    %157 = arith.addf %152, %156 : vector<16x32xf32>
    %158 = arith.addf %23, %157 : vector<16x32xf32>
    %c385 = arith.constant 385 : index
    %c0_66 = arith.constant 0 : index
    %159 = vector.load %arg1[%c385, %c0_66] : memref<416x64xf32, #tpu.memory_space<vmem>>, vector<1x32xf32>
    %c386 = arith.constant 386 : index
    %c0_67 = arith.constant 0 : index
    %160 = vector.load %arg1[%c386, %c0_67] : memref<416x64xf32, #tpu.memory_space<vmem>>, vector<1x32xf32>
    %cst_68 = arith.constant dense<0.000000e+00> : vector<16xf32>
    %161 = vector.multi_reduction <add>, %158, %cst_68 [1] : vector<16x32xf32> to vector<16xf32>
    %162 = vector.shape_cast %161 : vector<16xf32> to vector<16x1xf32>
    %cst_69 = arith.constant 3.200000e+01 : f32
    %163 = vector.broadcast %cst_69 : f32 to vector<16x1xf32>
    %164 = arith.divf %162, %163 : vector<16x1xf32>
    %165 = vector.broadcast %164 : vector<16x1xf32> to vector<16x32xf32>
    %166 = arith.subf %158, %165 : vector<16x32xf32>
    %167 = arith.mulf %166, %166 : vector<16x32xf32>
    %cst_70 = arith.constant dense<0.000000e+00> : vector<16xf32>
    %168 = vector.multi_reduction <add>, %167, %cst_70 [1] : vector<16x32xf32> to vector<16xf32>
    %169 = vector.shape_cast %168 : vector<16xf32> to vector<16x1xf32>
    %cst_71 = arith.constant 3.100000e+01 : f32
    %170 = vector.broadcast %cst_71 : f32 to vector<16x1xf32>
    %171 = arith.divf %169, %170 : vector<16x1xf32>
    %172 = vector.broadcast %164 : vector<16x1xf32> to vector<16x32xf32>
    %173 = arith.subf %158, %172 : vector<16x32xf32>
    %174 = vector.broadcast %159 : vector<1x32xf32> to vector<16x32xf32>
    %175 = arith.mulf %174, %173 : vector<16x32xf32>
    %176 = math.sqrt %171 : vector<16x1xf32>
    %cst_72 = arith.constant 9.99999997E-7 : f32
    %177 = vector.broadcast %cst_72 : f32 to vector<16x1xf32>
    %178 = arith.addf %176, %177 : vector<16x1xf32>
    %179 = vector.broadcast %178 : vector<16x1xf32> to vector<16x32xf32>
    %180 = arith.divf %175, %179 : vector<16x32xf32>
    %181 = vector.broadcast %160 : vector<1x32xf32> to vector<16x32xf32>
    %182 = arith.addf %180, %181 : vector<16x32xf32>
    %c112 = arith.constant 112 : index
    %c0_73 = arith.constant 0 : index
    %183 = vector.load %arg1[%c112, %c0_73] : memref<416x64xf32, #tpu.memory_space<vmem>>, vector<32x64xf32>
    %c383 = arith.constant 383 : index
    %c0_74 = arith.constant 0 : index
    %184 = vector.load %arg1[%c383, %c0_74] : memref<416x64xf32, #tpu.memory_space<vmem>>, vector<1x64xf32>
    %cst_75 = arith.constant dense<0.000000e+00> : vector<16x64xf32>
    %185 = tpu.matmul %182, %183, %cst_75 {dimension_numbers = #tpu.dot_dimension_numbers<[1], [0], [0], [1], [0, 0, 1, 1], [], []>} : vector<16x32xf32>, vector<32x64xf32>, vector<16x64xf32> -> vector<16x64xf32>
    %186 = vector.broadcast %184 : vector<1x64xf32> to vector<16x64xf32>
    %187 = arith.addf %185, %186 : vector<16x64xf32>
    %cst_76 = arith.constant 0.000000e+00 : f32
    %188 = vector.broadcast %cst_76 : f32 to vector<16x64xf32>
    %189 = arith.maximumf %187, %188 : vector<16x64xf32>
    %c144 = arith.constant 144 : index
    %c0_77 = arith.constant 0 : index
    %190 = vector.load %arg1[%c144, %c0_77] : memref<416x64xf32, #tpu.memory_space<vmem>>, vector<64x32xf32>
    %c384 = arith.constant 384 : index
    %c0_78 = arith.constant 0 : index
    %191 = vector.load %arg1[%c384, %c0_78] : memref<416x64xf32, #tpu.memory_space<vmem>>, vector<1x32xf32>
    %cst_79 = arith.constant dense<0.000000e+00> : vector<16x32xf32>
    %192 = tpu.matmul %189, %190, %cst_79 {dimension_numbers = #tpu.dot_dimension_numbers<[1], [0], [0], [1], [0, 0, 1, 1], [], []>} : vector<16x64xf32>, vector<64x32xf32>, vector<16x32xf32> -> vector<16x32xf32>
    %193 = arith.addf %158, %192 : vector<16x32xf32>
    %194 = vector.broadcast %191 : vector<1x32xf32> to vector<16x32xf32>
    %195 = arith.addf %193, %194 : vector<16x32xf32>
    %c400 = arith.constant 400 : index
    %c0_80 = arith.constant 0 : index
    %196 = vector.load %arg1[%c400, %c0_80] : memref<416x64xf32, #tpu.memory_space<vmem>>, vector<1x32xf32>
    %c401 = arith.constant 401 : index
    %c0_81 = arith.constant 0 : index
    %197 = vector.load %arg1[%c401, %c0_81] : memref<416x64xf32, #tpu.memory_space<vmem>>, vector<1x32xf32>
    %cst_82 = arith.constant dense<0.000000e+00> : vector<16xf32>
    %198 = vector.multi_reduction <add>, %195, %cst_82 [1] : vector<16x32xf32> to vector<16xf32>
    %199 = vector.shape_cast %198 : vector<16xf32> to vector<16x1xf32>
    %cst_83 = arith.constant 3.200000e+01 : f32
    %200 = vector.broadcast %cst_83 : f32 to vector<16x1xf32>
    %201 = arith.divf %199, %200 : vector<16x1xf32>
    %202 = vector.broadcast %201 : vector<16x1xf32> to vector<16x32xf32>
    %203 = arith.subf %195, %202 : vector<16x32xf32>
    %204 = arith.mulf %203, %203 : vector<16x32xf32>
    %cst_84 = arith.constant dense<0.000000e+00> : vector<16xf32>
    %205 = vector.multi_reduction <add>, %204, %cst_84 [1] : vector<16x32xf32> to vector<16xf32>
    %206 = vector.shape_cast %205 : vector<16xf32> to vector<16x1xf32>
    %cst_85 = arith.constant 3.100000e+01 : f32
    %207 = vector.broadcast %cst_85 : f32 to vector<16x1xf32>
    %208 = arith.divf %206, %207 : vector<16x1xf32>
    %209 = vector.broadcast %201 : vector<16x1xf32> to vector<16x32xf32>
    %210 = arith.subf %195, %209 : vector<16x32xf32>
    %211 = vector.broadcast %196 : vector<1x32xf32> to vector<16x32xf32>
    %212 = arith.mulf %211, %210 : vector<16x32xf32>
    %213 = math.sqrt %208 : vector<16x1xf32>
    %cst_86 = arith.constant 9.99999997E-7 : f32
    %214 = vector.broadcast %cst_86 : f32 to vector<16x1xf32>
    %215 = arith.addf %213, %214 : vector<16x1xf32>
    %216 = vector.broadcast %215 : vector<16x1xf32> to vector<16x32xf32>
    %217 = arith.divf %212, %216 : vector<16x32xf32>
    %218 = vector.broadcast %197 : vector<1x32xf32> to vector<16x32xf32>
    %219 = arith.addf %217, %218 : vector<16x32xf32>
    %c387 = arith.constant 387 : index
    %c0_87 = arith.constant 0 : index
    %220 = vector.load %arg1[%c387, %c0_87] : memref<416x64xf32, #tpu.memory_space<vmem>>, vector<1x8xf32>
    %c391 = arith.constant 391 : index
    %c0_88 = arith.constant 0 : index
    %221 = vector.load %arg1[%c391, %c0_88] : memref<416x64xf32, #tpu.memory_space<vmem>>, vector<1x8xf32>
    %c395 = arith.constant 395 : index
    %c0_89 = arith.constant 0 : index
    %222 = vector.load %arg1[%c395, %c0_89] : memref<416x64xf32, #tpu.memory_space<vmem>>, vector<1x8xf32>
    %c384_90 = arith.constant 384 : index
    %c0_91 = arith.constant 0 : index
    %223 = vector.load %arg2[%c384_90, %c0_91] : memref<768x8xf32, #tpu.memory_space<vmem>>, vector<32x8xf32>
    %cst_92 = arith.constant dense<0.000000e+00> : vector<16x8xf32>
    %224 = tpu.matmul %219, %223, %cst_92 {dimension_numbers = #tpu.dot_dimension_numbers<[1], [0], [0], [1], [0, 0, 1, 1], [], []>} : vector<16x32xf32>, vector<32x8xf32>, vector<16x8xf32> -> vector<16x8xf32>
    %225 = vector.broadcast %220 : vector<1x8xf32> to vector<16x8xf32>
    %226 = arith.addf %224, %225 : vector<16x8xf32>
    %c512 = arith.constant 512 : index
    %c0_93 = arith.constant 0 : index
    %227 = vector.load %arg2[%c512, %c0_93] : memref<768x8xf32, #tpu.memory_space<vmem>>, vector<32x8xf32>
    %cst_94 = arith.constant dense<0.000000e+00> : vector<16x8xf32>
    %228 = tpu.matmul %219, %227, %cst_94 {dimension_numbers = #tpu.dot_dimension_numbers<[1], [0], [0], [1], [0, 0, 1, 1], [], []>} : vector<16x32xf32>, vector<32x8xf32>, vector<16x8xf32> -> vector<16x8xf32>
    %229 = vector.broadcast %221 : vector<1x8xf32> to vector<16x8xf32>
    %230 = arith.addf %228, %229 : vector<16x8xf32>
    %c640 = arith.constant 640 : index
    %c0_95 = arith.constant 0 : index
    %231 = vector.load %arg2[%c640, %c0_95] : memref<768x8xf32, #tpu.memory_space<vmem>>, vector<32x8xf32>
    %cst_96 = arith.constant dense<0.000000e+00> : vector<16x8xf32>
    %232 = tpu.matmul %219, %231, %cst_96 {dimension_numbers = #tpu.dot_dimension_numbers<[1], [0], [0], [1], [0, 0, 1, 1], [], []>} : vector<16x32xf32>, vector<32x8xf32>, vector<16x8xf32> -> vector<16x8xf32>
    %233 = vector.broadcast %222 : vector<1x8xf32> to vector<16x8xf32>
    %234 = arith.addf %232, %233 : vector<16x8xf32>
    %235 = vector.shape_cast %226 : vector<16x8xf32> to vector<2x8x8xf32>
    %236 = vector.shape_cast %230 : vector<16x8xf32> to vector<2x8x8xf32>
    %237 = vector.shape_cast %234 : vector<16x8xf32> to vector<2x8x8xf32>
    %c388 = arith.constant 388 : index
    %c0_97 = arith.constant 0 : index
    %238 = vector.load %arg1[%c388, %c0_97] : memref<416x64xf32, #tpu.memory_space<vmem>>, vector<1x8xf32>
    %c392 = arith.constant 392 : index
    %c0_98 = arith.constant 0 : index
    %239 = vector.load %arg1[%c392, %c0_98] : memref<416x64xf32, #tpu.memory_space<vmem>>, vector<1x8xf32>
    %c396 = arith.constant 396 : index
    %c0_99 = arith.constant 0 : index
    %240 = vector.load %arg1[%c396, %c0_99] : memref<416x64xf32, #tpu.memory_space<vmem>>, vector<1x8xf32>
    %c416 = arith.constant 416 : index
    %c0_100 = arith.constant 0 : index
    %241 = vector.load %arg2[%c416, %c0_100] : memref<768x8xf32, #tpu.memory_space<vmem>>, vector<32x8xf32>
    %cst_101 = arith.constant dense<0.000000e+00> : vector<16x8xf32>
    %242 = tpu.matmul %219, %241, %cst_101 {dimension_numbers = #tpu.dot_dimension_numbers<[1], [0], [0], [1], [0, 0, 1, 1], [], []>} : vector<16x32xf32>, vector<32x8xf32>, vector<16x8xf32> -> vector<16x8xf32>
    %243 = vector.broadcast %238 : vector<1x8xf32> to vector<16x8xf32>
    %244 = arith.addf %242, %243 : vector<16x8xf32>
    %c544 = arith.constant 544 : index
    %c0_102 = arith.constant 0 : index
    %245 = vector.load %arg2[%c544, %c0_102] : memref<768x8xf32, #tpu.memory_space<vmem>>, vector<32x8xf32>
    %cst_103 = arith.constant dense<0.000000e+00> : vector<16x8xf32>
    %246 = tpu.matmul %219, %245, %cst_103 {dimension_numbers = #tpu.dot_dimension_numbers<[1], [0], [0], [1], [0, 0, 1, 1], [], []>} : vector<16x32xf32>, vector<32x8xf32>, vector<16x8xf32> -> vector<16x8xf32>
    %247 = vector.broadcast %239 : vector<1x8xf32> to vector<16x8xf32>
    %248 = arith.addf %246, %247 : vector<16x8xf32>
    %c672 = arith.constant 672 : index
    %c0_104 = arith.constant 0 : index
    %249 = vector.load %arg2[%c672, %c0_104] : memref<768x8xf32, #tpu.memory_space<vmem>>, vector<32x8xf32>
    %cst_105 = arith.constant dense<0.000000e+00> : vector<16x8xf32>
    %250 = tpu.matmul %219, %249, %cst_105 {dimension_numbers = #tpu.dot_dimension_numbers<[1], [0], [0], [1], [0, 0, 1, 1], [], []>} : vector<16x32xf32>, vector<32x8xf32>, vector<16x8xf32> -> vector<16x8xf32>
    %251 = vector.broadcast %240 : vector<1x8xf32> to vector<16x8xf32>
    %252 = arith.addf %250, %251 : vector<16x8xf32>
    %253 = vector.shape_cast %244 : vector<16x8xf32> to vector<2x8x8xf32>
    %254 = vector.shape_cast %248 : vector<16x8xf32> to vector<2x8x8xf32>
    %255 = vector.shape_cast %252 : vector<16x8xf32> to vector<2x8x8xf32>
    %c389 = arith.constant 389 : index
    %c0_106 = arith.constant 0 : index
    %256 = vector.load %arg1[%c389, %c0_106] : memref<416x64xf32, #tpu.memory_space<vmem>>, vector<1x8xf32>
    %c393 = arith.constant 393 : index
    %c0_107 = arith.constant 0 : index
    %257 = vector.load %arg1[%c393, %c0_107] : memref<416x64xf32, #tpu.memory_space<vmem>>, vector<1x8xf32>
    %c397 = arith.constant 397 : index
    %c0_108 = arith.constant 0 : index
    %258 = vector.load %arg1[%c397, %c0_108] : memref<416x64xf32, #tpu.memory_space<vmem>>, vector<1x8xf32>
    %c448 = arith.constant 448 : index
    %c0_109 = arith.constant 0 : index
    %259 = vector.load %arg2[%c448, %c0_109] : memref<768x8xf32, #tpu.memory_space<vmem>>, vector<32x8xf32>
    %cst_110 = arith.constant dense<0.000000e+00> : vector<16x8xf32>
    %260 = tpu.matmul %219, %259, %cst_110 {dimension_numbers = #tpu.dot_dimension_numbers<[1], [0], [0], [1], [0, 0, 1, 1], [], []>} : vector<16x32xf32>, vector<32x8xf32>, vector<16x8xf32> -> vector<16x8xf32>
    %261 = vector.broadcast %256 : vector<1x8xf32> to vector<16x8xf32>
    %262 = arith.addf %260, %261 : vector<16x8xf32>
    %c576 = arith.constant 576 : index
    %c0_111 = arith.constant 0 : index
    %263 = vector.load %arg2[%c576, %c0_111] : memref<768x8xf32, #tpu.memory_space<vmem>>, vector<32x8xf32>
    %cst_112 = arith.constant dense<0.000000e+00> : vector<16x8xf32>
    %264 = tpu.matmul %219, %263, %cst_112 {dimension_numbers = #tpu.dot_dimension_numbers<[1], [0], [0], [1], [0, 0, 1, 1], [], []>} : vector<16x32xf32>, vector<32x8xf32>, vector<16x8xf32> -> vector<16x8xf32>
    %265 = vector.broadcast %257 : vector<1x8xf32> to vector<16x8xf32>
    %266 = arith.addf %264, %265 : vector<16x8xf32>
    %c704 = arith.constant 704 : index
    %c0_113 = arith.constant 0 : index
    %267 = vector.load %arg2[%c704, %c0_113] : memref<768x8xf32, #tpu.memory_space<vmem>>, vector<32x8xf32>
    %cst_114 = arith.constant dense<0.000000e+00> : vector<16x8xf32>
    %268 = tpu.matmul %219, %267, %cst_114 {dimension_numbers = #tpu.dot_dimension_numbers<[1], [0], [0], [1], [0, 0, 1, 1], [], []>} : vector<16x32xf32>, vector<32x8xf32>, vector<16x8xf32> -> vector<16x8xf32>
    %269 = vector.broadcast %258 : vector<1x8xf32> to vector<16x8xf32>
    %270 = arith.addf %268, %269 : vector<16x8xf32>
    %271 = vector.shape_cast %262 : vector<16x8xf32> to vector<2x8x8xf32>
    %272 = vector.shape_cast %266 : vector<16x8xf32> to vector<2x8x8xf32>
    %273 = vector.shape_cast %270 : vector<16x8xf32> to vector<2x8x8xf32>
    %c390 = arith.constant 390 : index
    %c0_115 = arith.constant 0 : index
    %274 = vector.load %arg1[%c390, %c0_115] : memref<416x64xf32, #tpu.memory_space<vmem>>, vector<1x8xf32>
    %c394 = arith.constant 394 : index
    %c0_116 = arith.constant 0 : index
    %275 = vector.load %arg1[%c394, %c0_116] : memref<416x64xf32, #tpu.memory_space<vmem>>, vector<1x8xf32>
    %c398 = arith.constant 398 : index
    %c0_117 = arith.constant 0 : index
    %276 = vector.load %arg1[%c398, %c0_117] : memref<416x64xf32, #tpu.memory_space<vmem>>, vector<1x8xf32>
    %c480 = arith.constant 480 : index
    %c0_118 = arith.constant 0 : index
    %277 = vector.load %arg2[%c480, %c0_118] : memref<768x8xf32, #tpu.memory_space<vmem>>, vector<32x8xf32>
    %cst_119 = arith.constant dense<0.000000e+00> : vector<16x8xf32>
    %278 = tpu.matmul %219, %277, %cst_119 {dimension_numbers = #tpu.dot_dimension_numbers<[1], [0], [0], [1], [0, 0, 1, 1], [], []>} : vector<16x32xf32>, vector<32x8xf32>, vector<16x8xf32> -> vector<16x8xf32>
    %279 = vector.broadcast %274 : vector<1x8xf32> to vector<16x8xf32>
    %280 = arith.addf %278, %279 : vector<16x8xf32>
    %c608 = arith.constant 608 : index
    %c0_120 = arith.constant 0 : index
    %281 = vector.load %arg2[%c608, %c0_120] : memref<768x8xf32, #tpu.memory_space<vmem>>, vector<32x8xf32>
    %cst_121 = arith.constant dense<0.000000e+00> : vector<16x8xf32>
    %282 = tpu.matmul %219, %281, %cst_121 {dimension_numbers = #tpu.dot_dimension_numbers<[1], [0], [0], [1], [0, 0, 1, 1], [], []>} : vector<16x32xf32>, vector<32x8xf32>, vector<16x8xf32> -> vector<16x8xf32>
    %283 = vector.broadcast %275 : vector<1x8xf32> to vector<16x8xf32>
    %284 = arith.addf %282, %283 : vector<16x8xf32>
    %c736 = arith.constant 736 : index
    %c0_122 = arith.constant 0 : index
    %285 = vector.load %arg2[%c736, %c0_122] : memref<768x8xf32, #tpu.memory_space<vmem>>, vector<32x8xf32>
    %cst_123 = arith.constant dense<0.000000e+00> : vector<16x8xf32>
    %286 = tpu.matmul %219, %285, %cst_123 {dimension_numbers = #tpu.dot_dimension_numbers<[1], [0], [0], [1], [0, 0, 1, 1], [], []>} : vector<16x32xf32>, vector<32x8xf32>, vector<16x8xf32> -> vector<16x8xf32>
    %287 = vector.broadcast %276 : vector<1x8xf32> to vector<16x8xf32>
    %288 = arith.addf %286, %287 : vector<16x8xf32>
    %289 = vector.shape_cast %280 : vector<16x8xf32> to vector<2x8x8xf32>
    %290 = vector.shape_cast %284 : vector<16x8xf32> to vector<2x8x8xf32>
    %291 = vector.shape_cast %288 : vector<16x8xf32> to vector<2x8x8xf32>
    %292 = tpu.concatenate %235, %253, %271, %289 in 0 : vector<2x8x8xf32>, vector<2x8x8xf32>, vector<2x8x8xf32>, vector<2x8x8xf32> -> vector<8x8x8xf32>
    %293 = tpu.concatenate %236, %254, %272, %290 in 0 : vector<2x8x8xf32>, vector<2x8x8xf32>, vector<2x8x8xf32>, vector<2x8x8xf32> -> vector<8x8x8xf32>
    %294 = tpu.concatenate %237, %255, %273, %291 in 0 : vector<2x8x8xf32>, vector<2x8x8xf32>, vector<2x8x8xf32>, vector<2x8x8xf32> -> vector<8x8x8xf32>
    "tpu.trace_start"() <{level = 10 : i32, message = "nqd,nkd->nqk"}> : () -> ()
    %cst_124 = arith.constant dense<0.000000e+00> : vector<8x8x8xf32>
    %295 = tpu.matmul %292, %293, %cst_124 {dimension_numbers = #tpu.dot_dimension_numbers<[2], [2], [1], [1], [0, 0, 0, 1, 1, 1], [0], [0]>} : vector<8x8x8xf32>, vector<8x8x8xf32>, vector<8x8x8xf32> -> vector<8x8x8xf32>
    "tpu.trace_stop"() : () -> ()
    %cst_125 = arith.constant 0.353553385 : f32
    %296 = vector.broadcast %cst_125 : f32 to vector<8x8x8xf32>
    %297 = arith.mulf %295, %296 : vector<8x8x8xf32>
    %cst_126 = arith.constant dense<0xFF800000> : vector<8x8xf32>
    %298 = vector.multi_reduction <maximumf>, %297, %cst_126 [2] : vector<8x8x8xf32> to vector<8x8xf32>
    %299 = vector.shape_cast %298 : vector<8x8xf32> to vector<8x8x1xf32>
    %300 = vector.broadcast %299 : vector<8x8x1xf32> to vector<8x8x8xf32>
    %301 = arith.subf %297, %300 : vector<8x8x8xf32>
    %302 = math.exp %301 : vector<8x8x8xf32>
    %cst_127 = arith.constant dense<0.000000e+00> : vector<8x8xf32>
    %303 = vector.multi_reduction <add>, %302, %cst_127 [2] : vector<8x8x8xf32> to vector<8x8xf32>
    %304 = vector.shape_cast %303 : vector<8x8xf32> to vector<8x8x1xf32>
    %305 = vector.broadcast %304 : vector<8x8x1xf32> to vector<8x8x8xf32>
    %306 = arith.divf %302, %305 : vector<8x8x8xf32>
    "tpu.trace_start"() <{level = 10 : i32, message = "nqk,nkd->nqd"}> : () -> ()
    %cst_128 = arith.constant dense<0.000000e+00> : vector<8x8x8xf32>
    %307 = tpu.matmul %306, %294, %cst_128 {dimension_numbers = #tpu.dot_dimension_numbers<[2], [1], [1], [2], [0, 0, 0, 1, 1, 2], [0], [0]>} : vector<8x8x8xf32>, vector<8x8x8xf32>, vector<8x8x8xf32> -> vector<8x8x8xf32>
    "tpu.trace_stop"() : () -> ()
    %c399 = arith.constant 399 : index
    %c0_129 = arith.constant 0 : index
    %308 = vector.load %arg1[%c399, %c0_129] : memref<416x64xf32, #tpu.memory_space<vmem>>, vector<1x32xf32>
    %309 = vector.extract_strided_slice %307 {offsets = [0, 0, 0], sizes = [2, 8, 8], strides = [1, 1, 1]} : vector<8x8x8xf32> to vector<2x8x8xf32>
    %310 = vector.shape_cast %309 : vector<2x8x8xf32> to vector<16x8xf32>
    %c208 = arith.constant 208 : index
    %c0_130 = arith.constant 0 : index
    %311 = vector.load %arg1[%c208, %c0_130] : memref<416x64xf32, #tpu.memory_space<vmem>>, vector<8x32xf32>
    %cst_131 = arith.constant dense<0.000000e+00> : vector<16x32xf32>
    %312 = tpu.matmul %310, %311, %cst_131 {dimension_numbers = #tpu.dot_dimension_numbers<[1], [0], [0], [1], [0, 0, 1, 1], [], []>} : vector<16x8xf32>, vector<8x32xf32>, vector<16x32xf32> -> vector<16x32xf32>
    %313 = vector.broadcast %308 : vector<1x32xf32> to vector<16x32xf32>
    %314 = arith.addf %313, %312 : vector<16x32xf32>
    %315 = vector.extract_strided_slice %307 {offsets = [2, 0, 0], sizes = [2, 8, 8], strides = [1, 1, 1]} : vector<8x8x8xf32> to vector<2x8x8xf32>
    %316 = vector.shape_cast %315 : vector<2x8x8xf32> to vector<16x8xf32>
    %c216 = arith.constant 216 : index
    %c0_132 = arith.constant 0 : index
    %317 = vector.load %arg1[%c216, %c0_132] : memref<416x64xf32, #tpu.memory_space<vmem>>, vector<8x32xf32>
    %cst_133 = arith.constant dense<0.000000e+00> : vector<16x32xf32>
    %318 = tpu.matmul %316, %317, %cst_133 {dimension_numbers = #tpu.dot_dimension_numbers<[1], [0], [0], [1], [0, 0, 1, 1], [], []>} : vector<16x8xf32>, vector<8x32xf32>, vector<16x32xf32> -> vector<16x32xf32>
    %319 = arith.addf %314, %318 : vector<16x32xf32>
    %320 = vector.extract_strided_slice %307 {offsets = [4, 0, 0], sizes = [2, 8, 8], strides = [1, 1, 1]} : vector<8x8x8xf32> to vector<2x8x8xf32>
    %321 = vector.shape_cast %320 : vector<2x8x8xf32> to vector<16x8xf32>
    %c224_134 = arith.constant 224 : index
    %c0_135 = arith.constant 0 : index
    %322 = vector.load %arg1[%c224_134, %c0_135] : memref<416x64xf32, #tpu.memory_space<vmem>>, vector<8x32xf32>
    %cst_136 = arith.constant dense<0.000000e+00> : vector<16x32xf32>
    %323 = tpu.matmul %321, %322, %cst_136 {dimension_numbers = #tpu.dot_dimension_numbers<[1], [0], [0], [1], [0, 0, 1, 1], [], []>} : vector<16x8xf32>, vector<8x32xf32>, vector<16x32xf32> -> vector<16x32xf32>
    %324 = arith.addf %319, %323 : vector<16x32xf32>
    %325 = vector.extract_strided_slice %307 {offsets = [6, 0, 0], sizes = [2, 8, 8], strides = [1, 1, 1]} : vector<8x8x8xf32> to vector<2x8x8xf32>
    %326 = vector.shape_cast %325 : vector<2x8x8xf32> to vector<16x8xf32>
    %c232 = arith.constant 232 : index
    %c0_137 = arith.constant 0 : index
    %327 = vector.load %arg1[%c232, %c0_137] : memref<416x64xf32, #tpu.memory_space<vmem>>, vector<8x32xf32>
    %cst_138 = arith.constant dense<0.000000e+00> : vector<16x32xf32>
    %328 = tpu.matmul %326, %327, %cst_138 {dimension_numbers = #tpu.dot_dimension_numbers<[1], [0], [0], [1], [0, 0, 1, 1], [], []>} : vector<16x8xf32>, vector<8x32xf32>, vector<16x32xf32> -> vector<16x32xf32>
    %329 = arith.addf %324, %328 : vector<16x32xf32>
    %330 = arith.addf %195, %329 : vector<16x32xf32>
    %c404 = arith.constant 404 : index
    %c0_139 = arith.constant 0 : index
    %331 = vector.load %arg1[%c404, %c0_139] : memref<416x64xf32, #tpu.memory_space<vmem>>, vector<1x32xf32>
    %c405 = arith.constant 405 : index
    %c0_140 = arith.constant 0 : index
    %332 = vector.load %arg1[%c405, %c0_140] : memref<416x64xf32, #tpu.memory_space<vmem>>, vector<1x32xf32>
    %cst_141 = arith.constant dense<0.000000e+00> : vector<16xf32>
    %333 = vector.multi_reduction <add>, %330, %cst_141 [1] : vector<16x32xf32> to vector<16xf32>
    %334 = vector.shape_cast %333 : vector<16xf32> to vector<16x1xf32>
    %cst_142 = arith.constant 3.200000e+01 : f32
    %335 = vector.broadcast %cst_142 : f32 to vector<16x1xf32>
    %336 = arith.divf %334, %335 : vector<16x1xf32>
    %337 = vector.broadcast %336 : vector<16x1xf32> to vector<16x32xf32>
    %338 = arith.subf %330, %337 : vector<16x32xf32>
    %339 = arith.mulf %338, %338 : vector<16x32xf32>
    %cst_143 = arith.constant dense<0.000000e+00> : vector<16xf32>
    %340 = vector.multi_reduction <add>, %339, %cst_143 [1] : vector<16x32xf32> to vector<16xf32>
    %341 = vector.shape_cast %340 : vector<16xf32> to vector<16x1xf32>
    %cst_144 = arith.constant 3.100000e+01 : f32
    %342 = vector.broadcast %cst_144 : f32 to vector<16x1xf32>
    %343 = arith.divf %341, %342 : vector<16x1xf32>
    %344 = vector.broadcast %336 : vector<16x1xf32> to vector<16x32xf32>
    %345 = arith.subf %330, %344 : vector<16x32xf32>
    %346 = vector.broadcast %331 : vector<1x32xf32> to vector<16x32xf32>
    %347 = arith.mulf %346, %345 : vector<16x32xf32>
    %348 = math.sqrt %343 : vector<16x1xf32>
    %cst_145 = arith.constant 9.99999997E-7 : f32
    %349 = vector.broadcast %cst_145 : f32 to vector<16x1xf32>
    %350 = arith.addf %348, %349 : vector<16x1xf32>
    %351 = vector.broadcast %350 : vector<16x1xf32> to vector<16x32xf32>
    %352 = arith.divf %347, %351 : vector<16x32xf32>
    %353 = vector.broadcast %332 : vector<1x32xf32> to vector<16x32xf32>
    %354 = arith.addf %352, %353 : vector<16x32xf32>
    %c240 = arith.constant 240 : index
    %c0_146 = arith.constant 0 : index
    %355 = vector.load %arg1[%c240, %c0_146] : memref<416x64xf32, #tpu.memory_space<vmem>>, vector<32x64xf32>
    %c402 = arith.constant 402 : index
    %c0_147 = arith.constant 0 : index
    %356 = vector.load %arg1[%c402, %c0_147] : memref<416x64xf32, #tpu.memory_space<vmem>>, vector<1x64xf32>
    %cst_148 = arith.constant dense<0.000000e+00> : vector<16x64xf32>
    %357 = tpu.matmul %354, %355, %cst_148 {dimension_numbers = #tpu.dot_dimension_numbers<[1], [0], [0], [1], [0, 0, 1, 1], [], []>} : vector<16x32xf32>, vector<32x64xf32>, vector<16x64xf32> -> vector<16x64xf32>
    %358 = vector.broadcast %356 : vector<1x64xf32> to vector<16x64xf32>
    %359 = arith.addf %357, %358 : vector<16x64xf32>
    %cst_149 = arith.constant 0.000000e+00 : f32
    %360 = vector.broadcast %cst_149 : f32 to vector<16x64xf32>
    %361 = arith.maximumf %359, %360 : vector<16x64xf32>
    %c272 = arith.constant 272 : index
    %c0_150 = arith.constant 0 : index
    %362 = vector.load %arg1[%c272, %c0_150] : memref<416x64xf32, #tpu.memory_space<vmem>>, vector<64x32xf32>
    %c403 = arith.constant 403 : index
    %c0_151 = arith.constant 0 : index
    %363 = vector.load %arg1[%c403, %c0_151] : memref<416x64xf32, #tpu.memory_space<vmem>>, vector<1x32xf32>
    %cst_152 = arith.constant dense<0.000000e+00> : vector<16x32xf32>
    %364 = tpu.matmul %361, %362, %cst_152 {dimension_numbers = #tpu.dot_dimension_numbers<[1], [0], [0], [1], [0, 0, 1, 1], [], []>} : vector<16x64xf32>, vector<64x32xf32>, vector<16x32xf32> -> vector<16x32xf32>
    %365 = arith.addf %330, %364 : vector<16x32xf32>
    %366 = vector.broadcast %363 : vector<1x32xf32> to vector<16x32xf32>
    %367 = arith.addf %365, %366 : vector<16x32xf32>
    %368 = vector.shape_cast %367 : vector<16x32xf32> to vector<2x8x32xf32>
    %369 = vector.extract_strided_slice %368 {offsets = [0, 7, 0], sizes = [2, 1, 32], strides = [1, 1, 1]} : vector<2x8x32xf32> to vector<2x1x32xf32>
    %370 = vector.shape_cast %369 : vector<2x1x32xf32> to vector<2x32xf32>
    %c406 = arith.constant 406 : index
    %c0_153 = arith.constant 0 : index
    %371 = vector.load %arg1[%c406, %c0_153] : memref<416x64xf32, #tpu.memory_space<vmem>>, vector<1x32xf32>
    %c407 = arith.constant 407 : index
    %c0_154 = arith.constant 0 : index
    %372 = vector.load %arg1[%c407, %c0_154] : memref<416x64xf32, #tpu.memory_space<vmem>>, vector<1x32xf32>
    %cst_155 = arith.constant dense<0.000000e+00> : vector<2xf32>
    %373 = vector.multi_reduction <add>, %370, %cst_155 [1] : vector<2x32xf32> to vector<2xf32>
    %374 = vector.shape_cast %373 : vector<2xf32> to vector<2x1xf32>
    %cst_156 = arith.constant 3.200000e+01 : f32
    %375 = vector.broadcast %cst_156 : f32 to vector<2x1xf32>
    %376 = arith.divf %374, %375 : vector<2x1xf32>
    %377 = vector.broadcast %376 : vector<2x1xf32> to vector<2x32xf32>
    %378 = arith.subf %370, %377 : vector<2x32xf32>
    %379 = arith.mulf %378, %378 : vector<2x32xf32>
    %cst_157 = arith.constant dense<0.000000e+00> : vector<2xf32>
    %380 = vector.multi_reduction <add>, %379, %cst_157 [1] : vector<2x32xf32> to vector<2xf32>
    %381 = vector.shape_cast %380 : vector<2xf32> to vector<2x1xf32>
    %cst_158 = arith.constant 3.100000e+01 : f32
    %382 = vector.broadcast %cst_158 : f32 to vector<2x1xf32>
    %383 = arith.divf %381, %382 : vector<2x1xf32>
    %384 = vector.broadcast %376 : vector<2x1xf32> to vector<2x32xf32>
    %385 = arith.subf %370, %384 : vector<2x32xf32>
    %386 = vector.broadcast %371 : vector<1x32xf32> to vector<2x32xf32>
    %387 = arith.mulf %386, %385 : vector<2x32xf32>
    %388 = math.sqrt %383 : vector<2x1xf32>
    %cst_159 = arith.constant 9.99999997E-7 : f32
    %389 = vector.broadcast %cst_159 : f32 to vector<2x1xf32>
    %390 = arith.addf %388, %389 : vector<2x1xf32>
    %391 = vector.broadcast %390 : vector<2x1xf32> to vector<2x32xf32>
    %392 = arith.divf %387, %391 : vector<2x32xf32>
    %393 = vector.broadcast %372 : vector<1x32xf32> to vector<2x32xf32>
    %394 = arith.addf %392, %393 : vector<2x32xf32>
    %c336 = arith.constant 336 : index
    %c0_160 = arith.constant 0 : index
    %395 = vector.load %arg1[%c336, %c0_160] : memref<416x64xf32, #tpu.memory_space<vmem>>, vector<32x4xf32>
    %c408 = arith.constant 408 : index
    %c0_161 = arith.constant 0 : index
    %396 = vector.load %arg1[%c408, %c0_161] : memref<416x64xf32, #tpu.memory_space<vmem>>, vector<1x4xf32>
    %cst_162 = arith.constant dense<0.000000e+00> : vector<2x4xf32>
    %397 = tpu.matmul %394, %395, %cst_162 {dimension_numbers = #tpu.dot_dimension_numbers<[1], [0], [0], [1], [0, 0, 1, 1], [], []>} : vector<2x32xf32>, vector<32x4xf32>, vector<2x4xf32> -> vector<2x4xf32>
    %398 = vector.broadcast %396 : vector<1x4xf32> to vector<2x4xf32>
    %399 = arith.addf %397, %398 : vector<2x4xf32>
    %cst_163 = arith.constant dense<0xFF800000> : vector<2xf32>
    %400 = vector.multi_reduction <maximumf>, %399, %cst_163 [1] : vector<2x4xf32> to vector<2xf32>
    %401 = vector.shape_cast %400 : vector<2xf32> to vector<2x1xf32>
    %402 = vector.broadcast %401 : vector<2x1xf32> to vector<2x4xf32>
    %403 = arith.subf %399, %402 : vector<2x4xf32>
    %404 = math.exp %403 : vector<2x4xf32>
    %cst_164 = arith.constant dense<0.000000e+00> : vector<2xf32>
    %405 = vector.multi_reduction <add>, %404, %cst_164 [1] : vector<2x4xf32> to vector<2xf32>
    %406 = vector.shape_cast %405 : vector<2xf32> to vector<2x1xf32>
    %407 = vector.broadcast %406 : vector<2x1xf32> to vector<2x4xf32>
    %408 = arith.divf %404, %407 : vector<2x4xf32>
    %c0_165 = arith.constant 0 : index
    %c0_166 = arith.constant 0 : index
    %409 = vector.load %arg3[%c0_165, %c0_166] : memref<2x4xf32, #tpu.memory_space<vmem>>, vector<2x4xf32>
    tpu.vector_store %arg3[%c0_165, %c0_166], %408 {strides = array<i32>} : memref<2x4xf32, #tpu.memory_space<vmem>>, vector<2x4xf32>,
    return
  }
}

</mosaic_0001>

<bundles_post_ra>
// kernel: transformer_segment_forward.1
= control target key start
LH: loop header
LB: loop body
LE: loop exit
PB: predicated region body
PF: predicated region fallthrough
CT: control target
= control target key end

     0   :  { %v3245_v2 = vmov 0   ;;  %s4253_s0 = inlined_call_operand.vmem [shape: s32[16,2], index: 0, kind: input, shape index: {}]   ;;  %s4254_s1 = inlined_call_operand.vmem [shape: f32[416,64], index: 1, kind: input, shape index: {}]   ;;  %s4255_s2 = inlined_call_operand.vmem [shape: f32[768,8], index: 2, kind: input, shape index: {}]   ;;  %s4256_s3 = inlined_call_operand.hbm [shape: f32[2,4], index: 3, kind: output, shape index: {}]  }
   0x1   :  { %v15_v0 = vld [vmem:[%s4253_s0] sm:$0xff]  ;;  %v37_v1 = vld [vmem:[%s4254_s1 + $0x30] sm:$0xff]  ;;  %3063 = vset.pattern.permute.xlu0 %v3245_v2  ;;  %v36_v3 = vld [vmem:[%s4254_s1 + $0x28] sm:$0xff] }
   0x2   :  { %74 = vmatpush.msra.mxu0 %v37_v1  ;;  %20 = vperm.xlu0 %3063, %v15_v0   ;;  %v35_v4 = vld [vmem:[%s4254_s1 + $0x20] sm:$0xff]  ;;  %v34_v5 = vld [vmem:[%s4254_s1 + $0x18] sm:$0xff]  ;;  %v33_v6 = vld [vmem:[%s4254_s1 + $0x10] sm:$0xff] }
   0x3   :  { %v16_v7 = vld [vmem:[%s4253_s0 + $0x8] sm:$0xff] }
   0x4   :  { %75 = vmatpush.msra.mxu0 %v36_v3  ;;  %v32_v8 = vld [vmem:[%s4254_s1 + $0x8] sm:$0xff] }
   0x6   :  { %76 = vmatpush.msra.mxu0 %v35_v4 }
   0x8   :  { %77 = vmatpush.msra.mxu0 %v34_v5 }
   0xa   :  { %78 = vmatpush.msra.mxu0 %v33_v6  ;;  %23 = vperm.xlu0 %3063, %v16_v7  }
   0xc   :  { %79 = vmatpush.msra.mxu0 %v32_v8 }
   0xd   :  { %8 = vsyncpa [#allocation3], 0  ;;  %v31_v9 = vld [vmem:[%s4254_s1] sm:$0xff]  ;;  %vm40_vm0 = vcmp.eq.s32.totalorder %v15_v0, 0  ;;  %v3246_v10 = vmov 1   ;;  %vm41_vm1 = vcmp.eq.s32.totalorder %v16_v7, 0  ;;  %v17_v13 = vlaneseq }
   0xe   :  { %80 = vmatpush.msra.mxu0 %v31_v9  ;;  %3064 = vset.pattern.permute.xlu1 %v3246_v10  ;;  %v42_v11 = vsel %vm40_vm0, 1, %v3245_v2  ;;  %v43_v12 = vsel %vm41_vm1, 1, %v3245_v2  ;;  %vm58_vm2 = vcmask 457728   ;;  %v3247_v16 = vmov 0.0   ;;  %v3066_v21 = vld [vmem:[%s4254_s1 + $0x38] ss:$0 sm:$0xff] }
   0xf   :  { %45 = vperm.xlu1 %3064, %v42_v11   ;;  %v18_v14 = vand.u32 127, %v17_v13  ;;  %v3067_v22 = vld [vmem:[%s4254_s1 + $0x39] ss:$0 sm:$0xff]  ;;  %v56_v23 = vld [vmem:[%s4254_s1 + $0x40] sm:$0xff]  ;;  %vm92_vm6 = vcmask 261120   ;;  %v57_v30 = vld [vmem:[%s4254_s1 + $0x48] sm:$0xff] }
  0x10   :  { %v3248_v36 = vmov 32.0   ;;  %v3249_v53 = vmov 31.0   ;;  %v195_v1 = vld [vmem:[%s4255_s2 + $0x18] sm:$0xff]  ;;  %v194_v6 = vld [vmem:[%s4255_s2 + $0x10] sm:$0xff]  ;;  %v193_v11 = vld [vmem:[%s4255_s2 + $0x8] sm:$0xff]  ;;  %s2919_s20 = sshll.u32 %s4256_s3, 4  ;;  %s2920_s20 = int_to_ptr.hbm [resolvable:$true] %s2919_s20 }
  0x11   :  { %3109 = vrcp.f32 %v3248_v36  ;;  %v229_v2 = vld [vmem:[%s4255_s2 + $0x98] sm:$0xff]  ;;  %215 = vmatpush.msra.mxu1 %v195_v1  ;;  %v228_v7 = vld [vmem:[%s4255_s2 + $0x90] sm:$0xff]  ;;  %v255_v13 = vld [vmem:[%s4255_s2 + $0x108] sm:$0xff] }
  0x12   :  { %3065 = vset.pattern.permute.xlu0 %v3246_v10  ;;  %3111 = vrcp.f32 %v3249_v53  ;;  %v257_v3 = vld [vmem:[%s4255_s2 + $0x118] sm:$0xff]  ;;  %243 = vmatpush.msra.mxu2 %v229_v2  ;;  %v256_v8 = vld [vmem:[%s4255_s2 + $0x110] sm:$0xff]  ;;  %v341_v53 = vld [vmem:[%s4255_s2 + $0x120] sm:$0xff] }
  0x13   :  { %v3352_v5 = vld [vmem:[%s4255_s2 + $0x58] sm:$0xff]  ;;  %271 = vmatpush.msra.mxu3 %v257_v3  ;;  %216 = vmatpush.msra.mxu1 %v194_v6  ;;  %v3368_v10 = vld [vmem:[%s4255_s2 + $0x50] sm:$0xff] }
  0x14   :  { %389 = vmatpush.msrb.mxu0 %v3352_v5  ;;  %244 = vmatpush.msra.mxu2 %v228_v7  ;;  %v3068_v1 = vld [vmem:[%s4254_s1 + $0x17d] ss:$0 sm:$0xff] }
  0x15   :  { %272 = vmatpush.msra.mxu3 %v256_v8  ;;  %217 = vmatpush.msra.mxu1 %v193_v11  ;;  %v3069_v8 = vld [vmem:[%s4254_s1 + $0x17e] ss:$0 sm:$0xff] }
  0x16   :  { %390 = vmatpush.msrb.mxu0 %v3368_v10 }
  0x17   :  { %48 = vperm.xlu1 %3064, %v43_v12   ;;  %v3110_v37 = vpop.eup %3109  ;;  %v227_v12 = vld [vmem:[%s4255_s2 + $0x88] sm:$0xff]  ;;  %273 = vmatpush.msra.mxu3 %v255_v13 }
  0x18   :  { %v100_v38 = vmul.f32 32.0, %v3110_v37  ;;  %vm104_vm8 = vweird.f32 %v3110_v37  ;;  %v3112_v54 = vpop.eup %3111  ;;  %245 = vmatpush.msra.mxu2 %v227_v12 }
  0x19   :  { %v119_v55 = vmul.f32 31.0, %v3112_v54  ;;  %vm123_vm9 = vweird.f32 %v3112_v54 }
  0x1a   :  { %v101_v39 = vsub.f32 1.0, %v100_v38  ;;  %v344_v38 = vld [vmem:[%s4255_s2 + $0x138] sm:$0xff] }
  0x1b   :  { %v120_v56 = vsub.f32 1.0, %v119_v55  ;;  %v313_v55 = vld [vmem:[%s4255_s2 + $0xa0] sm:$0xff] }
  0x1c   :  { %v102_v40 = vmul.f32 %v3110_v37, %v101_v39  ;;  %v288_v39 = vld [vmem:[%s4255_s2 + $0x38] sm:$0xff] }
  0x1d   :  { %v121_v57 = vmul.f32 %v3112_v54, %v120_v56 }
  0x1e   :  { %v103_v41 = vadd.f32 %v3110_v37, %v102_v40  ;;  %v316_v40 = vld [vmem:[%s4255_s2 + $0xb8] sm:$0xff] }
  0x1f   :  { %v122_v58 = vadd.f32 %v3112_v54, %v121_v57 }
  0x20   :  { %v3318_v42 = vsel %vm104_vm8, %v3110_v37, %v103_v41  ;;  %v287_v41 = vld [vmem:[%s4255_s2 + $0x30] sm:$0xff] }
  0x21   :  { %v3334_v59 = vsel %vm123_vm9, %v3112_v54, %v122_v58 }
  0x74   :  { %v21_v15 = vpop.permute.xlu0 %20 }
  0x75   :  { %vm25_vm3 = vcmp.eq.s32.totalorder %v18_v14, %v21_v15  ;;  %v3383_v15 = vld [vmem:[%s4255_s2 + $0x48] sm:$0xff] }
  0x76   :  { %v2928_v17 = vsel %vm25_vm3, 1.0, %v3247_v16  ;;  %391 = vmatpush.msrb.mxu0 %v3383_v15 }
  0x77   :  { %2930 = vmatmul.msk.f32.vlgmr.msra.gmra.mxu0 %vm58_vm2, %v2928_v17  ;;  %v226_v17 = vld [vmem:[%s4255_s2 + $0x80] sm:$0xff] }
  0x78   :  { %246 = vmatpush.msra.mxu2 %v226_v17 }
  0x7a   :  { %330 = vmatpush.msrb.mxu2 %v316_v40 }
  0x7c   :  { %v24_v18 = vpop.permute.xlu0 %23 }
  0x7d   :  { %vm26_vm4 = vcmp.eq.s32.totalorder %v18_v14, %v24_v18  ;;  %v254_v18 = vld [vmem:[%s4255_s2 + $0x100] sm:$0xff] }
  0x7e   :  { %v2929_v19 = vsel %vm26_vm4, 1.0, %v3247_v16  ;;  %v192_v16 = vld [vmem:[%s4255_s2] sm:$0xff]  ;;  %274 = vmatpush.msra.mxu3 %v254_v18 }
  0x7f   :  { %2931 = vmatmul.msk.f32.gmra.mxu0 %vm58_vm2, %v2929_v19  ;;  %218 = vmatpush.msra.mxu1 %v192_v16 }
  0x80   :  { %358 = vmatpush.msrb.mxu3 %v344_v38  ;;  %v428_v38 = vld [vmem:[%s4255_s2 + $0x140] sm:$0xff] }
  0x81   :  { %v46_v20 = vpop.permute.xlu1 %45  ;;  %302 = vmatpush.msrb.mxu1 %v288_v39  ;;  %v515_v39 = vld [vmem:[%s4255_s2 + $0x160] sm:$0xff] }
  0x82   :  { %vm50_vm5 = vcmp.eq.s32.totalorder %v46_v20, 1  ;;  %v3398_v20 = vld [vmem:[%s4255_s2 + $0x40] sm:$0xff] }
  0x83   :  { %v54_v24 = vsel %vm50_vm5, %v3066_v21, %v3067_v22  ;;  %392 = vmatpush.msrb.mxu0 %v3398_v20  ;;  %303 = vmatpush.msrb.mxu1 %v287_v41 }
  0x89   :  { %v49_v28 = vpop.permute.xlu1 %48 }
  0x8a   :  { %vm51_vm7 = vcmp.eq.s32.totalorder %v49_v28, 1 }
  0x8b   :  { %v55_v33 = vsel %vm51_vm7, %v3066_v21, %v3067_v22  ;;  %v490_v22 = vld [vmem:[%s4255_s2 + $0xf8] sm:$0xff]  ;;  %vm543_vm7 = vcmask 64512  }
  0x8c   :  { %504 = vmatpush.msra.mxu0 %v490_v22 }
  0xf4   :  { %v82_v25 = vpop.f32.mrf.mxu0 }
  0xf5   :  { %v83_v26 = vadd.f32 %v82_v25, %v56_v23  ;;  %v489_v25 = vld [vmem:[%s4255_s2 + $0xf0] sm:$0xff] }
  0xf6   :  { %505 = vmatpush.msra.mxu0 %v489_v25  ;;  %v402_v25 = vld [vmem:[%s4255_s2 + $0xd0] sm:$0xff] }
  0xf7   :  { %v3307_v27 = vadd.f32 %v83_v26, %v54_v24 }
  0xf9   :  { %v93_v29 = vsel %vm92_vm6, %v3307_v27, 0.0 }
  0xfa   :  { %94 = vadd.xlane.f32.xlu2 %v93_v29 }
  0xfc   :  { %v85_v31 = vpop.f32.mrf.mxu0 }
  0xfd   :  { %v86_v32 = vadd.f32 %v85_v31, %v57_v30  ;;  %v488_v30 = vld [vmem:[%s4255_s2 + $0xe8] sm:$0xff] }
  0xfe   :  { %506 = vmatpush.msra.mxu0 %v488_v30 }
  0xff   :  { %v3314_v34 = vadd.f32 %v86_v32, %v55_v33  ;;  %v487_v33 = vld [vmem:[%s4255_s2 + $0xe0] sm:$0xff] }
 0x100   :  { %507 = vmatpush.msra.mxu0 %v487_v33  ;;  %v430_v33 = vld [vmem:[%s4255_s2 + $0x150] sm:$0xff] }
 0x101   :  { %v96_v35 = vsel %vm92_vm6, %v3314_v34, 0.0 }
 0x102   :  { %97 = vadd.xlane.f32.xlu2 %v96_v35 }
 0x16d   :  { %v95_v43 = vpop.xlane.xlu2 %94 }
 0x16e   :  { %v106_v44 = vmul.f32 %v3318_v42, %v95_v43  ;;  %v315_v43 = vld [vmem:[%s4255_s2 + $0xb0] sm:$0xff] }
 0x16f   :  { %331 = vmatpush.msrb.mxu2 %v315_v43  ;;  %v3072_v43 = vld [vmem:[%s4254_s1 + $0x174] ss:$0 sm:$0xff] }
 0x170   :  { %v3322_v45 = vsub.f32 %v3307_v27, %v106_v44  ;;  %v343_v44 = vld [vmem:[%s4255_s2 + $0x130] sm:$0xff] }
 0x171   :  { %359 = vmatpush.msrb.mxu3 %v343_v44  ;;  %v3070_v44 = vld [vmem:[%s4254_s1 + $0x170] ss:$0 sm:$0xff] }
 0x172   :  { %v110_v46 = vmul.f32 %v3322_v45, %v3322_v45  ;;  %v128_v7 = vmul.f32 %v3068_v1, %v3322_v45  ;;  %v462_v45 = vld [vmem:[%s4255_s2 + $0x78] sm:$0xff] }
 0x174   :  { %v112_v47 = vsel %vm92_vm6, %v110_v46, 0.0 }
 0x175   :  { %113 = vadd.xlane.f32.xlu0 %v112_v47  ;;  %v98_v48 = vpop.xlane.xlu2 %97  ;;  %v286_v47 = vld [vmem:[%s4255_s2 + $0x28] sm:$0xff] }
 0x176   :  { %v107_v49 = vmul.f32 %v3318_v42, %v98_v48  ;;  %v342_v48 = vld [vmem:[%s4255_s2 + $0x128] sm:$0xff]  ;;  %304 = vmatpush.msrb.mxu1 %v286_v47 }
 0x177   :  { %360 = vmatpush.msrb.mxu3 %v342_v48 }
 0x178   :  { %v3329_v50 = vsub.f32 %v3314_v34, %v107_v49  ;;  %v314_v49 = vld [vmem:[%s4255_s2 + $0xa8] sm:$0xff] }
 0x179   :  { %332 = vmatpush.msrb.mxu2 %v314_v49  ;;  %361 = vmatpush.msrb.mxu3 %v341_v53  ;;  %v3074_v49 = vld [vmem:[%s4254_s1 + $0x177] ss:$0 sm:$0xff] }
 0x17a   :  { %v111_v51 = vmul.f32 %v3329_v50, %v3329_v50 }
 0x17b   :  { %333 = vmatpush.msrb.mxu2 %v313_v55 }
 0x17c   :  { %v115_v52 = vsel %vm92_vm6, %v111_v51, 0.0 }
 0x17d   :  { %116 = vadd.xlane.f32.xlu1 %v115_v52  ;;  %v285_v52 = vld [vmem:[%s4255_s2 + $0x20] sm:$0xff] }
 0x17e   :  { %305 = vmatpush.msrb.mxu1 %v285_v52 }
 0x1e8   :  { %v114_v60 = vpop.xlane.xlu0 %113 }
 0x1e9   :  { %v125_v61 = vmul.f32 %v3334_v59, %v114_v60 }
 0x1eb   :  { %3113 = vrsqrt.f32 %v125_v61  ;;  %vm137_vm10 = vcmp.eq.f32.partialorder %v125_v61, inf  ;;  %v140_v29 = vand.u32 2147483648, %v125_v61  ;;  %vm139_vm11 = vcmp.eq.f32.partialorder %v125_v61, 0.0 }
 0x1f0   :  { %v117_v62 = vpop.xlane.xlu1 %116 }
 0x1f1   :  { %v3114_v63 = vpop.eup %3113  ;;  %v3338_v0 = vmul.f32 %v3334_v59, %v117_v62 }
 0x1f2   :  { %v131_v4 = vmul.f32 %v3114_v63, %v125_v61 }
 0x1f3   :  { %3115 = vrsqrt.f32 %v3338_v0  ;;  %vm149_vm12 = vcmp.eq.f32.partialorder %v3338_v0, inf  ;;  %v152_v54 = vand.u32 2147483648, %v3338_v0  ;;  %vm151_vm13 = vcmp.eq.f32.partialorder %v3338_v0, 0.0 }
 0x1f4   :  { %v132_v9 = vmul.f32 %v3114_v63, %v131_v4 }
 0x1f6   :  { %v133_v14 = vmul.f32 0.5, %v132_v9 }
 0x1f8   :  { %v134_v19 = vsub.f32 1.5, %v133_v14 }
 0x1f9   :  { %v3116_v21 = vpop.eup %3115 }
 0x1fa   :  { %v135_v23 = vmul.f32 %v3114_v63, %v134_v19  ;;  %v143_v24 = vmul.f32 %v3116_v21, %v3338_v0 }
 0x1fc   :  { %v136_v26 = vmul.f32 %v135_v23, %v125_v61  ;;  %v144_v28 = vmul.f32 %v3116_v21, %v143_v24  ;;  %v461_v23 = vld [vmem:[%s4255_s2 + $0x70] sm:$0xff] }
 0x1fe   :  { %v138_v31 = vsel %vm137_vm10, %v125_v61, %v136_v26  ;;  %v145_v32 = vmul.f32 0.5, %v144_v28  ;;  %v129_v26 = vmul.f32 %v3068_v1, %v3329_v50  ;;  %v459_v50 = vld [vmem:[%s4255_s2 + $0x60] sm:$0xff] }
 0x1ff   :  { %v141_v35 = vsel %vm139_vm11, %v140_v29, %v138_v31  ;;  %v460_v29 = vld [vmem:[%s4255_s2 + $0x68] sm:$0xff] }
 0x200   :  { %v154_v36 = vadd.f32 1e-06, %v141_v35  ;;  %v146_v37 = vsub.f32 1.5, %v145_v32  ;;  %v517_v35 = vld [vmem:[%s4255_s2 + $0x170] sm:$0xff] }
 0x202   :  { %3117 = vrcp.f32 %v154_v36  ;;  %v147_v46 = vmul.f32 %v3116_v21, %v146_v37  ;;  %v167_v63 = vand.u32 2147483648, %v154_v36  ;;  %v165_v3 = vand.u32 2147483647, %v154_v36  ;;  %v403_v21 = vld [vmem:[%s4255_s2 + $0xd8] sm:$0xff]  ;;  %v516_v37 = vld [vmem:[%s4255_s2 + $0x168] sm:$0xff] }
 0x203   :  { %vm161_vm15 = vweird.f32 %v154_v36 }
 0x204   :  { %v148_v51 = vmul.f32 %v147_v46, %v3338_v0  ;;  %vm166_vm1 = vcmp.eq.f32.partialorder %v165_v3, 8.507059e+37 }
 0x206   :  { %v150_v56 = vsel %vm149_vm12, %v3338_v0, %v148_v51  ;;  %v168_v0 = vor.u32 1.1754944e-38, %v167_v63  ;;  %v3075_v63 = vld [vmem:[%s4254_s1 + $0x171] ss:$0 sm:$0xff] }
 0x207   :  { %v153_v58 = vsel %vm151_vm13, %v152_v54, %v150_v56 }
 0x208   :  { %v3118_v57 = vpop.eup %3117  ;;  %v155_v61 = vadd.f32 1e-06, %v153_v58 }
 0x209   :  { %v157_v60 = vmul.f32 %v3118_v57, %v154_v36  ;;  %vm162_vm14 = vweird.f32 %v3118_v57  ;;  %v429_v36 = vld [vmem:[%s4255_s2 + $0x148] sm:$0xff] }
 0x20a   :  { %3119 = vrcp.f32 %v155_v61  ;;  %vm163_vm0 = vmor %vm161_vm15, %vm162_vm14  ;;  %v182_v17 = vand.u32 2147483648, %v155_v61  ;;  %v180_v19 = vand.u32 2147483647, %v155_v61  ;;  %vm176_vm3 = vweird.f32 %v155_v61 }
 0x20b   :  { %v158_v62 = vsub.f32 1.0, %v157_v60 }
 0x20c   :  { %v183_v24 = vor.u32 1.1754944e-38, %v182_v17  ;;  %vm181_vm5 = vcmp.eq.f32.partialorder %v180_v19, 8.507059e+37 }
 0x20d   :  { %v159_v2 = vmul.f32 %v3118_v57, %v158_v62  ;;  %v3077_v62 = vld [vmem:[%s4254_s1 + $0x179] ss:$0 sm:$0xff] }
 0x20f   :  { %v160_v4 = vadd.f32 %v3118_v57, %v159_v2 }
 0x210   :  { %v3120_v6 = vpop.eup %3119 }
 0x211   :  { %v164_v9 = vsel %vm163_vm0, %v3118_v57, %v160_v4  ;;  %v172_v12 = vmul.f32 %v3120_v6, %v155_v61  ;;  %vm177_vm2 = vweird.f32 %v3120_v6  ;;  %v3076_v61 = vld [vmem:[%s4254_s1 + $0x175] ss:$0 sm:$0xff] }
 0x212   :  { %v169_v11 = vsel %vm166_vm1, %v168_v0, %v164_v9  ;;  %vm178_vm4 = vmor %vm176_vm3, %vm177_vm2  ;;  %v3073_v9 = vld [vmem:[%s4254_s1 + $0x178] ss:$0 sm:$0xff] }
 0x213   :  { %v170_v13 = vmul.f32 %v169_v11, %v128_v7  ;;  %v173_v14 = vsub.f32 1.0, %v172_v12 }
 0x215   :  { %v3462_v16 = vadd.f32 %v3069_v8, %v170_v13  ;;  %v174_v18 = vmul.f32 %v3120_v6, %v173_v14  ;;  %v3071_v14 = vld [vmem:[%s4254_s1 + $0x172] ss:$0 sm:$0xff] }
 0x217   :  { %2932 = vmatmul.msk.f32.vlgmr.msra.gmra.mxu1 %vm92_vm6, %v3462_v16  ;;  %2934 = vmatmul.msk.f32.vlgmr.msra.gmra.mxu2 %vm92_vm6, %v3462_v16  ;;  %v175_v22 = vadd.f32 %v3120_v6, %v174_v18 }
 0x218   :  { %2936 = vmatmul.msk.f32.vlgmr.msra.gmra.mxu3 %vm92_vm6, %v3462_v16  ;;  %2944 = vmatmul.msk.f32.vlgmr.msrb.gmra.mxu0 %vm92_vm6, %v3462_v16 }
 0x219   :  { %476 = vmatpush.msra.mxu3 %v462_v45  ;;  %3053 = vmatpush.msra.mxu2 %v3352_v5  ;;  %v179_v28 = vsel %vm178_vm4, %v3120_v6, %v175_v22  ;;  %v401_v5 = vld [vmem:[%s4255_s2 + $0xc8] sm:$0xff] }
 0x21a   :  { %417 = vmatpush.msra.mxu1 %v403_v21  ;;  %v184_v30 = vsel %vm181_vm5, %v183_v24, %v179_v28 }
 0x21b   :  { %3054 = vmatpush.msra.mxu2 %v3368_v10  ;;  %477 = vmatpush.msra.mxu3 %v461_v23  ;;  %v185_v31 = vmul.f32 %v184_v30, %v129_v26  ;;  %v400_v10 = vld [vmem:[%s4255_s2 + $0xc0] sm:$0xff]  ;;  %v3079_v23 = vld [vmem:[%s4254_s1 + $0x173] ss:$0 sm:$0xff] }
 0x21c   :  { %418 = vmatpush.msra.mxu1 %v402_v25 }
 0x21d   :  { %3055 = vmatpush.msra.mxu2 %v3383_v15  ;;  %478 = vmatpush.msra.mxu3 %v460_v29  ;;  %v188_v32 = vadd.f32 %v3069_v8, %v185_v31  ;;  %v431_v15 = vld [vmem:[%s4255_s2 + $0x158] sm:$0xff]  ;;  %v3078_v8 = vld [vmem:[%s4254_s1 + $0x176] ss:$0 sm:$0xff] }
 0x21e   :  { %419 = vmatpush.msra.mxu1 %v401_v5  ;;  %v3080_v5 = vld [vmem:[%s4254_s1 + $0x17a] ss:$0 sm:$0xff] }
 0x21f   :  { %3056 = vmatpush.msra.mxu2 %v3398_v20  ;;  %479 = vmatpush.msra.mxu3 %v459_v50  ;;  %v518_v20 = vld [vmem:[%s4255_s2 + $0x178] sm:$0xff] }
 0x220   :  { %2933 = vmatmul.msk.f32.gmra.mxu1 %vm92_vm6, %v188_v32  ;;  %2935 = vmatmul.msk.f32.gmra.mxu2 %vm92_vm6, %v188_v32  ;;  %v3081_v50 = vld [vmem:[%s4254_s1 + $0x17b] ss:$0 sm:$0xff] }
 0x221   :  { %2937 = vmatmul.msk.f32.gmra.mxu3 %vm92_vm6, %v188_v32  ;;  %2952 = vmatmul.msk.f32.vlgmr.msra.gmra.mxu0 %vm92_vm6, %v3462_v16 }
 0x222   :  { %420 = vmatpush.msra.mxu1 %v400_v10 }
 0x228   :  { %2938 = vmatmul.msk.f32.vlgmr.msrb.gmra.mxu1 %vm92_vm6, %v3462_v16  ;;  %2940 = vmatmul.msk.f32.vlgmr.msrb.gmra.mxu2 %vm92_vm6, %v3462_v16 }
 0x229   :  { %2942 = vmatmul.msk.f32.vlgmr.msrb.gmra.mxu3 %vm92_vm6, %v3462_v16  ;;  %2953 = vmatmul.msk.f32.gmra.mxu0 %vm92_vm6, %v188_v32 }
 0x22a   :  { %445 = vmatpush.msrb.mxu2 %v431_v15  ;;  %532 = vmatpush.msrb.mxu1 %v518_v20 }
 0x22c   :  { %446 = vmatpush.msrb.mxu2 %v430_v33  ;;  %533 = vmatpush.msrb.mxu1 %v517_v35 }
 0x22e   :  { %447 = vmatpush.msrb.mxu2 %v429_v36  ;;  %534 = vmatpush.msrb.mxu1 %v516_v37 }
 0x230   :  { %2939 = vmatmul.msk.f32.gmra.mxu1 %vm92_vm6, %v188_v32  ;;  %2941 = vmatmul.msk.f32.gmra.mxu2 %vm92_vm6, %v188_v32 }
 0x231   :  { %2943 = vmatmul.msk.f32.gmra.mxu3 %vm92_vm6, %v188_v32  ;;  %448 = vmatpush.msrb.mxu2 %v428_v38 }
 0x232   :  { %535 = vmatpush.msrb.mxu1 %v515_v39 }
 0x238   :  { %2945 = vmatmul.msk.f32.vlgmr.msra.gmra.mxu2 %vm92_vm6, %v188_v32  ;;  %2946 = vmatmul.msk.f32.vlgmr.msra.gmra.mxu1 %vm92_vm6, %v3462_v16 }
 0x239   :  { %2950 = vmatmul.msk.f32.vlgmr.msra.gmra.mxu3 %vm92_vm6, %v3462_v16 }
 0x240   :  { %2947 = vmatmul.msk.f32.gmra.mxu1 %vm92_vm6, %v188_v32  ;;  %2948 = vmatmul.msk.f32.vlgmr.msrb.gmra.mxu2 %vm92_vm6, %v3462_v16 }
 0x241   :  { %2951 = vmatmul.msk.f32.gmra.mxu3 %vm92_vm6, %v188_v32 }
 0x248   :  { %2949 = vmatmul.msk.f32.gmra.mxu2 %vm92_vm6, %v188_v32  ;;  %2954 = vmatmul.msk.f32.vlgmr.msrb.gmra.mxu1 %vm92_vm6, %v3462_v16 }
 0x250   :  { %2955 = vmatmul.msk.f32.gmra.mxu1 %vm92_vm6, %v188_v32 }
 0x294   :  { %v220_v40 = vpop.f32.mrf.mxu1 }
 0x295   :  { %v394_v41 = vpop.f32.mrf.mxu0  ;;  %v221_v52 = vadd.f32 %v3070_v44, %v220_v40 }
 0x296   :  { %v395_v22 = vadd.f32 %v3071_v14, %v394_v41 }
 0x29a   :  { %v248_v46 = vpop.f32.mrf.mxu2 }
 0x29b   :  { %v249_v47 = vadd.f32 %v3072_v43, %v248_v46  ;;  %v276_v48 = vpop.f32.mrf.mxu3 }
 0x29c   :  { %v277_v19 = vadd.f32 %v3073_v9, %v276_v48 }
 0x29d   :  { %v223_v51 = vpop.f32.mrf.mxu1  ;;  %2956 = vmatpush.xpose.msk.msra.mxu2 %vm543_vm7, %v249_v47 }
 0x29e   :  { %v509_v53 = vpop.f32.mrf.mxu0  ;;  %v224_v60 = vadd.f32 %v3070_v44, %v223_v51 }
 0x29f   :  { %v510_v54 = vadd.f32 %v3074_v49, %v509_v53 }
 0x2a0   :  { %2957 = vmatmul.msk.f32.vlgmr.msra.gmra.mxu2 %vm543_vm7, %v221_v52 }
 0x2a1   :  { %2968 = vmatpush.xpose.msk.msra.mxu1 %vm543_vm7, %v510_v54 }
 0x2a3   :  { %v251_v55 = vpop.f32.mrf.mxu2 }
 0x2a4   :  { %v252_v56 = vadd.f32 %v3072_v43, %v251_v55  ;;  %v279_v57 = vpop.f32.mrf.mxu3 }
 0x2a5   :  { %v307_v58 = vpop.f32.mrf.mxu1  ;;  %v280_v30 = vadd.f32 %v3073_v9, %v279_v57 }
 0x2a6   :  { %2958 = vmatpush.xpose.msk.msrb.mxu3 %vm543_vm7, %v252_v56  ;;  %v308_v6 = vadd.f32 %v3075_v63, %v307_v58  ;;  %v512_v7 = vpop.f32.mrf.mxu0 }
 0x2a7   :  { %v513_v16 = vadd.f32 %v3074_v49, %v512_v7 }
 0x2a9   :  { %2959 = vmatmul.msk.f32.vlgmr.msrb.gmra.mxu3 %vm543_vm7, %v224_v60 }
 0x2ab   :  { %v335_v1 = vpop.f32.mrf.mxu2 }
 0x2ac   :  { %v336_v2 = vadd.f32 %v3076_v61, %v335_v1  ;;  %v363_v3 = vpop.f32.mrf.mxu3 }
 0x2ad   :  { %v364_v4 = vadd.f32 %v3077_v62, %v363_v3  ;;  %v310_v0 = vpop.f32.mrf.mxu1 }
 0x2ae   :  { %2960 = vmatpush.xpose.msk.msrb.mxu0 %vm543_vm7, %v336_v2  ;;  %v311_v45 = vadd.f32 %v3075_v63, %v310_v0 }
 0x2af   :  { %1016 = vmatpush.msrb.mxu1 %v364_v4 }
 0x2b1   :  { %2961 = vmatmul.msk.f32.vlgmr.msrb.gmra.mxu0 %vm543_vm7, %v308_v6 }
 0x2b3   :  { %v338_v11 = vpop.f32.mrf.mxu2 }
 0x2b4   :  { %v339_v12 = vadd.f32 %v3076_v61, %v338_v11  ;;  %v366_v13 = vpop.f32.mrf.mxu3 }
 0x2b5   :  { %v422_v17 = vpop.f32.mrf.mxu1  ;;  %v367_v21 = vadd.f32 %v3077_v62, %v366_v13 }
 0x2b6   :  { %v423_v18 = vadd.f32 %v3078_v8, %v422_v17  ;;  %2962 = vmatpush.xpose.msk.msrb.mxu2 %vm543_vm7, %v339_v12 }
 0x2b8   :  { %2964 = vmatpush.xpose.msk.msra.mxu3 %vm543_vm7, %v423_v18 }
 0x2b9   :  { %2963 = vmatmul.msk.f32.vlgmr.msrb.gmra.mxu2 %vm543_vm7, %v311_v45 }
 0x2ba   :  { %2970 = vmatpush.xpose.msk.msra.mxu2 %vm543_vm7, %v513_v16 }
 0x2bb   :  { %v397_v24 = vpop.f32.mrf.mxu2  ;;  %2965 = vmatmul.msk.f32.vlgmr.msra.gmra.mxu3 %vm543_vm7, %v395_v22 }
 0x2bc   :  { %970 = vmatpush.msrb.mxu3 %v277_v19  ;;  %v481_v25 = vpop.f32.mrf.mxu3  ;;  %v398_v31 = vadd.f32 %v3071_v14, %v397_v24 }
 0x2bd   :  { %v482_v26 = vadd.f32 %v3079_v23, %v481_v25  ;;  %v425_v28 = vpop.f32.mrf.mxu1 }
 0x2be   :  { %1039 = vmatpush.msrb.mxu2 %v367_v21  ;;  %v426_v29 = vadd.f32 %v3078_v8, %v425_v28 }
 0x2bf   :  { %2969 = vmatmul.msk.f32.vlgmr.msra.gmra.mxu1 %vm543_vm7, %v482_v26 }
 0x2c0   :  { %2966 = vmatpush.xpose.msk.msra.mxu0 %vm543_vm7, %v426_v29 }
 0x2c3   :  { %v450_v32 = vpop.f32.mrf.mxu2  ;;  %2967 = vmatmul.msk.f32.vlgmr.msra.gmra.mxu0 %vm543_vm7, %v398_v31 }
 0x2c4   :  { %993 = vmatpush.msrb.mxu0 %v280_v30  ;;  %v451_v10 = vadd.f32 %v3080_v5, %v450_v32  ;;  %v484_v15 = vpop.f32.mrf.mxu3 }
 0x2c5   :  { %v485_v20 = vadd.f32 %v3079_v23, %v484_v15  ;;  %v537_v33 = vpop.f32.mrf.mxu1 }
 0x2c6   :  { %v538_v35 = vadd.f32 %v3081_v50, %v537_v33  ;;  %1062 = vmatpush.msra.mxu3 %v451_v10 }
 0x2c7   :  { %2971 = vmatmul.msk.f32.vlgmr.msra.gmra.mxu2 %vm543_vm7, %v485_v20 }
 0x2c8   :  { %1108 = vmatpush.msra.mxu1 %v538_v35 }
 0x2cb   :  { %v453_v36 = vpop.f32.mrf.mxu2 }
 0x2cc   :  { %v454_v37 = vadd.f32 %v3080_v5, %v453_v36 }
 0x2cd   :  { %v540_v38 = vpop.f32.mrf.mxu1 }
 0x2ce   :  { %v541_v39 = vadd.f32 %v3081_v50, %v540_v38  ;;  %1085 = vmatpush.msra.mxu0 %v454_v37 }
 0x2d0   :  { %1131 = vmatpush.msra.mxu2 %v541_v39 }
 0x323   :  { %v567_v40 = vpop.f32.mrf.mxu2 }
 0x324   :  { %v752_v41 = vmul.f32 0.35355338, %v567_v40 }
 0x326   :  { %v760_v43 = vsel %vm543_vm7, %v752_v41, -inf }
 0x327   :  { %761 = vmax.xlane.f32.xlu2 %v760_v43 }
 0x32c   :  { %v593_v51 = vpop.f32.mrf.mxu3 }
 0x32d   :  { %v753_v3 = vmul.f32 0.35355338, %v593_v51 }
 0x32e   :  { %v619_v44 = vpop.f32.mrf.mxu0 }
 0x32f   :  { %v754_v46 = vmul.f32 0.35355338, %v619_v44  ;;  %v763_v4 = vsel %vm543_vm7, %v753_v3, -inf }
 0x331   :  { %v766_v47 = vsel %vm543_vm7, %v754_v46, -inf }
 0x332   :  { %767 = vmax.xlane.f32.xlu2 %v766_v47 }
 0x33c   :  { %v723_v48 = vpop.f32.mrf.mxu1  ;;  %v645_v53 = vpop.f32.mrf.mxu2 }
 0x33d   :  { %v758_v49 = vmul.f32 0.35355338, %v723_v48  ;;  %v755_v56 = vmul.f32 0.35355338, %v645_v53 }
 0x33e   :  { %v671_v60 = vpop.f32.mrf.mxu3 }
 0x33f   :  { %v778_v52 = vsel %vm543_vm7, %v758_v49, -inf  ;;  %v769_v58 = vsel %vm543_vm7, %v755_v56, -inf  ;;  %v756_v62 = vmul.f32 0.35355338, %v671_v60 }
 0x340   :  { %779 = vmax.xlane.f32.xlu2 %v778_v52  ;;  %v697_v54 = vpop.f32.mrf.mxu0 }
 0x341   :  { %v757_v55 = vmul.f32 0.35355338, %v697_v54  ;;  %v772_v2 = vsel %vm543_vm7, %v756_v62, -inf }
 0x343   :  { %v775_v57 = vsel %vm543_vm7, %v757_v55, -inf }
 0x344   :  { %776 = vmax.xlane.f32.xlu1 %v775_v57 }
 0x348   :  { %770 = vmax.xlane.f32.xlu2 %v769_v58 }
 0x34a   :  { %v749_v61 = vpop.f32.mrf.mxu2 }
 0x34b   :  { %v759_v63 = vmul.f32 0.35355338, %v749_v61 }
 0x34d   :  { %v781_v1 = vsel %vm543_vm7, %v759_v63, -inf }
 0x34e   :  { %782 = vmax.xlane.f32.xlu0 %v781_v1 }
 0x350   :  { %773 = vmax.xlane.f32.xlu2 %v772_v2 }
 0x358   :  { %764 = vmax.xlane.f32.xlu2 %v763_v4 }
 0x39a   :  { %v762_v0 = vpop.xlane.xlu2 %761 }
 0x39b   :  { %v784_v6 = vsub.f32 %v752_v41, %v762_v0 }
 0x39d   :  { %v792_v7 = vmul.f32 1.442695, %v784_v6 }
 0x39f   :  { %3121 = vpow2.f32 %v792_v7 }
 0x3a5   :  { %v3613_v8 = vpop.eup %3121  ;;  %v768_v9 = vpop.xlane.xlu2 %767 }
 0x3a6   :  { %v786_v11 = vsub.f32 %v754_v46, %v768_v9  ;;  %v808_v12 = vsel %vm543_vm7, %v3613_v8, 0.0 }
 0x3a7   :  { %809 = vadd.xlane.f32.xlu2 %v808_v12 }
 0x3a8   :  { %v796_v13 = vmul.f32 1.442695, %v786_v11 }
 0x3aa   :  { %3123 = vpow2.f32 %v796_v13 }
 0x3b0   :  { %v3617_v14 = vpop.eup %3123 }
 0x3b1   :  { %v814_v16 = vsel %vm543_vm7, %v3617_v14, 0.0 }
 0x3b2   :  { %815 = vadd.xlane.f32.xlu0 %v814_v16 }
 0x3b3   :  { %v780_v17 = vpop.xlane.xlu2 %779 }
 0x3b4   :  { %v790_v18 = vsub.f32 %v758_v49, %v780_v17 }
 0x3b6   :  { %v804_v19 = vmul.f32 1.442695, %v790_v18 }
 0x3b7   :  { %v777_v45 = vpop.xlane.xlu1 %776 }
 0x3b8   :  { %3125 = vpow2.f32 %v804_v19  ;;  %v789_v21 = vsub.f32 %v757_v55, %v777_v45 }
 0x3ba   :  { %v802_v22 = vmul.f32 1.442695, %v789_v21 }
 0x3bb   :  { %v771_v23 = vpop.xlane.xlu2 %770 }
 0x3bc   :  { %v787_v24 = vsub.f32 %v755_v56, %v771_v23  ;;  %3127 = vpow2.f32 %v802_v22 }
 0x3be   :  { %v3621_v25 = vpop.eup %3125  ;;  %v798_v26 = vmul.f32 1.442695, %v787_v24 }
 0x3bf   :  { %v826_v28 = vsel %vm543_vm7, %v3621_v25, 0.0 }
 0x3c0   :  { %3129 = vpow2.f32 %v798_v26  ;;  %827 = vadd.xlane.f32.xlu0 %v826_v28 }
 0x3c1   :  { %v783_v29 = vpop.xlane.xlu0 %782 }
 0x3c2   :  { %v3625_v5 = vpop.eup %3127  ;;  %v791_v32 = vsub.f32 %v759_v63, %v783_v29 }
 0x3c3   :  { %v774_v30 = vpop.xlane.xlu2 %773  ;;  %v823_v20 = vsel %vm543_vm7, %v3625_v5, 0.0 }
 0x3c4   :  { %v788_v31 = vsub.f32 %v756_v62, %v774_v30  ;;  %v806_v33 = vmul.f32 1.442695, %v791_v32 }
 0x3c6   :  { %v3627_v50 = vpop.eup %3129  ;;  %v800_v10 = vmul.f32 1.442695, %v788_v31 }
 0x3c7   :  { %v817_v15 = vsel %vm543_vm7, %v3627_v50, 0.0 }
 0x3c8   :  { %3131 = vpow2.f32 %v800_v10  ;;  %818 = vadd.xlane.f32.xlu1 %v817_v15  ;;  %824 = vadd.xlane.f32.xlu0 %v823_v20 }
 0x3c9   :  { %3133 = vpow2.f32 %v806_v33 }
 0x3cb   :  { %v765_v35 = vpop.xlane.xlu2 %764 }
 0x3cc   :  { %v785_v36 = vsub.f32 %v753_v3, %v765_v35 }
 0x3ce   :  { %v3633_v37 = vpop.eup %3131  ;;  %v794_v38 = vmul.f32 1.442695, %v785_v36 }
 0x3cf   :  { %v820_v39 = vsel %vm543_vm7, %v3633_v37, 0.0  ;;  %v3637_v40 = vpop.eup %3133 }
 0x3d0   :  { %3135 = vpow2.f32 %v794_v38  ;;  %821 = vadd.xlane.f32.xlu2 %v820_v39  ;;  %v829_v43 = vsel %vm543_vm7, %v3637_v40, 0.0 }
 0x3d6   :  { %v3639_v41 = vpop.eup %3135 }
 0x3d7   :  { %v811_v44 = vsel %vm543_vm7, %v3639_v41, 0.0 }
 0x3d8   :  { %830 = vadd.xlane.f32.xlu2 %v829_v43  ;;  %812 = vadd.xlane.f32.xlu1 %v811_v44 }
 0x41a   :  { %v810_v46 = vpop.xlane.xlu2 %809 }
 0x41b   :  { %3137 = vrcp.f32 %v810_v46  ;;  %v843_v51 = vand.u32 2147483648, %v810_v46  ;;  %v841_v54 = vand.u32 2147483647, %v810_v46  ;;  %vm837_vm9 = vweird.f32 %v810_v46 }
 0x41d   :  { %v844_v56 = vor.u32 1.1754944e-38, %v843_v51  ;;  %vm842_vm11 = vcmp.eq.f32.partialorder %v841_v54, 8.507059e+37 }
 0x421   :  { %v3138_v47 = vpop.eup %3137 }
 0x422   :  { %v833_v48 = vmul.f32 %v3138_v47, %v810_v46  ;;  %vm838_vm8 = vweird.f32 %v3138_v47 }
 0x423   :  { %vm839_vm10 = vmor %vm837_vm9, %vm838_vm8 }
 0x424   :  { %v834_v49 = vsub.f32 1.0, %v833_v48 }
 0x425   :  { %v816_v52 = vpop.xlane.xlu0 %815 }
 0x426   :  { %v835_v53 = vmul.f32 %v3138_v47, %v834_v49  ;;  %3139 = vrcp.f32 %v816_v52  ;;  %v873_v1 = vand.u32 2147483648, %v816_v52  ;;  %v871_v3 = vand.u32 2147483647, %v816_v52 }
 0x427   :  { %vm867_vm13 = vweird.f32 %v816_v52 }
 0x428   :  { %v836_v55 = vadd.f32 %v3138_v47, %v835_v53  ;;  %v874_v6 = vor.u32 1.1754944e-38, %v873_v1  ;;  %vm872_vm15 = vcmp.eq.f32.partialorder %v871_v3, 8.507059e+37 }
 0x42a   :  { %v840_v57 = vsel %vm839_vm10, %v3138_v47, %v836_v55 }
 0x42b   :  { %v845_v58 = vsel %vm842_vm11, %v844_v56, %v840_v57 }
 0x42c   :  { %v3140_v60 = vpop.eup %3139  ;;  %v846_v61 = vmul.f32 %v3613_v8, %v845_v58 }
 0x42d   :  { %v863_v62 = vmul.f32 %v3140_v60, %v816_v52  ;;  %vm868_vm12 = vweird.f32 %v3140_v60 }
 0x42e   :  { %2972 = vmatmul.msk.f32.vlgmr.msrb.gmra.mxu3 %vm543_vm7, %v846_v61  ;;  %vm869_vm14 = vmor %vm867_vm13, %vm868_vm12 }
 0x42f   :  { %v864_v63 = vsub.f32 1.0, %v863_v62 }
 0x431   :  { %v865_v2 = vmul.f32 %v3140_v60, %v864_v63 }
 0x433   :  { %v866_v4 = vadd.f32 %v3140_v60, %v865_v2  ;;  %v828_v0 = vpop.xlane.xlu0 %827 }
 0x434   :  { %3141 = vrcp.f32 %v828_v0  ;;  %v933_v17 = vand.u32 2147483648, %v828_v0  ;;  %v931_v19 = vand.u32 2147483647, %v828_v0  ;;  %vm927_vm1 = vweird.f32 %v828_v0 }
 0x435   :  { %v870_v7 = vsel %vm869_vm14, %v3140_v60, %v866_v4 }
 0x436   :  { %v875_v9 = vsel %vm872_vm15, %v874_v6, %v870_v7  ;;  %v934_v21 = vor.u32 1.1754944e-38, %v933_v17  ;;  %vm932_vm3 = vcmp.eq.f32.partialorder %v931_v19, 8.507059e+37 }
 0x437   :  { %v876_v11 = vmul.f32 %v3617_v14, %v875_v9 }
 0x439   :  { %2974 = vmatmul.msk.f32.vlgmr.msrb.gmra.mxu1 %vm543_vm7, %v876_v11 }
 0x43a   :  { %v3142_v8 = vpop.eup %3141 }
 0x43b   :  { %v923_v12 = vmul.f32 %v3142_v8, %v828_v0  ;;  %v819_v13 = vpop.xlane.xlu1 %818  ;;  %vm928_vm0 = vweird.f32 %v3142_v8  ;;  %v3649_v22 = vpop.xlane.xlu0 %824 }
 0x43c   :  { %3143 = vrcp.f32 %v819_v13  ;;  %vm929_vm2 = vmor %vm927_vm1, %vm928_vm0  ;;  %v888_v31 = vand.u32 2147483648, %v819_v13  ;;  %v886_v10 = vand.u32 2147483647, %v819_v13  ;;  %vm882_vm5 = vweird.f32 %v819_v13 }
 0x43d   :  { %v924_v16 = vsub.f32 1.0, %v923_v12 }
 0x43e   :  { %v889_v35 = vor.u32 1.1754944e-38, %v888_v31  ;;  %vm887_vm9 = vcmp.eq.f32.partialorder %v886_v10, 8.507059e+37 }
 0x43f   :  { %v925_v18 = vmul.f32 %v3142_v8, %v924_v16 }
 0x441   :  { %v926_v45 = vadd.f32 %v3142_v8, %v925_v18  ;;  %v916_v18 = vand.u32 2147483647, %v3649_v22 }
 0x442   :  { %v3144_v23 = vpop.eup %3143 }
 0x443   :  { %v930_v24 = vsel %vm929_vm2, %v3142_v8, %v926_v45  ;;  %v822_v14 = vpop.xlane.xlu2 %821  ;;  %v878_v28 = vmul.f32 %v3144_v23, %v819_v13  ;;  %vm883_vm4 = vweird.f32 %v3144_v23  ;;  %v918_v13 = vand.u32 2147483648, %v3649_v22 }
 0x444   :  { %v935_v26 = vsel %vm932_vm3, %v934_v21, %v930_v24  ;;  %3145 = vrcp.f32 %v822_v14  ;;  %vm884_vm8 = vmor %vm882_vm5, %vm883_vm4  ;;  %v903_v47 = vand.u32 2147483648, %v822_v14  ;;  %v901_v49 = vand.u32 2147483647, %v822_v14 }
 0x445   :  { %3147 = vrcp.f32 %v3649_v22  ;;  %v879_v29 = vsub.f32 1.0, %v878_v28  ;;  %v936_v30 = vmul.f32 %v3621_v25, %v935_v26  ;;  %vm897_vm11 = vweird.f32 %v822_v14  ;;  %v1170_v28 = vld [vmem:[%s4254_s1 + $0x58] sm:$0xff] }
 0x446   :  { %v904_v55 = vor.u32 1.1754944e-38, %v903_v47  ;;  %vm902_vm13 = vcmp.eq.f32.partialorder %v901_v49, 8.507059e+37  ;;  %vm912_vm5 = vweird.f32 %v3649_v22 }
 0x447   :  { %v880_v32 = vmul.f32 %v3144_v23, %v879_v29  ;;  %2978 = vmatmul.msk.f32.vlgmr.msra.gmra.mxu1 %vm543_vm7, %v936_v30  ;;  %v1202_v30 = vld [vmem:[%s4254_s1 + $0x60] sm:$0xff] }
 0x448   :  { %1224 = vmatpush.msrb.mxu1 %v1202_v30  ;;  %v1395_v30 = vld [vmem:[%s4254_s1 + $0xc0] sm:$0xff] }
 0x449   :  { %v881_v20 = vadd.f32 %v3144_v23, %v880_v32 }
 0x44a   :  { %v3146_v15 = vpop.eup %3145 }
 0x44b   :  { %v3654_v33 = vpop.eup %3147  ;;  %v893_v36 = vmul.f32 %v3146_v15, %v822_v14  ;;  %v813_v38 = vpop.xlane.xlu1 %812  ;;  %v885_v43 = vsel %vm884_vm8, %v3144_v23, %v881_v20  ;;  %vm898_vm10 = vweird.f32 %v3146_v15  ;;  %v919_v14 = vor.u32 1.1754944e-38, %v918_v13 }
 0x44c   :  { %v831_v39 = vpop.xlane.xlu2 %830  ;;  %3149 = vrcp.f32 %v813_v38  ;;  %v890_v25 = vsel %vm887_vm9, %v889_v35, %v885_v43  ;;  %v908_v46 = vmul.f32 %v3654_v33, %v3649_v22  ;;  %vm899_vm12 = vmor %vm897_vm11, %vm898_vm10  ;;  %v856_v3 = vand.u32 2147483647, %v813_v38  ;;  %v3082_v35 = vld [vmem:[%s4254_s1 + $0x17c] ss:$0 sm:$0xff] }
 0x44d   :  { %v894_v44 = vsub.f32 1.0, %v893_v36  ;;  %3151 = vrcp.f32 %v831_v39  ;;  %v891_v51 = vmul.f32 %v3627_v50, %v890_v25  ;;  %v858_v50 = vand.u32 2147483648, %v813_v38 }
 0x44e   :  { %v909_v54 = vsub.f32 1.0, %v908_v46  ;;  %vm852_vm15 = vweird.f32 %v813_v38  ;;  %v948_v0 = vand.u32 2147483648, %v831_v39  ;;  %v946_v9 = vand.u32 2147483647, %v831_v39 }
 0x44f   :  { %v895_v48 = vmul.f32 %v3146_v15, %v894_v44  ;;  %2975 = vmatmul.msk.f32.vlgmr.msrb.gmra.mxu2 %vm543_vm7, %v891_v51  ;;  %vm913_vm1 = vweird.f32 %v3654_v33  ;;  %vm857_vm3 = vcmp.eq.f32.partialorder %v856_v3, 8.507059e+37  ;;  %vm942_vm4 = vweird.f32 %v831_v39 }
 0x450   :  { %v910_v1 = vmul.f32 %v3654_v33, %v909_v54  ;;  %v949_v17 = vor.u32 1.1754944e-38, %v948_v0  ;;  %vm947_vm9 = vcmp.eq.f32.partialorder %v946_v9, 8.507059e+37  ;;  %vm914_vm10 = vmor %vm912_vm5, %vm913_vm1  ;;  %vm917_vm11 = vcmp.eq.f32.partialorder %v916_v18, 8.507059e+37  ;;  %v1355_v9 = vld [vmem:[%s4254_s1 + $0x88] sm:$0xff] }
 0x451   :  { %v896_v52 = vadd.f32 %v3146_v15, %v895_v48 }
 0x452   :  { %v3150_v53 = vpop.eup %3149  ;;  %v911_v11 = vadd.f32 %v3654_v33, %v910_v1 }
 0x453   :  { %v900_v56 = vsel %vm899_vm12, %v3146_v15, %v896_v52  ;;  %v848_v57 = vmul.f32 %v3150_v53, %v813_v38  ;;  %v3152_v58 = vpop.eup %3151  ;;  %vm853_vm14 = vweird.f32 %v3150_v53 }
 0x454   :  { %v905_v60 = vsel %vm902_vm13, %v904_v55, %v900_v56  ;;  %v938_v62 = vmul.f32 %v3152_v58, %v831_v39  ;;  %vm943_vm0 = vweird.f32 %v3152_v58  ;;  %vm854_vm2 = vmor %vm852_vm15, %vm853_vm14  ;;  %v915_v23 = vsel %vm914_vm10, %v3654_v33, %v911_v11  ;;  %v1354_v11 = vld [vmem:[%s4254_s1 + $0x80] sm:$0xff] }
 0x455   :  { %v849_v61 = vsub.f32 1.0, %v848_v57  ;;  %v906_v63 = vmul.f32 %v3633_v37, %v905_v60  ;;  %v859_v37 = vor.u32 1.1754944e-38, %v858_v50  ;;  %vm944_vm8 = vmor %vm942_vm4, %vm943_vm0  ;;  %v920_v26 = vsel %vm917_vm11, %v919_v14, %v915_v23 }
 0x456   :  { %v939_v4 = vsub.f32 1.0, %v938_v62  ;;  %v921_v22 = vmul.f32 %v3625_v5, %v920_v26  ;;  %vm1398_vm10 = vcmask 523264  }
 0x457   :  { %v850_v2 = vmul.f32 %v3150_v53, %v849_v61  ;;  %2976 = vmatmul.msk.f32.vlgmr.msra.gmra.mxu3 %vm543_vm7, %v906_v63 }
 0x458   :  { %v940_v7 = vmul.f32 %v3152_v58, %v939_v4 }
 0x459   :  { %v851_v6 = vadd.f32 %v3150_v53, %v850_v2 }
 0x45a   :  { %v941_v12 = vadd.f32 %v3152_v58, %v940_v7 }
 0x45b   :  { %v855_v8 = vsel %vm854_vm2, %v3150_v53, %v851_v6 }
 0x45c   :  { %v860_v16 = vsel %vm857_vm3, %v859_v37, %v855_v8  ;;  %v945_v19 = vsel %vm944_vm8, %v3152_v58, %v941_v12  ;;  %v1353_v37 = vld [vmem:[%s4254_s1 + $0x78] sm:$0xff]  ;;  %v1352_v8 = vld [vmem:[%s4254_s1 + $0x70] sm:$0xff] }
 0x45d   :  { %v861_v45 = vmul.f32 %v3639_v41, %v860_v16  ;;  %v950_v21 = vsel %vm947_vm9, %v949_v17, %v945_v19  ;;  %v1137_v41 = vld [vmem:[%s4254_s1 + $0x50] sm:$0xff] }
 0x45e   :  { %v951_v24 = vmul.f32 %v3637_v40, %v950_v21  ;;  %1159 = vmatpush.msrb.mxu3 %v1137_v41  ;;  %v1234_v40 = vld [vmem:[%s4254_s1 + $0x68] sm:$0xff] }
 0x45f   :  { %2973 = vmatmul.msk.f32.vlgmr.msrb.gmra.mxu0 %vm543_vm7, %v861_v45  ;;  %1256 = vmatpush.msrb.mxu2 %v1234_v40 }
 0x460   :  { %2979 = vmatmul.msk.f32.vlgmr.msra.gmra.mxu2 %vm543_vm7, %v951_v24  ;;  %1192 = vmatpush.msrb.mxu0 %v1170_v28 }
 0x461   :  { %1376 = vmatpush.msra.mxu3 %v1355_v9 }
 0x463   :  { %1377 = vmatpush.msra.mxu3 %v1354_v11 }
 0x465   :  { %1378 = vmatpush.msra.mxu3 %v1353_v37  ;;  %v1391_v37 = vld [vmem:[%s4254_s1 + $0xa0] sm:$0xff] }
 0x467   :  { %2977 = vmatmul.msk.f32.vlgmr.msra.gmra.mxu0 %vm543_vm7, %v921_v22  ;;  %1379 = vmatpush.msra.mxu3 %v1352_v8  ;;  %v1390_v8 = vld [vmem:[%s4254_s1 + $0x98] sm:$0xff] }
 0x4b1   :  { %v972_v29 = vpop.f32.mrf.mxu3 }
 0x4b2   :  { %2980 = vmatmul.msk.f32.vlgmr.msrb.gmra.mxu3 %vm543_vm7, %v972_v29 }
 0x4b6   :  { %v1018_v5 = vpop.f32.mrf.mxu1 }
 0x4b7   :  { %2982 = vmatmul.msk.f32.vlgmr.msrb.gmra.mxu0 %vm543_vm7, %v1018_v5  ;;  %v1396_v5 = vld [vmem:[%s4254_s1 + $0xc8] sm:$0xff] }
 0x4b8   :  { %1413 = vmatpush.msra.mxu0 %v1396_v5 }
 0x4ba   :  { %1414 = vmatpush.msra.mxu0 %v1395_v30 }
 0x4c4   :  { %v1110_v31 = vpop.f32.mrf.mxu1 }
 0x4c5   :  { %2986 = vmatmul.msk.f32.vlgmr.msrb.gmra.mxu2 %vm543_vm7, %v1110_v31 }
 0x4d2   :  { %v1041_v32 = vpop.f32.mrf.mxu2 }
 0x4d3   :  { %2983 = vmatmul.msk.f32.gmra.mxu0 %vm543_vm7, %v1041_v32  ;;  %v1394_v32 = vld [vmem:[%s4254_s1 + $0xb8] sm:$0xff] }
 0x4d4   :  { %1415 = vmatpush.msra.mxu0 %v1394_v32 }
 0x4da   :  { %v1064_v10 = vpop.f32.mrf.mxu3 }
 0x4db   :  { %2984 = vmatmul.msk.f32.vlgmr.msrb.gmra.mxu1 %vm543_vm7, %v1064_v10 }
 0x4dc   :  { %v995_v15 = vpop.f32.mrf.mxu0 }
 0x4dd   :  { %2981 = vmatmul.msk.f32.gmra.mxu3 %vm543_vm7, %v995_v15 }
 0x4e3   :  { %v1133_v20 = vpop.f32.mrf.mxu2 }
 0x4e4   :  { %v1087_v33 = vpop.f32.mrf.mxu0  ;;  %2987 = vmatmul.msk.f32.gmra.mxu2 %vm543_vm7, %v1133_v20 }
 0x4e5   :  { %2985 = vmatmul.msk.f32.gmra.mxu1 %vm543_vm7, %v1087_v33  ;;  %v1393_v33 = vld [vmem:[%s4254_s1 + $0xb0] sm:$0xff] }
 0x4e6   :  { %1416 = vmatpush.msra.mxu0 %v1393_v33 }
 0x534   :  { %v1194_v39 = vpop.f32.mrf.mxu0 }
 0x535   :  { %v1161_v36 = vpop.f32.mrf.mxu3 }
 0x536   :  { %v1168_v38 = vadd.f32 %v3082_v35, %v1161_v36 }
 0x538   :  { %v1200_v43 = vadd.f32 %v1194_v39, %v1168_v38  ;;  %v1392_v39 = vld [vmem:[%s4254_s1 + $0xa8] sm:$0xff] }
 0x539   :  { %1417 = vmatpush.msra.mxu0 %v1392_v39  ;;  %v1523_v39 = vld [vmem:[%s4255_s2 + $0x198] sm:$0xff] }
 0x53a   :  { %1543 = vmatpush.msra.mxu1 %v1523_v39 }
 0x53b   :  { %1418 = vmatpush.msra.mxu0 %v1391_v37 }
 0x53d   :  { %1419 = vmatpush.msra.mxu0 %v1390_v8 }
 0x548   :  { %v1258_v46 = vpop.f32.mrf.mxu2 }
 0x550   :  { %v1197_v53 = vpop.f32.mrf.mxu0 }
 0x558   :  { %v1226_v25 = vpop.f32.mrf.mxu1 }
 0x559   :  { %v1232_v44 = vadd.f32 %v1226_v25, %v1200_v43 }
 0x55b   :  { %v1264_v47 = vadd.f32 %v1258_v46, %v1232_v44  ;;  %v3083_v44 = vld [vmem:[%s4254_s1 + $0x181] ss:$0 sm:$0xff] }
 0x55d   :  { %v3701_v48 = vadd.f32 %v1264_v47, %v3307_v27 }
 0x55f   :  { %v1270_v49 = vsel %vm92_vm6, %v3701_v48, 0.0 }
 0x560   :  { %v1164_v51 = vpop.f32.mrf.mxu3  ;;  %1271 = vadd.xlane.f32.xlu1 %v1270_v49 }
 0x561   :  { %v1169_v52 = vadd.f32 %v3082_v35, %v1164_v51 }
 0x562   :  { %v1229_v55 = vpop.f32.mrf.mxu1 }
 0x563   :  { %v1201_v54 = vadd.f32 %v1197_v53, %v1169_v52 }
 0x565   :  { %v1233_v56 = vadd.f32 %v1229_v55, %v1201_v54 }
 0x567   :  { %v1261_v57 = vpop.f32.mrf.mxu2 }
 0x568   :  { %v1265_v58 = vadd.f32 %v1261_v57, %v1233_v56  ;;  %v3084_v56 = vld [vmem:[%s4254_s1 + $0x182] ss:$0 sm:$0xff] }
 0x56a   :  { %v3706_v60 = vadd.f32 %v1265_v58, %v3314_v34 }
 0x56c   :  { %v1273_v61 = vsel %vm92_vm6, %v3706_v60, 0.0 }
 0x56d   :  { %1274 = vadd.xlane.f32.xlu2 %v1273_v61 }
 0x5d3   :  { %v1272_v27 = vpop.xlane.xlu1 %1271 }
 0x5d4   :  { %v1276_v62 = vmul.f32 %v1272_v27, %v3318_v42 }
 0x5d6   :  { %v3712_v63 = vsub.f32 %v3701_v48, %v1276_v62 }
 0x5d8   :  { %v1280_v1 = vmul.f32 %v3712_v63, %v3712_v63  ;;  %v1291_v54 = vmul.f32 %v3083_v44, %v3712_v63 }
 0x5da   :  { %v1282_v50 = vsel %vm92_vm6, %v1280_v1, 0.0 }
 0x5db   :  { %1283 = vadd.xlane.f32.xlu0 %v1282_v50 }
 0x5e0   :  { %v1275_v2 = vpop.xlane.xlu2 %1274 }
 0x5e1   :  { %v1277_v34 = vmul.f32 %v1275_v2, %v3318_v42 }
 0x5e3   :  { %v3719_v3 = vsub.f32 %v3706_v60, %v1277_v34 }
 0x5e5   :  { %v1281_v4 = vmul.f32 %v3719_v3, %v3719_v3 }
 0x5e7   :  { %v1285_v0 = vsel %vm92_vm6, %v1281_v4, 0.0 }
 0x5e8   :  { %1286 = vadd.xlane.f32.xlu1 %v1285_v0  ;;  %v1292_v0 = vmul.f32 %v3083_v44, %v3719_v3  ;;  %v1389_v3 = vld [vmem:[%s4254_s1 + $0x90] sm:$0xff] }
 0x5e9   :  { %1420 = vmatpush.msra.mxu0 %v1389_v3 }
 0x64e   :  { %v1284_v6 = vpop.xlane.xlu0 %1283 }
 0x64f   :  { %v1288_v7 = vmul.f32 %v1284_v6, %v3334_v59 }
 0x651   :  { %3153 = vrsqrt.f32 %v1288_v7  ;;  %vm1300_vm12 = vcmp.eq.f32.partialorder %v1288_v7, inf  ;;  %v1303_v24 = vand.u32 2147483648, %v1288_v7  ;;  %vm1302_vm13 = vcmp.eq.f32.partialorder %v1288_v7, 0.0 }
 0x657   :  { %v3154_v12 = vpop.eup %3153 }
 0x658   :  { %v1294_v13 = vmul.f32 %v3154_v12, %v1288_v7 }
 0x65a   :  { %v1295_v16 = vmul.f32 %v3154_v12, %v1294_v13 }
 0x65b   :  { %v1287_v18 = vpop.xlane.xlu1 %1286 }
 0x65c   :  { %v1296_v17 = vmul.f32 0.5, %v1295_v16  ;;  %v1289_v19 = vmul.f32 %v1287_v18, %v3334_v59 }
 0x65e   :  { %v1297_v45 = vsub.f32 1.5, %v1296_v17  ;;  %3155 = vrsqrt.f32 %v1289_v19  ;;  %vm1312_vm14 = vcmp.eq.f32.partialorder %v1289_v19, inf  ;;  %v1315_v36 = vand.u32 2147483648, %v1289_v19 }
 0x65f   :  { %vm1314_vm15 = vcmp.eq.f32.partialorder %v1289_v19, 0.0 }
 0x660   :  { %v1298_v21 = vmul.f32 %v3154_v12, %v1297_v45  ;;  %v3085_v12 = vld [vmem:[%s4254_s1 + $0x17f] ss:$0 sm:$0xff] }
 0x662   :  { %v1299_v23 = vmul.f32 %v1298_v21, %v1288_v7  ;;  %v3086_v21 = vld [vmem:[%s4254_s1 + $0x180] ss:$0 sm:$0xff] }
 0x664   :  { %v1301_v14 = vsel %vm1300_vm12, %v1288_v7, %v1299_v23  ;;  %v3156_v26 = vpop.eup %3155 }
 0x665   :  { %v1304_v22 = vsel %vm1302_vm13, %v1303_v24, %v1301_v14  ;;  %v1306_v28 = vmul.f32 %v3156_v26, %v1289_v19 }
 0x666   :  { %v1317_v41 = vadd.f32 1e-06, %v1304_v22 }
 0x667   :  { %v1307_v40 = vmul.f32 %v3156_v26, %v1306_v28 }
 0x668   :  { %3157 = vrcp.f32 %v1317_v41  ;;  %v1330_v43 = vand.u32 2147483648, %v1317_v41  ;;  %v1328_v47 = vand.u32 2147483647, %v1317_v41  ;;  %vm1324_vm1 = vweird.f32 %v1317_v41 }
 0x669   :  { %v1308_v29 = vmul.f32 0.5, %v1307_v40 }
 0x66a   :  { %v1331_v53 = vor.u32 1.1754944e-38, %v1330_v43  ;;  %vm1329_vm3 = vcmp.eq.f32.partialorder %v1328_v47, 8.507059e+37  ;;  %v1557_v43 = vld [vmem:[%s4255_s2 + $0x218] sm:$0xff]  ;;  %v1522_v47 = vld [vmem:[%s4255_s2 + $0x190] sm:$0xff] }
 0x66b   :  { %v1309_v31 = vsub.f32 1.5, %v1308_v29  ;;  %1571 = vmatpush.msra.mxu2 %v1557_v43  ;;  %1544 = vmatpush.msra.mxu1 %v1522_v47 }
 0x66d   :  { %v1310_v15 = vmul.f32 %v3156_v26, %v1309_v31 }
 0x66e   :  { %v3158_v10 = vpop.eup %3157 }
 0x66f   :  { %v1320_v20 = vmul.f32 %v3158_v10, %v1317_v41  ;;  %v1311_v35 = vmul.f32 %v1310_v15, %v1289_v19  ;;  %vm1325_vm0 = vweird.f32 %v3158_v10 }
 0x670   :  { %vm1326_vm2 = vmor %vm1324_vm1, %vm1325_vm0 }
 0x671   :  { %v1321_v38 = vsub.f32 1.0, %v1320_v20  ;;  %v1313_v25 = vsel %vm1312_vm14, %v1289_v19, %v1311_v35 }
 0x672   :  { %v1316_v49 = vsel %vm1314_vm15, %v1315_v36, %v1313_v25  ;;  %v1585_v25 = vld [vmem:[%s4255_s2 + $0x298] sm:$0xff] }
 0x673   :  { %v1322_v46 = vmul.f32 %v3158_v10, %v1321_v38  ;;  %v1318_v51 = vadd.f32 1e-06, %v1316_v49  ;;  %1599 = vmatpush.msrb.mxu3 %v1585_v25  ;;  %v1556_v49 = vld [vmem:[%s4255_s2 + $0x210] sm:$0xff] }
 0x674   :  { %1572 = vmatpush.msra.mxu2 %v1556_v49  ;;  %v3088_v49 = vld [vmem:[%s4254_s1 + $0x191] ss:$0 sm:$0xff] }
 0x675   :  { %v1323_v52 = vadd.f32 %v3158_v10, %v1322_v46  ;;  %3159 = vrcp.f32 %v1318_v51  ;;  %v1345_v50 = vand.u32 2147483648, %v1318_v51  ;;  %v1343_v34 = vand.u32 2147483647, %v1318_v51  ;;  %v1616_v46 = vld [vmem:[%s4255_s2 + $0x1b8] sm:$0xff] }
 0x676   :  { %vm1339_vm5 = vweird.f32 %v1318_v51  ;;  %1630 = vmatpush.msrb.mxu0 %v1616_v46 }
 0x677   :  { %v1327_v55 = vsel %vm1326_vm2, %v3158_v10, %v1323_v52  ;;  %v1346_v63 = vor.u32 1.1754944e-38, %v1345_v50  ;;  %vm1344_vm9 = vcmp.eq.f32.partialorder %v1343_v34, 8.507059e+37  ;;  %v1582_v50 = vld [vmem:[%s4255_s2 + $0x280] sm:$0xff] }
 0x678   :  { %v1332_v57 = vsel %vm1329_vm3, %v1331_v53, %v1327_v55  ;;  %v1613_v34 = vld [vmem:[%s4255_s2 + $0x1a0] sm:$0xff] }
 0x679   :  { %v1333_v58 = vmul.f32 %v1332_v57, %v1291_v54  ;;  %v1615_v54 = vld [vmem:[%s4255_s2 + $0x1b0] sm:$0xff]  ;;  %v1555_v57 = vld [vmem:[%s4255_s2 + $0x208] sm:$0xff] }
 0x67a   :  { %1631 = vmatpush.msrb.mxu0 %v1615_v54  ;;  %1573 = vmatpush.msra.mxu2 %v1555_v57  ;;  %v1790_v57 = vld [vmem:[%s4255_s2 + $0x1f8] sm:$0xff] }
 0x67b   :  { %v1350_v61 = vadd.f32 %v3084_v56, %v1333_v58  ;;  %v3160_v27 = vpop.eup %3159  ;;  %v1583_v58 = vld [vmem:[%s4255_s2 + $0x288] sm:$0xff] }
 0x67c   :  { %v1335_v62 = vmul.f32 %v3160_v27, %v1318_v51  ;;  %vm1340_vm4 = vweird.f32 %v3160_v27  ;;  %v1584_v51 = vld [vmem:[%s4255_s2 + $0x290] sm:$0xff] }
 0x67d   :  { %2988 = vmatmul.msk.f32.vlgmr.msra.gmra.mxu3 %vm92_vm6, %v1350_v61  ;;  %vm1341_vm8 = vmor %vm1339_vm5, %vm1340_vm4 }
 0x67e   :  { %v1336_v1 = vsub.f32 1.0, %v1335_v62  ;;  %1600 = vmatpush.msrb.mxu3 %v1584_v51  ;;  %v1520_v62 = vld [vmem:[%s4255_s2 + $0x180] sm:$0xff] }
 0x680   :  { %v1337_v2 = vmul.f32 %v3160_v27, %v1336_v1  ;;  %1601 = vmatpush.msrb.mxu3 %v1583_v58  ;;  %v1554_v1 = vld [vmem:[%s4255_s2 + $0x200] sm:$0xff] }
 0x681   :  { %1574 = vmatpush.msra.mxu2 %v1554_v1  ;;  %v1817_v1 = vld [vmem:[%s4255_s2 + $0x270] sm:$0xff] }
 0x682   :  { %v1338_v4 = vadd.f32 %v3160_v27, %v1337_v2  ;;  %1602 = vmatpush.msrb.mxu3 %v1582_v50  ;;  %v1845_v50 = vld [vmem:[%s4255_s2 + $0x2f0] sm:$0xff] }
 0x684   :  { %v1342_v6 = vsel %vm1341_vm8, %v3160_v27, %v1338_v4  ;;  %v1614_v27 = vld [vmem:[%s4255_s2 + $0x1a8] sm:$0xff] }
 0x685   :  { %v1347_v7 = vsel %vm1344_vm9, %v1346_v63, %v1342_v6  ;;  %1632 = vmatpush.msrb.mxu0 %v1614_v27  ;;  %v1758_v27 = vld [vmem:[%s4255_s2 + $0x2d0] sm:$0xff] }
 0x686   :  { %v1348_v9 = vmul.f32 %v1347_v7, %v1292_v0 }
 0x687   :  { %1633 = vmatpush.msrb.mxu0 %v1613_v34  ;;  %v1757_v34 = vld [vmem:[%s4255_s2 + $0x2c8] sm:$0xff] }
 0x688   :  { %v1351_v11 = vadd.f32 %v3084_v56, %v1348_v9  ;;  %v1521_v56 = vld [vmem:[%s4255_s2 + $0x188] sm:$0xff] }
 0x689   :  { %1545 = vmatpush.msra.mxu1 %v1521_v56  ;;  %v1759_v56 = vld [vmem:[%s4255_s2 + $0x2d8] sm:$0xff] }
 0x68a   :  { %2989 = vmatmul.msk.f32.gmra.mxu3 %vm92_vm6, %v1351_v11 }
 0x68b   :  { %1546 = vmatpush.msra.mxu1 %v1520_v62  ;;  %v1789_v62 = vld [vmem:[%s4255_s2 + $0x1f0] sm:$0xff] }
 0x700   :  { %v1381_v13 = vpop.f32.mrf.mxu3 }
 0x701   :  { %v1382_v16 = vadd.f32 %v3085_v12, %v1381_v13  ;;  %v1644_v13 = vld [vmem:[%s4255_s2 + $0x238] sm:$0xff] }
 0x702   :  { %1658 = vmatpush.msrb.mxu1 %v1644_v13 }
 0x703   :  { %v1387_v17 = vmax.f32 %v1382_v16, 0.0  ;;  %v1672_v16 = vld [vmem:[%s4255_s2 + $0x2b8] sm:$0xff] }
 0x704   :  { %1686 = vmatpush.msrb.mxu2 %v1672_v16 }
 0x705   :  { %2990 = vmatmul.msk.f32.vlgmr.msra.gmra.mxu0 %vm1398_vm10, %v1387_v17 }
 0x70d   :  { %v1384_v18 = vpop.f32.mrf.mxu3 }
 0x70e   :  { %v1385_v19 = vadd.f32 %v3085_v12, %v1384_v18  ;;  %v1703_v12 = vld [vmem:[%s4255_s2 + $0x1d8] sm:$0xff] }
 0x70f   :  { %1717 = vmatpush.msra.mxu3 %v1703_v12  ;;  %v1731_v18 = vld [vmem:[%s4255_s2 + $0x258] sm:$0xff] }
 0x710   :  { %v1388_v45 = vmax.f32 %v1385_v19, 0.0  ;;  %v1643_v19 = vld [vmem:[%s4255_s2 + $0x230] sm:$0xff]  ;;  %1745 = vmatpush.msra.mxu0 %v1731_v18 }
 0x711   :  { %1659 = vmatpush.msrb.mxu1 %v1643_v19 }
 0x712   :  { %2991 = vmatmul.msk.f32.gmra.mxu0 %vm1398_vm10, %v1388_v45  ;;  %v1671_v45 = vld [vmem:[%s4255_s2 + $0x2b0] sm:$0xff] }
 0x713   :  { %1687 = vmatpush.msrb.mxu2 %v1671_v45 }
 0x782   :  { %v1422_v23 = vpop.f32.mrf.mxu0 }
 0x783   :  { %v1428_v24 = vadd.f32 %v1422_v23, %v3701_v48 }
 0x785   :  { %v3781_v14 = vadd.f32 %v3086_v21, %v1428_v24  ;;  %v1702_v24 = vld [vmem:[%s4255_s2 + $0x1d0] sm:$0xff] }
 0x786   :  { %1718 = vmatpush.msra.mxu3 %v1702_v24 }
 0x787   :  { %v1435_v26 = vsel %vm92_vm6, %v3781_v14, 0.0 }
 0x788   :  { %1436 = vadd.xlane.f32.xlu2 %v1435_v26  ;;  %v1730_v26 = vld [vmem:[%s4255_s2 + $0x250] sm:$0xff] }
 0x789   :  { %1746 = vmatpush.msra.mxu0 %v1730_v26 }
 0x78f   :  { %v1425_v22 = vpop.f32.mrf.mxu0 }
 0x790   :  { %v1429_v41 = vadd.f32 %v1425_v22, %v3706_v60  ;;  %v1642_v22 = vld [vmem:[%s4255_s2 + $0x228] sm:$0xff] }
 0x791   :  { %1660 = vmatpush.msrb.mxu1 %v1642_v22 }
 0x792   :  { %v3786_v28 = vadd.f32 %v3086_v21, %v1429_v41  ;;  %v1670_v41 = vld [vmem:[%s4255_s2 + $0x2a8] sm:$0xff] }
 0x793   :  { %1688 = vmatpush.msrb.mxu2 %v1670_v41 }
 0x794   :  { %v1438_v40 = vsel %vm92_vm6, %v3786_v28, 0.0 }
 0x795   :  { %1439 = vadd.xlane.f32.xlu0 %v1438_v40  ;;  %v1701_v40 = vld [vmem:[%s4255_s2 + $0x1c8] sm:$0xff] }
 0x796   :  { %1719 = vmatpush.msra.mxu3 %v1701_v40 }
 0x7fb   :  { %v1437_v29 = vpop.xlane.xlu2 %1436 }
 0x7fc   :  { %v1441_v5 = vmul.f32 %v1437_v29, %v3318_v42 }
 0x7fe   :  { %v3792_v48 = vsub.f32 %v3781_v14, %v1441_v5 }
 0x800   :  { %v1445_v30 = vmul.f32 %v3792_v48, %v3792_v48 }
 0x802   :  { %v1447_v31 = vsel %vm92_vm6, %v1445_v30, 0.0  ;;  %v1729_v30 = vld [vmem:[%s4255_s2 + $0x248] sm:$0xff] }
 0x803   :  { %1448 = vadd.xlane.f32.xlu1 %v1447_v31  ;;  %v1641_v31 = vld [vmem:[%s4255_s2 + $0x220] sm:$0xff]  ;;  %1747 = vmatpush.msra.mxu0 %v1729_v30  ;;  %v3093_v30 = vld [vmem:[%s4254_s1 + $0x188] ss:$0 sm:$0xff] }
 0x804   :  { %1661 = vmatpush.msrb.mxu1 %v1641_v31 }
 0x808   :  { %v1440_v32 = vpop.xlane.xlu0 %1439 }
 0x809   :  { %v1442_v60 = vmul.f32 %v1440_v32, %v3318_v42 }
 0x80b   :  { %v3799_v10 = vsub.f32 %v3786_v28, %v1442_v60 }
 0x80d   :  { %v1446_v15 = vmul.f32 %v3799_v10, %v3799_v10 }
 0x80f   :  { %v1450_v20 = vsel %vm92_vm6, %v1446_v15, 0.0  ;;  %v1669_v15 = vld [vmem:[%s4255_s2 + $0x2a0] sm:$0xff] }
 0x810   :  { %1451 = vadd.xlane.f32.xlu2 %v1450_v20  ;;  %v1700_v20 = vld [vmem:[%s4255_s2 + $0x1c0] sm:$0xff]  ;;  %1689 = vmatpush.msrb.mxu2 %v1669_v15 }
 0x811   :  { %1720 = vmatpush.msra.mxu3 %v1700_v20 }
 0x876   :  { %v1449_v33 = vpop.xlane.xlu1 %1448 }
 0x877   :  { %v1453_v35 = vmul.f32 %v1449_v33, %v3334_v59  ;;  %v1728_v33 = vld [vmem:[%s4255_s2 + $0x240] sm:$0xff] }
 0x878   :  { %1748 = vmatpush.msra.mxu0 %v1728_v33  ;;  %v3090_v33 = vld [vmem:[%s4254_s1 + $0x184] ss:$0 sm:$0xff] }
 0x879   :  { %3161 = vrsqrt.f32 %v1453_v35  ;;  %vm1465_vm11 = vcmp.eq.f32.partialorder %v1453_v35, inf  ;;  %v1468_v63 = vand.u32 2147483648, %v1453_v35  ;;  %vm1467_vm12 = vcmp.eq.f32.partialorder %v1453_v35, 0.0 }
 0x87f   :  { %v3162_v36 = vpop.eup %3161 }
 0x880   :  { %v1459_v38 = vmul.f32 %v3162_v36, %v1453_v35 }
 0x882   :  { %v1460_v44 = vmul.f32 %v3162_v36, %v1459_v38 }
 0x883   :  { %v1452_v53 = vpop.xlane.xlu2 %1451 }
 0x884   :  { %v1461_v52 = vmul.f32 0.5, %v1460_v44  ;;  %v3830_v55 = vmul.f32 %v1452_v53, %v3334_v59 }
 0x886   :  { %v1462_v61 = vsub.f32 1.5, %v1461_v52  ;;  %3163 = vrsqrt.f32 %v3830_v55  ;;  %vm1477_vm13 = vcmp.eq.f32.partialorder %v3830_v55, inf  ;;  %vm1479_vm14 = vcmp.eq.f32.partialorder %v3830_v55, 0.0 }
 0x887   :  { %v1480_v60 = vand.u32 2147483648, %v3830_v55 }
 0x888   :  { %v1463_v2 = vmul.f32 %v3162_v36, %v1462_v61  ;;  %v1846_v61 = vld [vmem:[%s4255_s2 + $0x2f8] sm:$0xff] }
 0x88a   :  { %v1464_v4 = vmul.f32 %v1463_v2, %v1453_v35 }
 0x88c   :  { %v1466_v0 = vsel %vm1465_vm11, %v1453_v35, %v1464_v4  ;;  %v3164_v6 = vpop.eup %3163  ;;  %v3913_v35 = vld [vmem:[%s4254_s1 + $0x190] ss:$0 sm:$0xff]  ;;  %v1816_v4 = vld [vmem:[%s4255_s2 + $0x268] sm:$0xff] }
 0x88d   :  { %v1469_v7 = vsel %vm1467_vm12, %v1468_v63, %v1466_v0  ;;  %v1471_v11 = vmul.f32 %v3164_v6, %v3830_v55  ;;  %v1456_v47 = vmul.f32 %v3913_v35, %v3792_v48  ;;  %v1818_v48 = vld [vmem:[%s4255_s2 + $0x278] sm:$0xff]  ;;  %v1788_v0 = vld [vmem:[%s4255_s2 + $0x1e8] sm:$0xff]  ;;  %v1457_v16 = vmul.f32 %v3913_v35, %v3799_v10  ;;  %v3091_v10 = vld [vmem:[%s4254_s1 + $0x187] ss:$0 sm:$0xff] }
 0x88e   :  { %v1482_v9 = vadd.f32 1e-06, %v1469_v7 }
 0x88f   :  { %v1472_v37 = vmul.f32 %v3164_v6, %v1471_v11  ;;  %v1756_v11 = vld [vmem:[%s4255_s2 + $0x2c0] sm:$0xff] }
 0x890   :  { %3165 = vrcp.f32 %v1482_v9  ;;  %v1495_v32 = vand.u32 2147483648, %v1482_v9  ;;  %v1493_v38 = vand.u32 2147483647, %v1482_v9  ;;  %vm1489_vm0 = vweird.f32 %v1482_v9 }
 0x891   :  { %v1473_v8 = vmul.f32 0.5, %v1472_v37  ;;  %v1815_v37 = vld [vmem:[%s4255_s2 + $0x260] sm:$0xff] }
 0x892   :  { %v1496_v46 = vor.u32 1.1754944e-38, %v1495_v32  ;;  %vm1494_vm2 = vcmp.eq.f32.partialorder %v1493_v38, 8.507059e+37  ;;  %v3094_v32 = vld [vmem:[%s4254_s1 + $0x189] ss:$0 sm:$0xff] }
 0x893   :  { %v1474_v3 = vsub.f32 1.5, %v1473_v8  ;;  %v1787_v8 = vld [vmem:[%s4255_s2 + $0x1e0] sm:$0xff] }
 0x895   :  { %v1475_v23 = vmul.f32 %v3164_v6, %v1474_v3  ;;  %v1844_v6 = vld [vmem:[%s4255_s2 + $0x2e8] sm:$0xff]  ;;  %v1843_v3 = vld [vmem:[%s4255_s2 + $0x2e0] sm:$0xff] }
 0x896   :  { %v3166_v17 = vpop.eup %3165 }
 0x897   :  { %v1485_v21 = vmul.f32 %v3166_v17, %v1482_v9  ;;  %v1476_v5 = vmul.f32 %v1475_v23, %v3830_v55  ;;  %vm1490_vm15 = vweird.f32 %v3166_v17 }
 0x898   :  { %vm1491_vm1 = vmor %vm1489_vm0, %vm1490_vm15 }
 0x899   :  { %v1486_v29 = vsub.f32 1.0, %v1485_v21  ;;  %v1478_v39 = vsel %vm1477_vm13, %v3830_v55, %v1476_v5  ;;  %v3089_v21 = vld [vmem:[%s4254_s1 + $0x183] ss:$0 sm:$0xff] }
 0x89a   :  { %v1481_v43 = vsel %vm1479_vm14, %v1480_v60, %v1478_v39  ;;  %v3092_v60 = vld [vmem:[%s4254_s1 + $0x18b] ss:$0 sm:$0xff] }
 0x89b   :  { %v1487_v36 = vmul.f32 %v3166_v17, %v1486_v29  ;;  %v1483_v44 = vadd.f32 1e-06, %v1481_v43 }
 0x89d   :  { %v1488_v25 = vadd.f32 %v3166_v17, %v1487_v36  ;;  %3167 = vrcp.f32 %v1483_v44  ;;  %v1510_v63 = vand.u32 2147483648, %v1483_v44  ;;  %v1508_v9 = vand.u32 2147483647, %v1483_v44 }
 0x89e   :  { %vm1504_vm4 = vweird.f32 %v1483_v44 }
 0x89f   :  { %v1492_v51 = vsel %vm1491_vm1, %v3166_v17, %v1488_v25  ;;  %v1511_v13 = vor.u32 1.1754944e-38, %v1510_v63  ;;  %vm1509_vm8 = vcmp.eq.f32.partialorder %v1508_v9, 8.507059e+37  ;;  %v3099_v63 = vld [vmem:[%s4254_s1 + $0x186] ss:$0 sm:$0xff] }
 0x8a0   :  { %v1497_v52 = vsel %vm1494_vm2, %v1496_v46, %v1492_v51  ;;  %v3096_v46 = vld [vmem:[%s4254_s1 + $0x185] ss:$0 sm:$0xff] }
 0x8a1   :  { %v1498_v53 = vmul.f32 %v1497_v52, %v1456_v47 }
 0x8a3   :  { %v3923_v54 = vadd.f32 %v3088_v49, %v1498_v53  ;;  %v3168_v55 = vpop.eup %3167 }
 0x8a4   :  { %v1500_v58 = vmul.f32 %v3168_v55, %v1483_v44  ;;  %vm1505_vm3 = vweird.f32 %v3168_v55 }
 0x8a5   :  { %2992 = vmatmul.msk.f32.vlgmr.msra.gmra.mxu1 %vm92_vm6, %v3923_v54  ;;  %2994 = vmatmul.msk.f32.vlgmr.msra.gmra.mxu2 %vm92_vm6, %v3923_v54  ;;  %vm1506_vm5 = vmor %vm1504_vm4, %vm1505_vm3 }
 0x8a6   :  { %2996 = vmatmul.msk.f32.vlgmr.msrb.gmra.mxu3 %vm92_vm6, %v3923_v54  ;;  %2998 = vmatmul.msk.f32.vlgmr.msrb.gmra.mxu0 %vm92_vm6, %v3923_v54  ;;  %v1501_v2 = vsub.f32 1.0, %v1500_v58 }
 0x8a7   :  { %1832 = vmatpush.msrb.mxu3 %v1818_v48  ;;  %1773 = vmatpush.msra.mxu1 %v1759_v56 }
 0x8a8   :  { %1804 = vmatpush.msra.mxu2 %v1790_v57  ;;  %1860 = vmatpush.msrb.mxu0 %v1846_v61  ;;  %v1502_v7 = vmul.f32 %v3168_v55, %v1501_v2  ;;  %v3097_v57 = vld [vmem:[%s4254_s1 + $0x18d] ss:$0 sm:$0xff]  ;;  %v3095_v2 = vld [vmem:[%s4254_s1 + $0x18c] ss:$0 sm:$0xff] }
 0x8a9   :  { %1774 = vmatpush.msra.mxu1 %v1758_v27  ;;  %1833 = vmatpush.msrb.mxu3 %v1817_v1 }
 0x8aa   :  { %1805 = vmatpush.msra.mxu2 %v1789_v62  ;;  %1861 = vmatpush.msrb.mxu0 %v1845_v50  ;;  %v1503_v12 = vadd.f32 %v3168_v55, %v1502_v7  ;;  %v3100_v50 = vld [vmem:[%s4254_s1 + $0x18a] ss:$0 sm:$0xff] }
 0x8ab   :  { %1775 = vmatpush.msra.mxu1 %v1757_v34  ;;  %1834 = vmatpush.msrb.mxu3 %v1816_v4 }
 0x8ac   :  { %1806 = vmatpush.msra.mxu2 %v1788_v0  ;;  %1862 = vmatpush.msrb.mxu0 %v1844_v6  ;;  %v1507_v17 = vsel %vm1506_vm5, %v3168_v55, %v1503_v12  ;;  %v3098_v6 = vld [vmem:[%s4254_s1 + $0x18e] ss:$0 sm:$0xff] }
 0x8ad   :  { %1776 = vmatpush.msra.mxu1 %v1756_v11  ;;  %1835 = vmatpush.msrb.mxu3 %v1815_v37  ;;  %v1512_v18 = vsel %vm1509_vm8, %v1511_v13, %v1507_v17 }
 0x8ae   :  { %1807 = vmatpush.msra.mxu2 %v1787_v8  ;;  %1863 = vmatpush.msrb.mxu0 %v1843_v3  ;;  %v1513_v19 = vmul.f32 %v1512_v18, %v1457_v16 }
 0x8b0   :  { %v1516_v45 = vadd.f32 %v3088_v49, %v1513_v19 }
 0x8b2   :  { %2993 = vmatmul.msk.f32.gmra.mxu1 %vm92_vm6, %v1516_v45  ;;  %2995 = vmatmul.msk.f32.gmra.mxu2 %vm92_vm6, %v1516_v45 }
 0x8b3   :  { %2997 = vmatmul.msk.f32.gmra.mxu3 %vm92_vm6, %v1516_v45  ;;  %2999 = vmatmul.msk.f32.gmra.mxu0 %vm92_vm6, %v1516_v45 }
 0x8ba   :  { %3000 = vmatmul.msk.f32.vlgmr.msrb.gmra.mxu1 %vm92_vm6, %v3923_v54  ;;  %3002 = vmatmul.msk.f32.vlgmr.msrb.gmra.mxu2 %vm92_vm6, %v3923_v54 }
 0x8bb   :  { %3004 = vmatmul.msk.f32.vlgmr.msra.gmra.mxu3 %vm92_vm6, %v3923_v54  ;;  %3006 = vmatmul.msk.f32.vlgmr.msra.gmra.mxu0 %vm92_vm6, %v3923_v54 }
 0x8c2   :  { %3001 = vmatmul.msk.f32.gmra.mxu1 %vm92_vm6, %v1516_v45  ;;  %3003 = vmatmul.msk.f32.gmra.mxu2 %vm92_vm6, %v1516_v45 }
 0x8c3   :  { %3005 = vmatmul.msk.f32.gmra.mxu3 %vm92_vm6, %v1516_v45  ;;  %3007 = vmatmul.msk.f32.gmra.mxu0 %vm92_vm6, %v1516_v45 }
 0x8ca   :  { %3008 = vmatmul.msk.f32.vlgmr.msra.gmra.mxu1 %vm92_vm6, %v3923_v54  ;;  %3010 = vmatmul.msk.f32.vlgmr.msra.gmra.mxu2 %vm92_vm6, %v3923_v54 }
 0x8cb   :  { %3012 = vmatmul.msk.f32.vlgmr.msrb.gmra.mxu3 %vm92_vm6, %v3923_v54  ;;  %3014 = vmatmul.msk.f32.vlgmr.msrb.gmra.mxu0 %vm92_vm6, %v3923_v54 }
 0x8d2   :  { %3009 = vmatmul.msk.f32.gmra.mxu1 %vm92_vm6, %v1516_v45  ;;  %3011 = vmatmul.msk.f32.gmra.mxu2 %vm92_vm6, %v1516_v45 }
 0x8d3   :  { %3013 = vmatmul.msk.f32.gmra.mxu3 %vm92_vm6, %v1516_v45  ;;  %3015 = vmatmul.msk.f32.gmra.mxu0 %vm92_vm6, %v1516_v45 }
 0x922   :  { %v1548_v24 = vpop.f32.mrf.mxu1 }
 0x923   :  { %v1635_v22 = vpop.f32.mrf.mxu0  ;;  %v1549_v41 = vadd.f32 %v3089_v21, %v1548_v24 }
 0x924   :  { %v1636_v44 = vadd.f32 %v3090_v33, %v1635_v22 }
 0x928   :  { %v1576_v23 = vpop.f32.mrf.mxu2 }
 0x929   :  { %v1577_v26 = vadd.f32 %v3091_v10, %v1576_v23  ;;  %v1604_v40 = vpop.f32.mrf.mxu3 }
 0x92a   :  { %v1605_v25 = vadd.f32 %v3092_v60, %v1604_v40 }
 0x92b   :  { %3016 = vmatpush.xpose.msk.msrb.mxu1 %vm543_vm7, %v1577_v26 }
 0x92e   :  { %3017 = vmatmul.msk.f32.vlgmr.msrb.gmra.mxu1 %vm543_vm7, %v1549_v41 }
 0x92f   :  { %v1551_v29 = vpop.f32.mrf.mxu1 }
 0x930   :  { %v1638_v5 = vpop.f32.mrf.mxu0  ;;  %v1552_v39 = vadd.f32 %v3089_v21, %v1551_v29 }
 0x931   :  { %v1639_v56 = vadd.f32 %v3090_v33, %v1638_v5 }
 0x935   :  { %v1579_v31 = vpop.f32.mrf.mxu2 }
 0x936   :  { %v1580_v15 = vadd.f32 %v3091_v10, %v1579_v31  ;;  %v1607_v20 = vpop.f32.mrf.mxu3 }
 0x937   :  { %v1663_v35 = vpop.f32.mrf.mxu1  ;;  %v1608_v48 = vadd.f32 %v3092_v60, %v1607_v20 }
 0x938   :  { %v1664_v36 = vadd.f32 %v3093_v30, %v1663_v35  ;;  %v1750_v38 = vpop.f32.mrf.mxu0  ;;  %3018 = vmatpush.xpose.msk.msrb.mxu2 %vm543_vm7, %v1580_v15 }
 0x939   :  { %v1751_v43 = vadd.f32 %v3094_v32, %v1750_v38 }
 0x93a   :  { %3020 = vmatpush.xpose.msk.msra.mxu1 %vm543_vm7, %v1664_v36 }
 0x93b   :  { %3024 = vmatpush.xpose.msk.msra.mxu3 %vm543_vm7, %v1751_v43  ;;  %3019 = vmatmul.msk.f32.vlgmr.msrb.gmra.mxu2 %vm543_vm7, %v1552_v39 }
 0x93d   :  { %v1691_v47 = vpop.f32.mrf.mxu2  ;;  %3021 = vmatmul.msk.f32.vlgmr.msra.gmra.mxu1 %vm543_vm7, %v1636_v44 }
 0x93e   :  { %v1722_v49 = vpop.f32.mrf.mxu3  ;;  %v1692_v11 = vadd.f32 %v3095_v2, %v1691_v47 }
 0x93f   :  { %2297 = vmatpush.msrb.mxu3 %v1605_v25  ;;  %v1723_v51 = vadd.f32 %v3096_v46, %v1722_v49  ;;  %v1666_v52 = vpop.f32.mrf.mxu1 }
 0x940   :  { %v1667_v53 = vadd.f32 %v3093_v30, %v1666_v52  ;;  %v1753_v54 = vpop.f32.mrf.mxu0 }
 0x941   :  { %v1754_v55 = vadd.f32 %v3094_v32, %v1753_v54  ;;  %3025 = vmatmul.msk.f32.vlgmr.msra.gmra.mxu3 %vm543_vm7, %v1723_v51 }
 0x942   :  { %3022 = vmatpush.xpose.msk.msra.mxu2 %vm543_vm7, %v1667_v53 }
 0x943   :  { %3026 = vmatpush.xpose.msk.msra.mxu0 %vm543_vm7, %v1754_v55 }
 0x945   :  { %v1694_v58 = vpop.f32.mrf.mxu2  ;;  %3023 = vmatmul.msk.f32.vlgmr.msra.gmra.mxu2 %vm543_vm7, %v1639_v56 }
 0x946   :  { %v1725_v61 = vpop.f32.mrf.mxu3  ;;  %v1695_v17 = vadd.f32 %v3095_v2, %v1694_v58 }
 0x947   :  { %2320 = vmatpush.msrb.mxu0 %v1608_v48  ;;  %v1726_v27 = vadd.f32 %v3096_v46, %v1725_v61  ;;  %v1778_v62 = vpop.f32.mrf.mxu1 }
 0x948   :  { %v1779_v1 = vadd.f32 %v3097_v57, %v1778_v62  ;;  %v1865_v4 = vpop.f32.mrf.mxu0 }
 0x949   :  { %3027 = vmatmul.msk.f32.vlgmr.msra.gmra.mxu0 %vm543_vm7, %v1726_v27  ;;  %v1866_v3 = vadd.f32 %v3098_v6, %v1865_v4 }
 0x94a   :  { %2389 = vmatpush.msra.mxu3 %v1779_v1 }
 0x94d   :  { %v1809_v34 = vpop.f32.mrf.mxu2 }
 0x94e   :  { %v1837_v0 = vpop.f32.mrf.mxu3  ;;  %v1810_v8 = vadd.f32 %v3099_v63, %v1809_v34 }
 0x94f   :  { %v1838_v7 = vadd.f32 %v3100_v50, %v1837_v0  ;;  %v1781_v9 = vpop.f32.mrf.mxu1 }
 0x950   :  { %v1782_v37 = vadd.f32 %v3097_v57, %v1781_v9  ;;  %v1868_v18 = vpop.f32.mrf.mxu0 }
 0x951   :  { %3028 = vmatpush.xpose.msk.msrb.mxu1 %vm543_vm7, %v1838_v7  ;;  %v1869_v45 = vadd.f32 %v3098_v6, %v1868_v18 }
 0x952   :  { %2412 = vmatpush.msra.mxu0 %v1782_v37 }
 0x954   :  { %3029 = vmatmul.msk.f32.vlgmr.msrb.gmra.mxu1 %vm543_vm7, %v1810_v8 }
 0x955   :  { %2343 = vmatpush.msra.mxu1 %v1692_v11  ;;  %v1812_v13 = vpop.f32.mrf.mxu2 }
 0x956   :  { %v1840_v12 = vpop.f32.mrf.mxu3  ;;  %v1813_v19 = vadd.f32 %v3099_v63, %v1812_v13 }
 0x957   :  { %2435 = vmatpush.msrb.mxu1 %v1866_v3  ;;  %v1841_v16 = vadd.f32 %v3100_v50, %v1840_v12 }
 0x959   :  { %3030 = vmatpush.xpose.msk.msrb.mxu2 %vm543_vm7, %v1841_v16 }
 0x95c   :  { %3031 = vmatmul.msk.f32.vlgmr.msrb.gmra.mxu2 %vm543_vm7, %v1813_v19 }
 0x95d   :  { %2366 = vmatpush.msra.mxu2 %v1695_v17 }
 0x95f   :  { %2458 = vmatpush.msrb.mxu2 %v1869_v45 }
 0x9ab   :  { %v1894_v10 = vpop.f32.mrf.mxu1 }
 0x9ac   :  { %v2079_v21 = vmul.f32 0.35355338, %v1894_v10 }
 0x9ae   :  { %v2087_v23 = vsel %vm543_vm7, %v2079_v21, -inf }
 0x9af   :  { %2088 = vmax.xlane.f32.xlu0 %v2087_v23 }
 0x9ba   :  { %v1946_v24 = vpop.f32.mrf.mxu1 }
 0x9bb   :  { %v2081_v26 = vmul.f32 0.35355338, %v1946_v24 }
 0x9bd   :  { %v2093_v22 = vsel %vm543_vm7, %v2081_v26, -inf }
 0x9be   :  { %2094 = vmax.xlane.f32.xlu1 %v2093_v22  ;;  %v1920_v41 = vpop.f32.mrf.mxu2 }
 0x9bf   :  { %v2080_v60 = vmul.f32 0.35355338, %v1920_v41 }
 0x9c1   :  { %v2090_v33 = vsel %vm543_vm7, %v2080_v60, -inf }
 0x9c4   :  { %v1998_v40 = vpop.f32.mrf.mxu3 }
 0x9c5   :  { %v2083_v29 = vmul.f32 0.35355338, %v1998_v40 }
 0x9c6   :  { %v2024_v36 = vpop.f32.mrf.mxu0 }
 0x9c7   :  { %v2099_v5 = vsel %vm543_vm7, %v2083_v29, -inf  ;;  %v2084_v38 = vmul.f32 0.35355338, %v2024_v36 }
 0x9c8   :  { %2100 = vmax.xlane.f32.xlu0 %v2099_v5  ;;  %v1972_v30 = vpop.f32.mrf.mxu2 }
 0x9c9   :  { %v2082_v31 = vmul.f32 0.35355338, %v1972_v30  ;;  %v2102_v39 = vsel %vm543_vm7, %v2084_v38, -inf }
 0x9cb   :  { %v2096_v32 = vsel %vm543_vm7, %v2082_v31, -inf }
 0x9cc   :  { %2097 = vmax.xlane.f32.xlu2 %v2096_v32 }
 0x9d1   :  { %v2050_v15 = vpop.f32.mrf.mxu1 }
 0x9d2   :  { %v2085_v20 = vmul.f32 0.35355338, %v2050_v15 }
 0x9d4   :  { %v2105_v35 = vsel %vm543_vm7, %v2085_v20, -inf  ;;  %2091 = vmax.xlane.f32.xlu2 %v2090_v33 }
 0x9d5   :  { %2106 = vmax.xlane.f32.xlu1 %v2105_v35 }
 0x9dd   :  { %2103 = vmax.xlane.f32.xlu1 %v2102_v39 }
 0x9df   :  { %v2076_v43 = vpop.f32.mrf.mxu2 }
 0x9e0   :  { %v2086_v25 = vmul.f32 0.35355338, %v2076_v43 }
 0x9e2   :  { %v2108_v44 = vsel %vm543_vm7, %v2086_v25, -inf }
 0x9e3   :  { %2109 = vmax.xlane.f32.xlu0 %v2108_v44 }
 0xa22   :  { %v2089_v46 = vpop.xlane.xlu0 %2088 }
 0xa23   :  { %v2111_v47 = vsub.f32 %v2079_v21, %v2089_v46 }
 0xa25   :  { %v2119_v49 = vmul.f32 1.442695, %v2111_v47 }
 0xa27   :  { %3169 = vpow2.f32 %v2119_v49 }
 0xa2d   :  { %v4071_v51 = vpop.eup %3169 }
 0xa2e   :  { %v2135_v52 = vsel %vm543_vm7, %v4071_v51, 0.0 }
 0xa2f   :  { %2136 = vadd.xlane.f32.xlu2 %v2135_v52 }
 0xa31   :  { %v2095_v53 = vpop.xlane.xlu1 %2094 }
 0xa32   :  { %v2113_v54 = vsub.f32 %v2081_v26, %v2095_v53 }
 0xa34   :  { %v2123_v55 = vmul.f32 1.442695, %v2113_v54 }
 0xa36   :  { %3171 = vpow2.f32 %v2123_v55 }
 0xa3b   :  { %v2101_v48 = vpop.xlane.xlu0 %2100 }
 0xa3c   :  { %v4075_v56 = vpop.eup %3171  ;;  %v2115_v57 = vsub.f32 %v2083_v29, %v2101_v48 }
 0xa3d   :  { %v2141_v58 = vsel %vm543_vm7, %v4075_v56, 0.0 }
 0xa3e   :  { %v2127_v61 = vmul.f32 1.442695, %v2115_v57  ;;  %2142 = vadd.xlane.f32.xlu0 %v2141_v58 }
 0xa3f   :  { %v2098_v27 = vpop.xlane.xlu2 %2097 }
 0xa40   :  { %3173 = vpow2.f32 %v2127_v61  ;;  %v2114_v62 = vsub.f32 %v2082_v31, %v2098_v27 }
 0xa42   :  { %v2125_v1 = vmul.f32 1.442695, %v2114_v62 }
 0xa44   :  { %3175 = vpow2.f32 %v2125_v1 }
 0xa46   :  { %v4079_v50 = vpop.eup %3173 }
 0xa47   :  { %v2147_v2 = vsel %vm543_vm7, %v4079_v50, 0.0  ;;  %v2092_v34 = vpop.xlane.xlu2 %2091 }
 0xa48   :  { %v2107_v4 = vpop.xlane.xlu1 %2106  ;;  %2148 = vadd.xlane.f32.xlu2 %v2147_v2  ;;  %v2112_v63 = vsub.f32 %v2080_v60, %v2092_v34 }
 0xa49   :  { %v2117_v0 = vsub.f32 %v2085_v20, %v2107_v4 }
 0xa4a   :  { %v4083_v6 = vpop.eup %3175  ;;  %v2121_v7 = vmul.f32 1.442695, %v2112_v63 }
 0xa4b   :  { %v2131_v9 = vmul.f32 1.442695, %v2117_v0  ;;  %v2144_v11 = vsel %vm543_vm7, %v4083_v6, 0.0 }
 0xa4c   :  { %3177 = vpow2.f32 %v2121_v7  ;;  %2145 = vadd.xlane.f32.xlu1 %v2144_v11 }
 0xa4d   :  { %3179 = vpow2.f32 %v2131_v9 }
 0xa50   :  { %v2104_v37 = vpop.xlane.xlu1 %2103 }
 0xa51   :  { %v2116_v8 = vsub.f32 %v2084_v38, %v2104_v37 }
 0xa52   :  { %v4087_v3 = vpop.eup %3177 }
 0xa53   :  { %v4089_v12 = vpop.eup %3179  ;;  %v2129_v13 = vmul.f32 1.442695, %v2116_v8  ;;  %v2138_v16 = vsel %vm543_vm7, %v4087_v3, 0.0 }
 0xa54   :  { %2139 = vadd.xlane.f32.xlu1 %v2138_v16  ;;  %v2153_v17 = vsel %vm543_vm7, %v4089_v12, 0.0 }
 0xa55   :  { %3181 = vpow2.f32 %v2129_v13  ;;  %2154 = vadd.xlane.f32.xlu0 %v2153_v17 }
 0xa56   :  { %v2110_v18 = vpop.xlane.xlu0 %2109 }
 0xa57   :  { %v2118_v19 = vsub.f32 %v2086_v25, %v2110_v18 }
 0xa59   :  { %v2133_v45 = vmul.f32 1.442695, %v2118_v19 }
 0xa5b   :  { %v4095_v10 = vpop.eup %3181  ;;  %3183 = vpow2.f32 %v2133_v45 }
 0xa5c   :  { %v2150_v21 = vsel %vm543_vm7, %v4095_v10, 0.0 }
 0xa5d   :  { %2151 = vadd.xlane.f32.xlu0 %v2150_v21 }
 0xa61   :  { %v4099_v23 = vpop.eup %3183 }
 0xa62   :  { %v2156_v24 = vsel %vm543_vm7, %v4099_v23, 0.0 }
 0xa63   :  { %2157 = vadd.xlane.f32.xlu2 %v2156_v24 }
 0xaa2   :  { %v2137_v26 = vpop.xlane.xlu2 %2136 }
 0xaa3   :  { %3185 = vrcp.f32 %v2137_v26  ;;  %v2170_v29 = vand.u32 2147483648, %v2137_v26  ;;  %v2168_v30 = vand.u32 2147483647, %v2137_v26  ;;  %vm2164_vm11 = vweird.f32 %v2137_v26 }
 0xaa5   :  { %v2171_v32 = vor.u32 1.1754944e-38, %v2170_v29  ;;  %vm2169_vm13 = vcmp.eq.f32.partialorder %v2168_v30, 8.507059e+37 }
 0xaa9   :  { %v3186_v22 = vpop.eup %3185 }
 0xaaa   :  { %v2160_v41 = vmul.f32 %v3186_v22, %v2137_v26  ;;  %vm2165_vm9 = vweird.f32 %v3186_v22 }
 0xaab   :  { %vm2166_vm12 = vmor %vm2164_vm11, %vm2165_vm9 }
 0xaac   :  { %v2161_v40 = vsub.f32 1.0, %v2160_v41 }
 0xaae   :  { %v2162_v5 = vmul.f32 %v3186_v22, %v2161_v40 }
 0xab0   :  { %v2163_v31 = vadd.f32 %v3186_v22, %v2162_v5 }
 0xab1   :  { %v2143_v20 = vpop.xlane.xlu0 %2142 }
 0xab2   :  { %v2167_v60 = vsel %vm2166_vm12, %v3186_v22, %v2163_v31  ;;  %3187 = vrcp.f32 %v2143_v20  ;;  %v2200_v43 = vand.u32 2147483648, %v2143_v20  ;;  %v2198_v44 = vand.u32 2147483647, %v2143_v20 }
 0xab3   :  { %v2172_v15 = vsel %vm2169_vm13, %v2171_v32, %v2167_v60  ;;  %vm2194_vm15 = vweird.f32 %v2143_v20 }
 0xab4   :  { %v2173_v33 = vmul.f32 %v4071_v51, %v2172_v15  ;;  %v2201_v49 = vor.u32 1.1754944e-38, %v2200_v43  ;;  %vm2199_vm1 = vcmp.eq.f32.partialorder %v2198_v44, 8.507059e+37 }
 0xab6   :  { %3032 = vmatmul.msk.f32.vlgmr.msrb.gmra.mxu3 %vm543_vm7, %v2173_v33 }
 0xab8   :  { %v3188_v35 = vpop.eup %3187 }
 0xab9   :  { %v2190_v36 = vmul.f32 %v3188_v35, %v2143_v20  ;;  %vm2195_vm14 = vweird.f32 %v3188_v35 }
 0xaba   :  { %vm2196_vm0 = vmor %vm2194_vm15, %vm2195_vm14 }
 0xabb   :  { %v2191_v38 = vsub.f32 1.0, %v2190_v36  ;;  %v2149_v39 = vpop.xlane.xlu2 %2148 }
 0xabc   :  { %3189 = vrcp.f32 %v2149_v39  ;;  %v2228_v58 = vand.u32 2147483647, %v2149_v39  ;;  %v2230_v61 = vand.u32 2147483648, %v2149_v39  ;;  %vm2224_vm3 = vweird.f32 %v2149_v39 }
 0xabd   :  { %v2192_v25 = vmul.f32 %v3188_v35, %v2191_v38 }
 0xabe   :  { %vm2229_vm5 = vcmp.eq.f32.partialorder %v2228_v58, 8.507059e+37  ;;  %v2231_v63 = vor.u32 1.1754944e-38, %v2230_v61 }
 0xabf   :  { %v2193_v46 = vadd.f32 %v3188_v35, %v2192_v25  ;;  %v2146_v47 = vpop.xlane.xlu1 %2145 }
 0xac0   :  { %3191 = vrcp.f32 %v2146_v47  ;;  %v2213_v9 = vand.u32 2147483647, %v2146_v47  ;;  %vm2209_vm9 = vweird.f32 %v2146_v47 }
 0xac1   :  { %v2197_v52 = vsel %vm2196_vm0, %v3188_v35, %v2193_v46 }
 0xac2   :  { %v3190_v51 = vpop.eup %3189  ;;  %v2202_v53 = vsel %vm2199_vm1, %v2201_v49, %v2197_v52  ;;  %vm2214_vm12 = vcmp.eq.f32.partialorder %v2213_v9, 8.507059e+37 }
 0xac3   :  { %v2220_v54 = vmul.f32 %v3190_v51, %v2149_v39  ;;  %v2203_v55 = vmul.f32 %v4075_v56, %v2202_v53  ;;  %vm2225_vm2 = vweird.f32 %v3190_v51  ;;  %v2215_v56 = vand.u32 2147483648, %v2146_v47 }
 0xac4   :  { %vm2226_vm4 = vmor %vm2224_vm3, %vm2225_vm2 }
 0xac5   :  { %v2221_v48 = vsub.f32 1.0, %v2220_v54  ;;  %3034 = vmatmul.msk.f32.vlgmr.msra.gmra.mxu1 %vm543_vm7, %v2203_v55  ;;  %v2216_v16 = vor.u32 1.1754944e-38, %v2215_v56  ;;  %v2529_v56 = vld [vmem:[%s4254_s1 + $0xe0] sm:$0xff] }
 0xac6   :  { %v3192_v57 = vpop.eup %3191  ;;  %2551 = vmatpush.msra.mxu1 %v2529_v56 }
 0xac7   :  { %v2222_v27 = vmul.f32 %v3190_v51, %v2221_v48  ;;  %v2205_v62 = vmul.f32 %v3192_v57, %v2146_v47  ;;  %v2140_v1 = vpop.xlane.xlu1 %2139  ;;  %vm2210_vm8 = vweird.f32 %v3192_v57 }
 0xac8   :  { %3193 = vrcp.f32 %v2140_v1  ;;  %v2155_v2 = vpop.xlane.xlu0 %2154  ;;  %vm2211_vm11 = vmor %vm2209_vm9, %vm2210_vm8  ;;  %v2185_v22 = vand.u32 2147483648, %v2140_v1  ;;  %vm2179_vm15 = vweird.f32 %v2140_v1 }
 0xac9   :  { %v2223_v34 = vadd.f32 %v3190_v51, %v2222_v27  ;;  %v2206_v4 = vsub.f32 1.0, %v2205_v62  ;;  %3195 = vrcp.f32 %v2155_v2  ;;  %v2260_v5 = vand.u32 2147483648, %v2155_v2 }
 0xaca   :  { %v2258_v31 = vand.u32 2147483647, %v2155_v2  ;;  %v2186_v60 = vor.u32 1.1754944e-38, %v2185_v22  ;;  %vm2254_vm1 = vweird.f32 %v2155_v2 }
 0xacb   :  { %v2227_v0 = vsel %vm2226_vm4, %v3190_v51, %v2223_v34  ;;  %v2207_v7 = vmul.f32 %v3192_v57, %v2206_v4 }
 0xacc   :  { %v2232_v11 = vsel %vm2229_vm5, %v2231_v63, %v2227_v0  ;;  %vm2259_vm4 = vcmp.eq.f32.partialorder %v2258_v31, 8.507059e+37  ;;  %v2464_v63 = vld [vmem:[%s4254_s1 + $0xd0] sm:$0xff] }
 0xacd   :  { %v2208_v37 = vadd.f32 %v3192_v57, %v2207_v7  ;;  %v2233_v8 = vmul.f32 %v4079_v50, %v2232_v11  ;;  %v2183_v50 = vand.u32 2147483647, %v2140_v1  ;;  %2486 = vmatpush.msrb.mxu3 %v2464_v63 }
 0xace   :  { %v3194_v13 = vpop.eup %3193 }
 0xacf   :  { %v3196_v17 = vpop.eup %3195  ;;  %v2212_v18 = vsel %vm2211_vm11, %v3192_v57, %v2208_v37  ;;  %v2175_v19 = vmul.f32 %v3194_v13, %v2140_v1  ;;  %3036 = vmatmul.msk.f32.vlgmr.msra.gmra.mxu3 %vm543_vm7, %v2233_v8  ;;  %vm2180_vm13 = vweird.f32 %v3194_v13  ;;  %vm2184_vm2 = vcmp.eq.f32.partialorder %v2183_v50, 8.507059e+37 }
 0xad0   :  { %v2217_v45 = vsel %vm2214_vm12, %v2216_v16, %v2212_v18  ;;  %v2250_v21 = vmul.f32 %v3196_v17, %v2155_v2  ;;  %v2152_v24 = vpop.xlane.xlu0 %2151  ;;  %vm2255_vm14 = vweird.f32 %v3196_v17  ;;  %vm2181_vm0 = vmor %vm2179_vm15, %vm2180_vm13 }
 0xad1   :  { %v2176_v26 = vsub.f32 1.0, %v2175_v19  ;;  %3197 = vrcp.f32 %v2152_v24  ;;  %v2218_v40 = vmul.f32 %v4083_v6, %v2217_v45  ;;  %vm2256_vm3 = vmor %vm2254_vm1, %vm2255_vm14  ;;  %v2261_v6 = vor.u32 1.1754944e-38, %v2260_v5 }
 0xad2   :  { %v2251_v41 = vsub.f32 1.0, %v2250_v21  ;;  %v2245_v47 = vand.u32 2147483648, %v2152_v24  ;;  %v2243_v52 = vand.u32 2147483647, %v2152_v24  ;;  %vm2239_vm8 = vweird.f32 %v2152_v24 }
 0xad3   :  { %v2177_v29 = vmul.f32 %v3194_v13, %v2176_v26  ;;  %3035 = vmatmul.msk.f32.vlgmr.msra.gmra.mxu2 %vm543_vm7, %v2218_v40 }
 0xad4   :  { %v2252_v30 = vmul.f32 %v3196_v17, %v2251_v41  ;;  %v2246_v55 = vor.u32 1.1754944e-38, %v2245_v47  ;;  %vm2244_vm11 = vcmp.eq.f32.partialorder %v2243_v52, 8.507059e+37 }
 0xad5   :  { %v2178_v32 = vadd.f32 %v3194_v13, %v2177_v29 }
 0xad6   :  { %v2253_v15 = vadd.f32 %v3196_v17, %v2252_v30  ;;  %v2158_v20 = vpop.xlane.xlu2 %2157 }
 0xad7   :  { %v3198_v33 = vpop.eup %3197  ;;  %v2182_v35 = vsel %vm2181_vm0, %v3194_v13, %v2178_v32  ;;  %3199 = vrcp.f32 %v2158_v20  ;;  %v2275_v58 = vand.u32 2147483648, %v2158_v20  ;;  %v2273_v61 = vand.u32 2147483647, %v2158_v20 }
 0xad8   :  { %v2187_v36 = vsel %vm2184_vm2, %v2186_v60, %v2182_v35  ;;  %v2257_v38 = vsel %vm2256_vm3, %v3196_v17, %v2253_v15  ;;  %v2235_v39 = vmul.f32 %v3198_v33, %v2152_v24  ;;  %vm2240_vm5 = vweird.f32 %v3198_v33  ;;  %v3101_v17 = vld [vmem:[%s4254_s1 + $0x18f] ss:$0 sm:$0xff] }
 0xad9   :  { %v2262_v43 = vsel %vm2259_vm4, %v2261_v6, %v2257_v38  ;;  %v2188_v25 = vmul.f32 %v4087_v3, %v2187_v36  ;;  %vm2241_vm9 = vmor %vm2239_vm8, %vm2240_vm5  ;;  %vm2269_vm13 = vweird.f32 %v2158_v20  ;;  %v2276_v1 = vor.u32 1.1754944e-38, %v2275_v58 }
 0xada   :  { %v2236_v44 = vsub.f32 1.0, %v2235_v39  ;;  %v2263_v46 = vmul.f32 %v4089_v12, %v2262_v43  ;;  %vm2274_vm15 = vcmp.eq.f32.partialorder %v2273_v61, 8.507059e+37 }
 0xadb   :  { %3033 = vmatmul.msk.f32.vlgmr.msrb.gmra.mxu0 %vm543_vm7, %v2188_v25 }
 0xadc   :  { %v2237_v49 = vmul.f32 %v3198_v33, %v2236_v44  ;;  %3038 = vmatmul.msk.f32.vlgmr.msrb.gmra.mxu1 %vm543_vm7, %v2263_v46 }
 0xadd   :  { %v3200_v51 = vpop.eup %3199 }
 0xade   :  { %v2238_v53 = vadd.f32 %v3198_v33, %v2237_v49  ;;  %v2265_v54 = vmul.f32 %v3200_v51, %v2158_v20  ;;  %vm2270_vm12 = vweird.f32 %v3200_v51 }
 0xadf   :  { %vm2271_vm14 = vmor %vm2269_vm13, %vm2270_vm12 }
 0xae0   :  { %v2242_v48 = vsel %vm2241_vm9, %v3198_v33, %v2238_v53  ;;  %v2266_v3 = vsub.f32 1.0, %v2265_v54  ;;  %v2681_v54 = vld [vmem:[%s4254_s1 + $0x100] sm:$0xff] }
 0xae1   :  { %v2247_v57 = vsel %vm2244_vm11, %v2246_v55, %v2242_v48  ;;  %v2680_v55 = vld [vmem:[%s4254_s1 + $0xf8] sm:$0xff] }
 0xae2   :  { %v2267_v12 = vmul.f32 %v3200_v51, %v2266_v3  ;;  %v2248_v27 = vmul.f32 %v4095_v10, %v2247_v57  ;;  %v2497_v10 = vld [vmem:[%s4254_s1 + $0xd8] sm:$0xff]  ;;  %v2679_v3 = vld [vmem:[%s4254_s1 + $0xf0] sm:$0xff] }
 0xae3   :  { %2519 = vmatpush.msrb.mxu0 %v2497_v10 }
 0xae4   :  { %v2268_v62 = vadd.f32 %v3200_v51, %v2267_v12  ;;  %3037 = vmatmul.msk.f32.vlgmr.msra.gmra.mxu0 %vm543_vm7, %v2248_v27 }
 0xae6   :  { %v2272_v2 = vsel %vm2271_vm14, %v3200_v51, %v2268_v62  ;;  %v2682_v51 = vld [vmem:[%s4254_s1 + $0x108] sm:$0xff]  ;;  %vm2766_vm14 = vcmask 261127  }
 0xae7   :  { %v2277_v34 = vsel %vm2274_vm15, %v2276_v1, %v2272_v2  ;;  %2703 = vmatpush.msra.mxu3 %v2682_v51  ;;  %vm2770_vm15 = vcmask 253952  }
 0xae8   :  { %v2278_v4 = vmul.f32 %v4099_v23, %v2277_v34  ;;  %v2561_v23 = vld [vmem:[%s4254_s1 + $0xe8] sm:$0xff] }
 0xae9   :  { %2583 = vmatpush.msra.mxu2 %v2561_v23  ;;  %2704 = vmatpush.msra.mxu3 %v2681_v54  ;;  %v2717_v54 = vld [vmem:[%s4254_s1 + $0x118] sm:$0xff] }
 0xaea   :  { %3039 = vmatmul.msk.f32.vlgmr.msrb.gmra.mxu2 %vm543_vm7, %v2278_v4 }
 0xaeb   :  { %2705 = vmatpush.msra.mxu3 %v2680_v55  ;;  %v3104_v55 = vld [vmem:[%s4254_s1 + $0x192] ss:$0 sm:$0xff] }
 0xaed   :  { %2706 = vmatpush.msra.mxu3 %v2679_v3 }
 0xb39   :  { %v2299_v0 = vpop.f32.mrf.mxu3 }
 0xb3a   :  { %3040 = vmatmul.msk.f32.vlgmr.msrb.gmra.mxu3 %vm543_vm7, %v2299_v0 }
 0xb42   :  { %v2345_v7 = vpop.f32.mrf.mxu1 }
 0xb43   :  { %3042 = vmatmul.msk.f32.vlgmr.msrb.gmra.mxu0 %vm543_vm7, %v2345_v7 }
 0xb52   :  { %v2391_v9 = vpop.f32.mrf.mxu3 }
 0xb53   :  { %3044 = vmatmul.msk.f32.vlgmr.msra.gmra.mxu1 %vm543_vm7, %v2391_v9 }
 0xb56   :  { %v2368_v11 = vpop.f32.mrf.mxu2 }
 0xb57   :  { %3043 = vmatmul.msk.f32.gmra.mxu0 %vm543_vm7, %v2368_v11  ;;  %v2723_v11 = vld [vmem:[%s4254_s1 + $0x148] sm:$0xff] }
 0xb58   :  { %v2322_v37 = vpop.f32.mrf.mxu0  ;;  %2739 = vmatpush.msra.mxu0 %v2723_v11 }
 0xb59   :  { %v2437_v8 = vpop.f32.mrf.mxu1  ;;  %3041 = vmatmul.msk.f32.gmra.mxu3 %vm543_vm7, %v2322_v37  ;;  %v2722_v37 = vld [vmem:[%s4254_s1 + $0x140] sm:$0xff] }
 0xb5a   :  { %3046 = vmatmul.msk.f32.vlgmr.msra.gmra.mxu2 %vm543_vm7, %v2437_v8  ;;  %v3102_v8 = vld [vmem:[%s4254_s1 + $0x194] ss:$0 sm:$0xff]  ;;  %2740 = vmatpush.msra.mxu0 %v2722_v37 }
 0xb61   :  { %v2414_v13 = vpop.f32.mrf.mxu0 }
 0xb62   :  { %3045 = vmatmul.msk.f32.gmra.mxu1 %vm543_vm7, %v2414_v13 }
 0xb6d   :  { %v2460_v16 = vpop.f32.mrf.mxu2 }
 0xb6e   :  { %3047 = vmatmul.msk.f32.gmra.mxu2 %vm543_vm7, %v2460_v16 }
 0xbbd   :  { %v2488_v18 = vpop.f32.mrf.mxu3 }
 0xbbe   :  { %v2495_v19 = vadd.f32 %v3101_v17, %v2488_v18 }
 0xbc0   :  { %v2521_v45 = vpop.f32.mrf.mxu0 }
 0xbc1   :  { %v2527_v24 = vadd.f32 %v2521_v45, %v2495_v19  ;;  %v2721_v19 = vld [vmem:[%s4254_s1 + $0x138] sm:$0xff] }
 0xbc2   :  { %2741 = vmatpush.msra.mxu0 %v2721_v19 }
 0xbd0   :  { %v2553_v21 = vpop.f32.mrf.mxu1 }
 0xbd1   :  { %v2559_v26 = vadd.f32 %v2553_v21, %v2527_v24  ;;  %v2720_v24 = vld [vmem:[%s4254_s1 + $0x130] sm:$0xff] }
 0xbd2   :  { %2742 = vmatpush.msra.mxu0 %v2720_v24 }
 0xbd4   :  { %v2524_v30 = vpop.f32.mrf.mxu0 }
 0xbdc   :  { %v2491_v50 = vpop.f32.mrf.mxu3 }
 0xbdd   :  { %v2585_v22 = vpop.f32.mrf.mxu2  ;;  %v2496_v5 = vadd.f32 %v3101_v17, %v2491_v50 }
 0xbde   :  { %v2591_v41 = vadd.f32 %v2585_v22, %v2559_v26 }
 0xbdf   :  { %v2528_v31 = vadd.f32 %v2524_v30, %v2496_v5  ;;  %v2556_v32 = vpop.f32.mrf.mxu1  ;;  %v3103_v5 = vld [vmem:[%s4254_s1 + $0x195] ss:$0 sm:$0xff]  ;;  %v2719_v30 = vld [vmem:[%s4254_s1 + $0x128] sm:$0xff] }
 0xbe0   :  { %v4143_v40 = vadd.f32 %v2591_v41, %v3781_v14  ;;  %2743 = vmatpush.msra.mxu0 %v2719_v30  ;;  %v2857_v30 = vld [vmem:[%s4254_s1 + $0x150] sm:$0xff] }
 0xbe1   :  { %v2560_v60 = vadd.f32 %v2556_v32, %v2528_v31 }
 0xbe2   :  { %v2597_v29 = vsel %vm92_vm6, %v4143_v40, 0.0 }
 0xbe3   :  { %2598 = vadd.xlane.f32.xlu1 %v2597_v29 }
 0xbf1   :  { %v2588_v15 = vpop.f32.mrf.mxu2 }
 0xbf2   :  { %v2592_v20 = vadd.f32 %v2588_v15, %v2560_v60 }
 0xbf4   :  { %v4148_v33 = vadd.f32 %v2592_v20, %v3786_v28 }
 0xbf6   :  { %v2600_v35 = vsel %vm92_vm6, %v4148_v33, 0.0 }
 0xbf7   :  { %2601 = vadd.xlane.f32.xlu2 %v2600_v35 }
 0xc56   :  { %v2599_v14 = vpop.xlane.xlu1 %2598 }
 0xc57   :  { %v2603_v6 = vmul.f32 %v2599_v14, %v3318_v42 }
 0xc59   :  { %v2605_v36 = vsub.f32 %v4143_v40, %v2603_v6 }
 0xc5b   :  { %v2607_v38 = vmul.f32 %v2605_v36, %v2605_v36  ;;  %v2618_v26 = vmul.f32 %v3102_v8, %v2605_v36 }
 0xc5d   :  { %v2609_v39 = vsel %vm92_vm6, %v2607_v38, 0.0 }
 0xc5e   :  { %2610 = vadd.xlane.f32.xlu0 %v2609_v39 }
 0xc6a   :  { %v2602_v43 = vpop.xlane.xlu2 %2601 }
 0xc6b   :  { %v2604_v25 = vmul.f32 %v2602_v43, %v3318_v42 }
 0xc6d   :  { %v4157_v44 = vsub.f32 %v4148_v33, %v2604_v25 }
 0xc6f   :  { %v2608_v28 = vmul.f32 %v4157_v44, %v4157_v44 }
 0xc71   :  { %v2612_v46 = vsel %vm92_vm6, %v2608_v28, 0.0 }
 0xc72   :  { %2613 = vadd.xlane.f32.xlu1 %v2612_v46  ;;  %v2619_v46 = vmul.f32 %v3102_v8, %v4157_v44  ;;  %v2716_v44 = vld [vmem:[%s4254_s1 + $0x110] sm:$0xff] }
 0xcd1   :  { %v2611_v47 = vpop.xlane.xlu0 %2610 }
 0xcd2   :  { %v2615_v49 = vmul.f32 %v2611_v47, %v3334_v59 }
 0xcd4   :  { %3201 = vrsqrt.f32 %v2615_v49  ;;  %vm2627_vm7 = vcmp.eq.f32.partialorder %v2615_v49, inf  ;;  %v2630_v62 = vand.u32 2147483648, %v2615_v49  ;;  %vm2629_vm0 = vcmp.eq.f32.partialorder %v2615_v49, 0.0 }
 0xcda   :  { %v3202_v52 = vpop.eup %3201 }
 0xcdb   :  { %v2621_v53 = vmul.f32 %v3202_v52, %v2615_v49 }
 0xcdd   :  { %v2622_v48 = vmul.f32 %v3202_v52, %v2621_v53  ;;  %v2718_v53 = vld [vmem:[%s4254_s1 + $0x120] sm:$0xff] }
 0xcde   :  { %2744 = vmatpush.msra.mxu0 %v2718_v53 }
 0xcdf   :  { %v2623_v57 = vmul.f32 0.5, %v2622_v48 }
 0xce0   :  { %2745 = vmatpush.msra.mxu0 %v2717_v54 }
 0xce1   :  { %v2624_v58 = vsub.f32 1.5, %v2623_v57 }
 0xce2   :  { %2746 = vmatpush.msra.mxu0 %v2716_v44 }
 0xce3   :  { %v2625_v12 = vmul.f32 %v3202_v52, %v2624_v58 }
 0xce5   :  { %v2626_v61 = vmul.f32 %v2625_v12, %v2615_v49  ;;  %v2614_v27 = vpop.xlane.xlu1 %2613 }
 0xce6   :  { %v2616_v1 = vmul.f32 %v2614_v27, %v3334_v59  ;;  %v3105_v27 = vld [vmem:[%s4254_s1 + $0x193] ss:$0 sm:$0xff] }
 0xce7   :  { %v2628_v2 = vsel %vm2627_vm7, %v2615_v49, %v2626_v61 }
 0xce8   :  { %v2631_v34 = vsel %vm2629_vm0, %v2630_v62, %v2628_v2  ;;  %3203 = vrsqrt.f32 %v2616_v1  ;;  %vm2639_vm4 = vcmp.eq.f32.partialorder %v2616_v1, inf  ;;  %v2642_v29 = vand.u32 2147483648, %v2616_v1 }
 0xce9   :  { %v2644_v4 = vadd.f32 1e-06, %v2631_v34  ;;  %vm2641_vm8 = vcmp.eq.f32.partialorder %v2616_v1, 0.0 }
 0xceb   :  { %3205 = vrcp.f32 %v2644_v4  ;;  %v2657_v16 = vand.u32 2147483648, %v2644_v4  ;;  %v2655_v18 = vand.u32 2147483647, %v2644_v4  ;;  %vm2651_vm2 = vweird.f32 %v2644_v4 }
 0xced   :  { %v2658_v41 = vor.u32 1.1754944e-38, %v2657_v16  ;;  %vm2656_vm5 = vcmp.eq.f32.partialorder %v2655_v18, 8.507059e+37 }
 0xcee   :  { %v3204_v63 = vpop.eup %3203 }
 0xcef   :  { %v2633_v10 = vmul.f32 %v3204_v63, %v2616_v1 }
 0xcf1   :  { %v3206_v56 = vpop.eup %3205  ;;  %v2634_v0 = vmul.f32 %v3204_v63, %v2633_v10 }
 0xcf2   :  { %v2647_v23 = vmul.f32 %v3206_v56, %v2644_v4  ;;  %vm2652_vm1 = vweird.f32 %v3206_v56 }
 0xcf3   :  { %v2635_v7 = vmul.f32 0.5, %v2634_v0  ;;  %vm2653_vm3 = vmor %vm2651_vm2, %vm2652_vm1 }
 0xcf4   :  { %v2648_v9 = vsub.f32 1.0, %v2647_v23 }
 0xcf5   :  { %v2636_v13 = vsub.f32 1.5, %v2635_v7 }
 0xcf6   :  { %v2649_v17 = vmul.f32 %v3206_v56, %v2648_v9 }
 0xcf7   :  { %v2637_v45 = vmul.f32 %v3204_v63, %v2636_v13 }
 0xcf8   :  { %v2650_v21 = vadd.f32 %v3206_v56, %v2649_v17 }
 0xcf9   :  { %v2638_v22 = vmul.f32 %v2637_v45, %v2616_v1 }
 0xcfa   :  { %v2654_v50 = vsel %vm2653_vm3, %v3206_v56, %v2650_v21  ;;  %vm2835_vm3 = vcmask 1040384  }
 0xcfb   :  { %v2640_v31 = vsel %vm2639_vm4, %v2616_v1, %v2638_v22  ;;  %v2659_v32 = vsel %vm2656_vm5, %v2658_v41, %v2654_v50 }
 0xcfc   :  { %v2660_v60 = vmul.f32 %v2659_v32, %v2618_v26  ;;  %v2643_v15 = vsel %vm2641_vm8, %v2642_v29, %v2640_v31  ;;  %v2859_v29 = vld [vmem:[%s4254_s1 + $0x160] sm:$0xff] }
 0xcfd   :  { %v2645_v20 = vadd.f32 1e-06, %v2643_v15 }
 0xcfe   :  { %v2677_v35 = vadd.f32 %v3103_v5, %v2660_v60 }
 0xcff   :  { %3207 = vrcp.f32 %v2645_v20  ;;  %v2672_v38 = vand.u32 2147483648, %v2645_v20  ;;  %v2670_v43 = vand.u32 2147483647, %v2645_v20  ;;  %vm2666_vm11 = vweird.f32 %v2645_v20 }
 0xd00   :  { %3048 = vmatmul.msk.f32.vlgmr.msra.gmra.mxu3 %vm92_vm6, %v2677_v35 }
 0xd01   :  { %v2673_v28 = vor.u32 1.1754944e-38, %v2672_v38  ;;  %vm2671_vm13 = vcmp.eq.f32.partialorder %v2670_v43, 8.507059e+37 }
 0xd05   :  { %v3208_v14 = vpop.eup %3207 }
 0xd06   :  { %v2662_v6 = vmul.f32 %v3208_v14, %v2645_v20  ;;  %vm2667_vm9 = vweird.f32 %v3208_v14 }
 0xd07   :  { %vm2668_vm12 = vmor %vm2666_vm11, %vm2667_vm9  ;;  %vm2886_vm11 = vcmask 25600  }
 0xd08   :  { %v2663_v36 = vsub.f32 1.0, %v2662_v6 }
 0xd0a   :  { %v2664_v39 = vmul.f32 %v3208_v14, %v2663_v36 }
 0xd0c   :  { %v2665_v25 = vadd.f32 %v3208_v14, %v2664_v39 }
 0xd0e   :  { %v2669_v47 = vsel %vm2668_vm12, %v3208_v14, %v2665_v25 }
 0xd0f   :  { %v2674_v49 = vsel %vm2671_vm13, %v2673_v28, %v2669_v47 }
 0xd10   :  { %v2675_v52 = vmul.f32 %v2674_v49, %v2619_v46 }
 0xd12   :  { %v2678_v51 = vadd.f32 %v3103_v5, %v2675_v52  ;;  %v2858_v5 = vld [vmem:[%s4254_s1 + $0x158] sm:$0xff] }
 0xd14   :  { %3049 = vmatmul.msk.f32.gmra.mxu3 %vm92_vm6, %v2678_v51 }
 0xd83   :  { %v2708_v48 = vpop.f32.mrf.mxu3 }
 0xd84   :  { %v2709_v3 = vadd.f32 %v3104_v55, %v2708_v48 }
 0xd86   :  { %v2714_v57 = vmax.f32 %v2709_v3, 0.0 }
 0xd88   :  { %3050 = vmatmul.msk.f32.vlgmr.msra.gmra.mxu0 %vm1398_vm10, %v2714_v57 }
 0xd97   :  { %v2711_v58 = vpop.f32.mrf.mxu3 }
 0xd98   :  { %v2712_v12 = vadd.f32 %v3104_v55, %v2711_v58 }
 0xd9a   :  { %v2715_v61 = vmax.f32 %v2712_v12, 0.0  ;;  %v3106_v12 = vld [vmem:[%s4254_s1 + $0x196] ss:$0 sm:$0xff] }
 0xd9c   :  { %3051 = vmatmul.msk.f32.gmra.mxu0 %vm1398_vm10, %v2715_v61  ;;  %vm2803_vm10 = vcmask 1041409  }
 0xe05   :  { %v2748_v62 = vpop.f32.mrf.mxu0 }
 0xe06   :  { %v2754_v1 = vadd.f32 %v2748_v62, %v4143_v40 }
 0xe08   :  { %v2757_v2 = vadd.f32 %v3105_v27, %v2754_v1 }
 0xe0a   :  { %v2767_v34 = vsel %vm2766_vm14, %v2757_v2, 0.0 }
 0xe0b   :  { %2768 = vadd.xlane.f32.xlu0 %v2767_v34 }
 0xe19   :  { %v2751_v4 = vpop.f32.mrf.mxu0 }
 0xe1a   :  { %v2755_v63 = vadd.f32 %v2751_v4, %v4148_v33  ;;  %v3107_v4 = vld [vmem:[%s4254_s1 + $0x197] ss:$0 sm:$0xff] }
 0xe1c   :  { %v2758_v10 = vadd.f32 %v3105_v27, %v2755_v63 }
 0xe1e   :  { %v2763_v56 = vrot.slane %v2758_v10, 7 }
 0xe20   :  { %v2771_v0 = vsel %vm2770_vm15, %v2763_v56, 0.0 }
 0xe21   :  { %2772 = vadd.xlane.f32.xlu2 %v2771_v0  ;;  %v3108_v0 = vld [vmem:[%s4254_s1 + $0x198] ss:$0 sm:$0xff] }
 0xe7e   :  { %v2769_v23 = vpop.xlane.xlu0 %2768 }
 0xe7f   :  { %v2774_v7 = vmul.f32 %v2769_v23, %v3318_v42 }
 0xe81   :  { %v2781_v9 = vsub.f32 %v2757_v2, %v2774_v7 }
 0xe83   :  { %v2783_v11 = vmul.f32 %v2781_v9, %v2781_v9  ;;  %v2801_v33 = vrot.slane %v2781_v9, 7 }
 0xe85   :  { %v2790_v37 = vsel %vm2766_vm14, %v2783_v11, 0.0 }
 0xe86   :  { %2791 = vadd.xlane.f32.xlu1 %v2790_v37 }
 0xe94   :  { %v2773_v40 = vpop.xlane.xlu2 %2772 }
 0xe95   :  { %v2775_v8 = vmul.f32 %v2773_v40, %v3318_v42  ;;  %v2860_v42 = vld [vmem:[%s4254_s1 + $0x168] sm:$0xff]  ;;  %s3250_s1 = smov [#allocation2]  }
 0xe96   :  { %2878 = vmatpush.msrb.mxu1 %v2860_v42  ;;  %s2917_s17 = sshll.u32 %s3250_s1, 4  ;;  %s2918_s17 = int_to_ptr.vmem [resolvable:$true] %s2917_s17 }
 0xe97   :  { %v2778_v13 = vrot.slane %v2775_v8, 1 }
 0xe98   :  { %2879 = vmatpush.msrb.mxu1 %v2859_v29 }
 0xe99   :  { %v2782_v16 = vsub.f32 %v2758_v10, %v2778_v13 }
 0xe9a   :  { %2880 = vmatpush.msrb.mxu1 %v2858_v5 }
 0xe9b   :  { %v2802_v17 = vrot.slane %v2782_v16, 6  ;;  %v2784_v18 = vmul.f32 %v2782_v16, %v2782_v16 }
 0xe9c   :  { %2881 = vmatpush.msrb.mxu1 %v2857_v30 }
 0xe9d   :  { %v2804_v19 = vsel %vm2803_vm10, %v2802_v17, %v2801_v33  ;;  %v2787_v45 = vrot.slane %v2784_v18, 7 }
 0xe9e   :  { %v2806_v2 = vmul.f32 %v3106_v12, %v2804_v19 }
 0xe9f   :  { %v2793_v21 = vsel %vm2770_vm15, %v2787_v45, 0.0 }
 0xea0   :  { %2794 = vadd.xlane.f32.xlu2 %v2793_v21 }
 0xef9   :  { %v2792_v24 = vpop.xlane.xlu1 %2791 }
 0xefa   :  { %v2796_v26 = vmul.f32 %v2792_v24, %v3334_v59 }
 0xefc   :  { %3209 = vrsqrt.f32 %v2796_v26  ;;  %vm2814_vm7 = vcmp.eq.f32.partialorder %v2796_v26, inf  ;;  %v2817_v25 = vand.u32 2147483648, %v2796_v26  ;;  %vm2816_vm0 = vcmp.eq.f32.partialorder %v2796_v26, 0.0 }
 0xf02   :  { %v3210_v22 = vpop.eup %3209 }
 0xf03   :  { %v2808_v41 = vmul.f32 %v3210_v22, %v2796_v26 }
 0xf05   :  { %v2809_v50 = vmul.f32 %v3210_v22, %v2808_v41 }
 0xf07   :  { %v2810_v31 = vmul.f32 0.5, %v2809_v50 }
 0xf09   :  { %v2811_v15 = vsub.f32 1.5, %v2810_v31 }
 0xf0b   :  { %v2812_v20 = vmul.f32 %v3210_v22, %v2811_v15 }
 0xf0d   :  { %v2813_v6 = vmul.f32 %v2812_v20, %v2796_v26 }
 0xf0f   :  { %v2815_v39 = vsel %vm2814_vm7, %v2796_v26, %v2813_v6 }
 0xf10   :  { %v2818_v46 = vsel %vm2816_vm0, %v2817_v25, %v2815_v39 }
 0xf13   :  { %v2795_v32 = vpop.xlane.xlu2 %2794 }
 0xf14   :  { %v2797_v60 = vmul.f32 %v2795_v32, %v3334_v59  ;;  %v2831_v59 = vadd.f32 1e-06, %v2818_v46 }
 0xf16   :  { %3211 = vrsqrt.f32 %v2797_v60  ;;  %vm2826_vm1 = vcmp.eq.f32.partialorder %v2797_v60, inf  ;;  %v2829_v49 = vand.u32 2147483648, %v2797_v60  ;;  %vm2828_vm2 = vcmp.eq.f32.partialorder %v2797_v60, 0.0 }
 0xf17   :  { %v2836_v54 = vrot.slane %v2831_v59, 7 }
 0xf1c   :  { %v3212_v35 = vpop.eup %3211 }
 0xf1d   :  { %v2820_v14 = vmul.f32 %v3212_v35, %v2797_v60 }
 0xf1f   :  { %v2821_v36 = vmul.f32 %v3212_v35, %v2820_v14 }
 0xf21   :  { %v2822_v38 = vmul.f32 0.5, %v2821_v36 }
 0xf23   :  { %v2823_v43 = vsub.f32 1.5, %v2822_v38 }
 0xf25   :  { %v2824_v28 = vmul.f32 %v3212_v35, %v2823_v43 }
 0xf27   :  { %v2825_v47 = vmul.f32 %v2824_v28, %v2797_v60 }
 0xf29   :  { %v2827_v52 = vsel %vm2826_vm1, %v2797_v60, %v2825_v47 }
 0xf2a   :  { %v2830_v51 = vsel %vm2828_vm2, %v2829_v49, %v2827_v52 }
 0xf2b   :  { %v2832_v53 = vadd.f32 1e-06, %v2830_v51 }
 0xf2d   :  { %v2837_v44 = vrot.slane %v2832_v53, 7 }
 0xf2f   :  { %v2838_v55 = vsel %vm2835_vm3, %v2836_v54, %v2837_v44 }
 0xf30   :  { %3213 = vrcp.f32 %v2838_v55  ;;  %v2851_v58 = vand.u32 2147483648, %v2838_v55  ;;  %v2849_v27 = vand.u32 2147483647, %v2838_v55  ;;  %vm2845_vm5 = vweird.f32 %v2838_v55 }
 0xf32   :  { %v2852_v1 = vor.u32 1.1754944e-38, %v2851_v58  ;;  %vm2850_vm9 = vcmp.eq.f32.partialorder %v2849_v27, 8.507059e+37 }
 0xf36   :  { %v3214_v48 = vpop.eup %3213 }
 0xf37   :  { %v2841_v3 = vmul.f32 %v3214_v48, %v2838_v55  ;;  %vm2846_vm4 = vweird.f32 %v3214_v48 }
 0xf38   :  { %vm2847_vm8 = vmor %vm2845_vm5, %vm2846_vm4 }
 0xf39   :  { %v2842_v57 = vsub.f32 1.0, %v2841_v3 }
 0xf3b   :  { %v2843_v61 = vmul.f32 %v3214_v48, %v2842_v57 }
 0xf3d   :  { %v2844_v62 = vadd.f32 %v3214_v48, %v2843_v61 }
 0xf3f   :  { %v2848_v34 = vsel %vm2847_vm8, %v3214_v48, %v2844_v62 }
 0xf40   :  { %v2853_v63 = vsel %vm2850_vm9, %v2852_v1, %v2848_v34 }
 0xf41   :  { %v2854_v10 = vmul.f32 %v2853_v63, %v2806_v2 }
 0xf43   :  { %v2856_v56 = vadd.f32 %v3107_v4, %v2854_v10 }
 0xf45   :  { %3052 = vmatmul.msk.f32.vlgmr.msrb.gmra.mxu1 %vm92_vm6, %v2856_v56 }
 0xfc2   :  { %v2883_v23 = vpop.f32.mrf.mxu1 }
 0xfc3   :  { %v2884_v7 = vadd.f32 %v3108_v0, %v2883_v23 }
 0xfc5   :  { %v2887_v9 = vsel %vm2886_vm11, %v2884_v7, -inf }
 0xfc6   :  { %2888 = vmax.xlane.f32.xlu0 %v2887_v9 }
0x1039   :  { %v2889_v11 = vpop.xlane.xlu0 %2888 }
0x103a   :  { %v2890_v37 = vsub.f32 %v2884_v7, %v2889_v11 }
0x103c   :  { %v2891_v40 = vmul.f32 1.442695, %v2890_v37 }
0x103e   :  { %3215 = vpow2.f32 %v2891_v40 }
0x1044   :  { %v3216_v8 = vpop.eup %3215 }
0x1045   :  { %v2893_v13 = vsel %vm2886_vm11, %v3216_v8, 0.0 }
0x1046   :  { %2894 = vadd.xlane.f32.xlu1 %v2893_v13 }
0x10b9   :  { %v2895_v16 = vpop.xlane.xlu1 %2894 }
0x10ba   :  { %3217 = vrcp.f32 %v2895_v16  ;;  %v2907_v19 = vand.u32 2147483648, %v2895_v16  ;;  %v2905_v21 = vand.u32 2147483647, %v2895_v16  ;;  %vm2901_vm12 = vweird.f32 %v2895_v16 }
0x10bc   :  { %v2908_v26 = vor.u32 1.1754944e-38, %v2907_v19  ;;  %vm2906_vm14 = vcmp.eq.f32.partialorder %v2905_v21, 8.507059e+37 }
0x10c0   :  { %v3218_v33 = vpop.eup %3217 }
0x10c1   :  { %v2897_v17 = vmul.f32 %v3218_v33, %v2895_v16  ;;  %vm2902_vm6 = vweird.f32 %v3218_v33 }
0x10c2   :  { %vm2903_vm13 = vmor %vm2901_vm12, %vm2902_vm6 }
0x10c3   :  { %v2898_v18 = vsub.f32 1.0, %v2897_v17 }
0x10c5   :  { %v2899_v45 = vmul.f32 %v3218_v33, %v2898_v18 }
0x10c7   :  { %v2900_v24 = vadd.f32 %v3218_v33, %v2899_v45 }
0x10c9   :  { %v2904_v22 = vsel %vm2903_vm13, %v3218_v33, %v2900_v24 }
0x10ca   :  { %v2909_v41 = vsel %vm2906_vm14, %v2908_v26, %v2904_v22 }
0x10cb   :  { %v2910_v42 = vmul.f32 %v3216_v8, %v2909_v41 }
0x10cd   :  { %2911 = vst.msk [vmem:[#allocation2] sm:$0x3] %vm2886_vm11, %v2910_v42 }
0x10ce   :  { %2922 = dma.vmem_to_hbm [thread:$0]  %s2918_s17, 32, %s2920_s20, [#allocation3]  }
0x10cf   :  { %3243 = dma.done.wait [#allocation3], 32  }
0x10d0   :  { %3244 = vsyncadd [#allocation3], 4294967264 }
0x10d1   :  { %2927 = vsyncpa [#allocation3], 1 }

</bundles_post_ra>
